<compile_context>
chip_gen: v7x
topology: tpu7x:2x2x1
jax: 0.10.0
libtpu: 0.0.40
codegen_flags: <defaults>
</compile_context>

<pallas_src>
import math

import jax
import jax.numpy as jnp
from jax import lax
from jax.experimental import pallas as pl
from jax.experimental.pallas import tpu as pltpu  # noqa: F401  (TPU backend)

# ---- small synthetic Gemma config ----
BATCH = 2
SEQ = 8
HIDDEN = 32
INTERMEDIATE = 64
NUM_LAYERS = 2
NUM_HEADS = 4
NUM_KV_HEADS = 2
HEAD_DIM = 16
VOCAB = 128
NREP = NUM_HEADS // NUM_KV_HEADS
ROPE_THETA = 10000.0
RMS_EPS = 1e-6
MASK_VALUE = -1e9

M_TOTAL = BATCH * SEQ
Q_DIM = NUM_HEADS * HEAD_DIM          # 64
KV_DIM = NUM_KV_HEADS * HEAD_DIM      # 32
QKV_DIM = Q_DIM + 2 * KV_DIM          # 128


# ---------------- in-kernel helpers ----------------
def _rms_normalize(x, gamma):
    # GemmaRMSNorm: x * rsqrt(mean(x^2) + eps) * (1 + weight), f32 math.
    var = jnp.mean(x * x, axis=-1, keepdims=True)
    return x * lax.rsqrt(var + RMS_EPS) * (1.0 + gamma)


def _nk_matmul(x_bf16, w_bf16):
    # x (M, K) bf16 @ torch-Linear-layout weight (N, K) bf16 -> (M, N) f32.
    return lax.dot_general(
        x_bf16, w_bf16,
        dimension_numbers=(((1,), (1,)), ((), ())),
        preferred_element_type=jnp.float32)


# ---------------- the single fused Pallas kernel ----------------
def _gemma_forward_kernel(x_ref, cos_ref, sin_ref, rp_ref,
                          in_norm_ref, post_norm_ref,
                          wqkv_ref, wo_ref, wg_ref, wu_ref, wd_ref,
                          fin_norm_ref, lm_ref, o_ref):
    scale = 1.0 / math.sqrt(HEAD_DIM)

    # Gemma embedding normalizer.
    h = x_ref[...] * math.sqrt(HIDDEN)                      # (M, H) f32

    cos_all = cos_ref[...]                                  # (M, D) f32
    sin_all = sin_ref[...]
    rp = rp_ref[...]                                        # (D, D) rotate_half permutation

    # Causal additive bias, hoisted once (queries/keys share positions 0..T-1).
    rows_i = lax.broadcasted_iota(jnp.int32, (SEQ, SEQ), 0)
    cols_i = lax.broadcasted_iota(jnp.int32, (SEQ, SEQ), 1)
    causal_bias = jnp.where(cols_i <= rows_i, 0.0, MASK_VALUE).astype(jnp.float32)

    def rope(x2d, cos_b, sin_b):
        # q*cos + rotate_half(q)*sin, with rotate_half = x @ P (interleaved
        # even/odd convention of the PyTorch spec), f32 math on the MXU.
        rot = lax.dot_general(x2d, rp,
                              dimension_numbers=(((1,), (0,)), ((), ())),
                              preferred_element_type=jnp.float32)
        return x2d * cos_b + rot * sin_b

    for li in range(NUM_LAYERS):
        # --- input_layernorm + fused [wq;wk;wv] projection (one MXU matmul) ---
        xn = _rms_normalize(h, in_norm_ref[li])
        qkv = _nk_matmul(xn.astype(jnp.bfloat16), wqkv_ref[li])   # (M, 128) f32

        # --- attention, per (batch, head) on 2D slices, GQA via head->kv map ---
        batch_rows = []
        for b in range(BATCH):
            r0 = b * SEQ
            cos_b = cos_all[r0:r0 + SEQ]                     # (T, D)
            sin_b = sin_all[r0:r0 + SEQ]

            k_heads = []
            v_heads = []
            for g in range(NUM_KV_HEADS):
                kc = Q_DIM + g * HEAD_DIM
                vc = Q_DIM + KV_DIM + g * HEAD_DIM
                kh = rope(qkv[r0:r0 + SEQ, kc:kc + HEAD_DIM], cos_b, sin_b)
                k_heads.append(kh.astype(jnp.bfloat16))       # (T, D)
                v_heads.append(qkv[r0:r0 + SEQ, vc:vc + HEAD_DIM].astype(jnp.bfloat16))

            o_cols = []
            for hh in range(NUM_HEADS):
                qc = hh * HEAD_DIM
                qh = rope(qkv[r0:r0 + SEQ, qc:qc + HEAD_DIM], cos_b, sin_b)
                g = hh // NREP
                s = lax.dot_general(qh.astype(jnp.bfloat16), k_heads[g],
                                    dimension_numbers=(((1,), (1,)), ((), ())),
                                    preferred_element_type=jnp.float32) * scale
                s = s + causal_bias
                s = s - jnp.max(s, axis=-1, keepdims=True)
                p = jnp.exp(s)
                p = p * pl.reciprocal(jnp.sum(p, axis=-1, keepdims=True), approx=True)
                oh = lax.dot_general(p.astype(jnp.bfloat16), v_heads[g],
                                     dimension_numbers=(((1,), (0,)), ((), ())),
                                     preferred_element_type=jnp.float32)
                o_cols.append(oh)                             # (T, D) f32
            batch_rows.append(jnp.concatenate(o_cols, axis=1))  # (T, NH*D)
        attn2d = jnp.concatenate(batch_rows, axis=0)             # (M, NH*D) f32

        # --- o_proj + residual ---
        h = h + _nk_matmul(attn2d.astype(jnp.bfloat16), wo_ref[li])

        # --- post_attention_layernorm + gate/up + gelu(tanh)*up + down + residual ---
        xb = _rms_normalize(h, post_norm_ref[li]).astype(jnp.bfloat16)
        gate = _nk_matmul(xb, wg_ref[li])
        up = _nk_matmul(xb, wu_ref[li])
        act = jax.nn.gelu(gate, approximate=True) * up            # f32 math
        h = h + _nk_matmul(act.astype(jnp.bfloat16), wd_ref[li])

    # --- final GemmaRMSNorm + lm_head (lane-dense (M, 128) output, only HBM write) ---
    xf = _rms_normalize(h, fin_norm_ref[...]).astype(jnp.bfloat16)
    o_ref[...] = _nk_matmul(xf, lm_ref[...])


# ---------------- host-side glue ----------------
def rotary_cos_sin(position_ids, dim, base):
    inv_freq = 1.0 / (base ** (jnp.arange(0, dim, 2, dtype=jnp.float32) / dim))
    freqs = jnp.einsum('d,bt->btd', inv_freq, position_ids.astype(jnp.float32))
    emb = jnp.concatenate([freqs, freqs], axis=-1)            # (B, T, dim)
    return jnp.cos(emb), jnp.sin(emb)


def rotate_half_perm(dim):
    # Constant permutation matrix P with rotate_half(x) == x @ P for the
    # interleaved convention: out[i<d/2] = -x[2i+1], out[d/2+j] = x[2j].
    half = dim // 2
    idx = jnp.arange(half)
    p = jnp.zeros((dim, dim), jnp.float32)
    p = p.at[2 * idx + 1, idx].set(-1.0)
    p = p.at[2 * idx, idx + half].set(1.0)
    return p


def gemma_forward_pallas(params, inputs_embeds, position_ids):
    B, T, H = inputs_embeds.shape
    x2d = inputs_embeds.reshape(B * T, H)
    cos, sin = rotary_cos_sin(position_ids, HEAD_DIM, ROPE_THETA)
    cos2d = cos.reshape(B * T, HEAD_DIM)
    sin2d = sin.reshape(B * T, HEAD_DIM)
    rp = rotate_half_perm(HEAD_DIM)

    logits2d = pl.pallas_call(
        _gemma_forward_kernel,
        out_shape=jax.ShapeDtypeStruct((B * T, VOCAB), jnp.float32),
    )(x2d, cos2d, sin2d, rp,
      params['input_norm'], params['post_norm'],
      params['wqkv'], params['wo'],
      params['w_gate'], params['w_up'], params['w_down'],
      params['final_norm'], params['lm_head'])
    return logits2d.reshape(B, T, VOCAB)


# ---------------- pure-JAX f32 reference (correctness check) ----------------
def gemma_forward_ref(params, inputs_embeds, attention_mask, position_ids):
    B, T, H = inputs_embeds.shape

    def rmsnorm(x, g):
        var = jnp.mean(x * x, axis=-1, keepdims=True)
        return x * lax.rsqrt(var + RMS_EPS) * (1.0 + g)

    def lin(x, w):
        return x @ w.astype(jnp.float32).T

    def rotate_half(x):
        x1 = x[..., 0::2]
        x2 = x[..., 1::2]
        return jnp.concatenate([-x2, x1], axis=-1)

    cos, sin = rotary_cos_sin(position_ids, HEAD_DIM, ROPE_THETA)
    cos4 = cos[:, None, :, :]
    sin4 = sin[:, None, :, :]

    h = inputs_embeds * math.sqrt(H)
    for li in range(NUM_LAYERS):
        resid = h
        x = rmsnorm(h, params['input_norm'][li])
        qkv = lin(x.reshape(B * T, H), params['wqkv'][li])
        q = qkv[:, :Q_DIM].reshape(B, T, NUM_HEADS, HEAD_DIM).transpose(0, 2, 1, 3)
        k = qkv[:, Q_DIM:Q_DIM + KV_DIM].reshape(B, T, NUM_KV_HEADS, HEAD_DIM).transpose(0, 2, 1, 3)
        v = qkv[:, Q_DIM + KV_DIM:].reshape(B, T, NUM_KV_HEADS, HEAD_DIM).transpose(0, 2, 1, 3)
        q = q * cos4 + rotate_half(q) * sin4
        k = k * cos4 + rotate_half(k) * sin4
        k = jnp.repeat(k, NREP, axis=1)
        v = jnp.repeat(v, NREP, axis=1)
        s = jnp.einsum('bhqd,bhkd->bhqk', q, k) / math.sqrt(HEAD_DIM) + attention_mask
        p = jax.nn.softmax(s.astype(jnp.float32), axis=-1)
        o = jnp.einsum('bhqk,bhkd->bhqd', p, v)
        o = o.transpose(0, 2, 1, 3).reshape(B * T, NUM_HEADS * HEAD_DIM)
        h = resid + lin(o, params['wo'][li]).reshape(B, T, H)
        resid = h
        x2d = rmsnorm(h, params['post_norm'][li]).reshape(B * T, H)
        gate = lin(x2d, params['w_gate'][li])
        up = lin(x2d, params['w_up'][li])
        mlp = lin(jax.nn.gelu(gate, approximate=True) * up, params['w_down'][li])
        h = resid + mlp.reshape(B, T, H)
    x = rmsnorm(h, params['final_norm'])
    return lin(x.reshape(B * T, H), params['lm_head']).reshape(B, T, VOCAB)


# ---------------- params (stacked per-layer weights, bf16, torch (N,K) layout) ----------------
def init_params(key):
    def linear_w(k, out_f, in_f):
        w = jax.random.normal(k, (out_f, in_f), jnp.float32) / math.sqrt(in_f)
        return w.astype(jnp.bfloat16)

    keys = jax.random.split(key, NUM_LAYERS + 1)
    in_norms, post_norms, wqkvs, wos, wgs, wus, wds = [], [], [], [], [], [], []
    for li in range(NUM_LAYERS):
        ks = jax.random.split(keys[li], 9)
        wq = linear_w(ks[0], Q_DIM, HIDDEN)
        wk = linear_w(ks[1], KV_DIM, HIDDEN)
        wv = linear_w(ks[2], KV_DIM, HIDDEN)
        wqkvs.append(jnp.concatenate([wq, wk, wv], axis=0))       # fused QKV (128, 32)
        in_norms.append(0.1 * jax.random.normal(ks[3], (1, HIDDEN), jnp.float32))
        wos.append(linear_w(ks[4], HIDDEN, Q_DIM))
        post_norms.append(0.1 * jax.random.normal(ks[5], (1, HIDDEN), jnp.float32))
        wgs.append(linear_w(ks[6], INTERMEDIATE, HIDDEN))
        wus.append(linear_w(ks[7], INTERMEDIATE, HIDDEN))
        wds.append(linear_w(ks[8], HIDDEN, INTERMEDIATE))
    kf = jax.random.split(keys[-1], 2)
    return {
        'input_norm': jnp.stack(in_norms),     # (L, 1, H) f32
        'post_norm': jnp.stack(post_norms),    # (L, 1, H) f32
        'wqkv': jnp.stack(wqkvs),              # (L, 128, H) bf16
        'wo': jnp.stack(wos),                  # (L, H, 64) bf16
        'w_gate': jnp.stack(wgs),              # (L, I, H) bf16
        'w_up': jnp.stack(wus),                # (L, I, H) bf16
        'w_down': jnp.stack(wds),              # (L, H, I) bf16
        'final_norm': 0.1 * jax.random.normal(kf[0], (1, HIDDEN), jnp.float32),
        'lm_head': linear_w(kf[1], VOCAB, HIDDEN),   # (V, H) bf16
    }


if __name__ == "__main__":
    key = jax.random.PRNGKey(0)
    kp, ke = jax.random.split(key)
    params = init_params(kp)

    inputs_embeds = jax.random.normal(ke, (BATCH, SEQ, HIDDEN), jnp.float32)
    position_ids = jnp.broadcast_to(
        jnp.arange(SEQ, dtype=jnp.int32)[None, :], (BATCH, SEQ))

    logits = jax.jit(gemma_forward_pallas)(params, inputs_embeds, position_ids)
    logits = jax.block_until_ready(logits)
    assert logits.shape == (BATCH, SEQ, VOCAB)

    # Reference uses the same additive causal mask the kernel generates in-VMEM.
    causal = jnp.tril(jnp.ones((SEQ, SEQ), dtype=bool))
    attention_mask = jnp.where(causal, 0.0, MASK_VALUE).astype(jnp.float32)
    attention_mask = jnp.broadcast_to(attention_mask[None, None], (BATCH, 1, SEQ, SEQ))
    with jax.default_matmul_precision("highest"):
        ref = gemma_forward_ref(params, inputs_embeds, attention_mask, position_ids)

    # Kernel uses bf16 MXU inputs (f32 accum) + approx reciprocal -> loose tolerance.
    max_diff = float(jnp.max(jnp.abs(logits - ref)))
    assert jnp.allclose(logits, ref, rtol=5e-2, atol=5e-2), max_diff

    print("KERNEL_OK")
</pallas_src>

<mosaic_0001>
module attributes {stable_mosaic.version = 11 : i64} {
  func.func @_gemma_forward_kernel(%arg0: memref<16x32xf32, #tpu.memory_space<vmem>>, %arg1: memref<16x16xf32, #tpu.memory_space<vmem>>, %arg2: memref<16x16xf32, #tpu.memory_space<vmem>>, %arg3: memref<16x16xf32, #tpu.memory_space<vmem>>, %arg4: memref<2x1x32xf32, #tpu.memory_space<vmem>>, %arg5: memref<2x1x32xf32, #tpu.memory_space<vmem>>, %arg6: memref<2x128x32xbf16, #tpu.memory_space<vmem>>, %arg7: memref<2x32x64xbf16, #tpu.memory_space<vmem>>, %arg8: memref<2x64x32xbf16, #tpu.memory_space<vmem>>, %arg9: memref<2x64x32xbf16, #tpu.memory_space<vmem>>, %arg10: memref<2x32x64xbf16, #tpu.memory_space<vmem>>, %arg11: memref<1x32xf32, #tpu.memory_space<vmem>>, %arg12: memref<128x32xbf16, #tpu.memory_space<vmem>>, %arg13: memref<16x128xf32, #tpu.memory_space<vmem>>) attributes {dimension_semantics = [], scalar_prefetch = 0 : i64, scratch_operands = 0 : i64, tpu.core_type = #tpu.core_type<tc>} {
    %c0 = arith.constant 0 : index
    %c0_0 = arith.constant 0 : index
    %0 = vector.load %arg0[%c0, %c0_0] : memref<16x32xf32, #tpu.memory_space<vmem>>, vector<16x32xf32>
    %cst = arith.constant 5.65685415 : f32
    %1 = vector.broadcast %cst : f32 to vector<16x32xf32>
    %2 = arith.mulf %0, %1 : vector<16x32xf32>
    %c0_1 = arith.constant 0 : index
    %c0_2 = arith.constant 0 : index
    %3 = vector.load %arg1[%c0_1, %c0_2] : memref<16x16xf32, #tpu.memory_space<vmem>>, vector<16x16xf32>
    %c0_3 = arith.constant 0 : index
    %c0_4 = arith.constant 0 : index
    %4 = vector.load %arg2[%c0_3, %c0_4] : memref<16x16xf32, #tpu.memory_space<vmem>>, vector<16x16xf32>
    %c0_5 = arith.constant 0 : index
    %c0_6 = arith.constant 0 : index
    %5 = vector.load %arg3[%c0_5, %c0_6] : memref<16x16xf32, #tpu.memory_space<vmem>>, vector<16x16xf32>
    %6 = tpu.iota {dimensions = array<i32: 0>} : vector<8x8xi32>
    %7 = tpu.iota {dimensions = array<i32: 1>} : vector<8x8xi32>
    %8 = arith.cmpi sle, %7, %6 : vector<8x8xi32>
    %cst_7 = arith.constant 0.000000e+00 : f32
    %cst_8 = arith.constant -1.000000e+09 : f32
    %9 = vector.broadcast %cst_7 : f32 to vector<8x8xf32>
    %10 = vector.broadcast %cst_8 : f32 to vector<8x8xf32>
    %11 = arith.select %8, %9, %10 : vector<8x8xi1>, vector<8x8xf32>
    %c0_9 = arith.constant 0 : index
    %c0_10 = arith.constant 0 : index
    %c0_11 = arith.constant 0 : index
    %12 = vector.load %arg4[%c0_9, %c0_10, %c0_11] : memref<2x1x32xf32, #tpu.memory_space<vmem>>, vector<1x1x32xf32>
    %13 = vector.shape_cast %12 : vector<1x1x32xf32> to vector<1x32xf32>
    %14 = arith.mulf %2, %2 : vector<16x32xf32>
    %cst_12 = arith.constant dense<0.000000e+00> : vector<16xf32>
    %15 = vector.multi_reduction <add>, %14, %cst_12 [1] : vector<16x32xf32> to vector<16xf32>
    %16 = vector.shape_cast %15 : vector<16xf32> to vector<16x1xf32>
    %cst_13 = arith.constant 3.200000e+01 : f32
    %17 = vector.broadcast %cst_13 : f32 to vector<16x1xf32>
    %18 = arith.divf %16, %17 : vector<16x1xf32>
    %cst_14 = arith.constant 9.99999997E-7 : f32
    %19 = vector.broadcast %cst_14 : f32 to vector<16x1xf32>
    %20 = arith.addf %18, %19 : vector<16x1xf32>
    %21 = math.rsqrt %20 : vector<16x1xf32>
    %22 = vector.broadcast %21 : vector<16x1xf32> to vector<16x32xf32>
    %23 = arith.mulf %2, %22 : vector<16x32xf32>
    %cst_15 = arith.constant 1.000000e+00 : f32
    %24 = vector.broadcast %cst_15 : f32 to vector<1x32xf32>
    %25 = arith.addf %24, %13 : vector<1x32xf32>
    %26 = vector.broadcast %25 : vector<1x32xf32> to vector<16x32xf32>
    %27 = arith.mulf %23, %26 : vector<16x32xf32>
    %28 = arith.truncf %27 : vector<16x32xf32> to vector<16x32xbf16>
    %c0_16 = arith.constant 0 : index
    %c0_17 = arith.constant 0 : index
    %c0_18 = arith.constant 0 : index
    %29 = vector.load %arg6[%c0_16, %c0_17, %c0_18] : memref<2x128x32xbf16, #tpu.memory_space<vmem>>, vector<1x128x32xbf16>
    %30 = vector.shape_cast %29 : vector<1x128x32xbf16> to vector<128x32xbf16>
    %cst_19 = arith.constant dense<0.000000e+00> : vector<16x128xf32>
    %31 = tpu.matmul %28, %30, %cst_19 {dimension_numbers = #tpu.dot_dimension_numbers<[1], [1], [0], [0], [0, 0, 1, 0], [], []>} : vector<16x32xbf16>, vector<128x32xbf16>, vector<16x128xf32> -> vector<16x128xf32>
    %32 = vector.extract_strided_slice %3 {offsets = [0, 0], sizes = [8, 16], strides = [1, 1]} : vector<16x16xf32> to vector<8x16xf32>
    %33 = vector.extract_strided_slice %4 {offsets = [0, 0], sizes = [8, 16], strides = [1, 1]} : vector<16x16xf32> to vector<8x16xf32>
    %34 = vector.extract_strided_slice %31 {offsets = [0, 64], sizes = [8, 16], strides = [1, 1]} : vector<16x128xf32> to vector<8x16xf32>
    %cst_20 = arith.constant dense<0.000000e+00> : vector<8x16xf32>
    %35 = tpu.matmul %34, %5, %cst_20 {dimension_numbers = #tpu.dot_dimension_numbers<[1], [0], [0], [1], [0, 0, 1, 1], [], []>} : vector<8x16xf32>, vector<16x16xf32>, vector<8x16xf32> -> vector<8x16xf32>
    %36 = arith.mulf %34, %32 : vector<8x16xf32>
    %37 = arith.mulf %35, %33 : vector<8x16xf32>
    %38 = arith.addf %36, %37 : vector<8x16xf32>
    %39 = arith.truncf %38 : vector<8x16xf32> to vector<8x16xbf16>
    %40 = vector.extract_strided_slice %31 {offsets = [0, 96], sizes = [8, 16], strides = [1, 1]} : vector<16x128xf32> to vector<8x16xf32>
    %41 = arith.truncf %40 : vector<8x16xf32> to vector<8x16xbf16>
    %42 = vector.extract_strided_slice %31 {offsets = [0, 80], sizes = [8, 16], strides = [1, 1]} : vector<16x128xf32> to vector<8x16xf32>
    %cst_21 = arith.constant dense<0.000000e+00> : vector<8x16xf32>
    %43 = tpu.matmul %42, %5, %cst_21 {dimension_numbers = #tpu.dot_dimension_numbers<[1], [0], [0], [1], [0, 0, 1, 1], [], []>} : vector<8x16xf32>, vector<16x16xf32>, vector<8x16xf32> -> vector<8x16xf32>
    %44 = arith.mulf %42, %32 : vector<8x16xf32>
    %45 = arith.mulf %43, %33 : vector<8x16xf32>
    %46 = arith.addf %44, %45 : vector<8x16xf32>
    %47 = arith.truncf %46 : vector<8x16xf32> to vector<8x16xbf16>
    %48 = vector.extract_strided_slice %31 {offsets = [0, 112], sizes = [8, 16], strides = [1, 1]} : vector<16x128xf32> to vector<8x16xf32>
    %49 = arith.truncf %48 : vector<8x16xf32> to vector<8x16xbf16>
    %50 = vector.extract_strided_slice %31 {offsets = [0, 0], sizes = [8, 16], strides = [1, 1]} : vector<16x128xf32> to vector<8x16xf32>
    %cst_22 = arith.constant dense<0.000000e+00> : vector<8x16xf32>
    %51 = tpu.matmul %50, %5, %cst_22 {dimension_numbers = #tpu.dot_dimension_numbers<[1], [0], [0], [1], [0, 0, 1, 1], [], []>} : vector<8x16xf32>, vector<16x16xf32>, vector<8x16xf32> -> vector<8x16xf32>
    %52 = arith.mulf %50, %32 : vector<8x16xf32>
    %53 = arith.mulf %51, %33 : vector<8x16xf32>
    %54 = arith.addf %52, %53 : vector<8x16xf32>
    %55 = arith.truncf %54 : vector<8x16xf32> to vector<8x16xbf16>
    %cst_23 = arith.constant dense<0.000000e+00> : vector<8x8xf32>
    %56 = tpu.matmul %55, %39, %cst_23 {dimension_numbers = #tpu.dot_dimension_numbers<[1], [1], [0], [0], [0, 0, 1, 0], [], []>} : vector<8x16xbf16>, vector<8x16xbf16>, vector<8x8xf32> -> vector<8x8xf32>
    %cst_24 = arith.constant 2.500000e-01 : f32
    %57 = vector.broadcast %cst_24 : f32 to vector<8x8xf32>
    %58 = arith.mulf %56, %57 : vector<8x8xf32>
    %59 = arith.addf %58, %11 : vector<8x8xf32>
    %cst_25 = arith.constant dense<0xFF800000> : vector<8xf32>
    %60 = vector.multi_reduction <maximumf>, %59, %cst_25 [1] : vector<8x8xf32> to vector<8xf32>
    %61 = vector.shape_cast %60 : vector<8xf32> to vector<8x1xf32>
    %62 = vector.broadcast %61 : vector<8x1xf32> to vector<8x8xf32>
    %63 = arith.subf %59, %62 : vector<8x8xf32>
    %64 = math.exp %63 : vector<8x8xf32>
    %cst_26 = arith.constant dense<0.000000e+00> : vector<8xf32>
    %65 = vector.multi_reduction <add>, %64, %cst_26 [1] : vector<8x8xf32> to vector<8xf32>
    %66 = vector.shape_cast %65 : vector<8xf32> to vector<8x1xf32>
    %67 = tpu.reciprocal %66 {approx = true} : vector<8x1xf32> -> vector<8x1xf32>
    %68 = vector.broadcast %67 : vector<8x1xf32> to vector<8x8xf32>
    %69 = arith.mulf %64, %68 : vector<8x8xf32>
    %70 = arith.truncf %69 : vector<8x8xf32> to vector<8x8xbf16>
    %cst_27 = arith.constant dense<0.000000e+00> : vector<8x16xf32>
    %71 = tpu.matmul %70, %41, %cst_27 {dimension_numbers = #tpu.dot_dimension_numbers<[1], [0], [0], [1], [0, 0, 1, 1], [], []>} : vector<8x8xbf16>, vector<8x16xbf16>, vector<8x16xf32> -> vector<8x16xf32>
    %72 = vector.extract_strided_slice %31 {offsets = [0, 16], sizes = [8, 16], strides = [1, 1]} : vector<16x128xf32> to vector<8x16xf32>
    %cst_28 = arith.constant dense<0.000000e+00> : vector<8x16xf32>
    %73 = tpu.matmul %72, %5, %cst_28 {dimension_numbers = #tpu.dot_dimension_numbers<[1], [0], [0], [1], [0, 0, 1, 1], [], []>} : vector<8x16xf32>, vector<16x16xf32>, vector<8x16xf32> -> vector<8x16xf32>
    %74 = arith.mulf %72, %32 : vector<8x16xf32>
    %75 = arith.mulf %73, %33 : vector<8x16xf32>
    %76 = arith.addf %74, %75 : vector<8x16xf32>
    %77 = arith.truncf %76 : vector<8x16xf32> to vector<8x16xbf16>
    %cst_29 = arith.constant dense<0.000000e+00> : vector<8x8xf32>
    %78 = tpu.matmul %77, %39, %cst_29 {dimension_numbers = #tpu.dot_dimension_numbers<[1], [1], [0], [0], [0, 0, 1, 0], [], []>} : vector<8x16xbf16>, vector<8x16xbf16>, vector<8x8xf32> -> vector<8x8xf32>
    %cst_30 = arith.constant 2.500000e-01 : f32
    %79 = vector.broadcast %cst_30 : f32 to vector<8x8xf32>
    %80 = arith.mulf %78, %79 : vector<8x8xf32>
    %81 = arith.addf %80, %11 : vector<8x8xf32>
    %cst_31 = arith.constant dense<0xFF800000> : vector<8xf32>
    %82 = vector.multi_reduction <maximumf>, %81, %cst_31 [1] : vector<8x8xf32> to vector<8xf32>
    %83 = vector.shape_cast %82 : vector<8xf32> to vector<8x1xf32>
    %84 = vector.broadcast %83 : vector<8x1xf32> to vector<8x8xf32>
    %85 = arith.subf %81, %84 : vector<8x8xf32>
    %86 = math.exp %85 : vector<8x8xf32>
    %cst_32 = arith.constant dense<0.000000e+00> : vector<8xf32>
    %87 = vector.multi_reduction <add>, %86, %cst_32 [1] : vector<8x8xf32> to vector<8xf32>
    %88 = vector.shape_cast %87 : vector<8xf32> to vector<8x1xf32>
    %89 = tpu.reciprocal %88 {approx = true} : vector<8x1xf32> -> vector<8x1xf32>
    %90 = vector.broadcast %89 : vector<8x1xf32> to vector<8x8xf32>
    %91 = arith.mulf %86, %90 : vector<8x8xf32>
    %92 = arith.truncf %91 : vector<8x8xf32> to vector<8x8xbf16>
    %cst_33 = arith.constant dense<0.000000e+00> : vector<8x16xf32>
    %93 = tpu.matmul %92, %41, %cst_33 {dimension_numbers = #tpu.dot_dimension_numbers<[1], [0], [0], [1], [0, 0, 1, 1], [], []>} : vector<8x8xbf16>, vector<8x16xbf16>, vector<8x16xf32> -> vector<8x16xf32>
    %94 = vector.extract_strided_slice %31 {offsets = [0, 32], sizes = [8, 16], strides = [1, 1]} : vector<16x128xf32> to vector<8x16xf32>
    %cst_34 = arith.constant dense<0.000000e+00> : vector<8x16xf32>
    %95 = tpu.matmul %94, %5, %cst_34 {dimension_numbers = #tpu.dot_dimension_numbers<[1], [0], [0], [1], [0, 0, 1, 1], [], []>} : vector<8x16xf32>, vector<16x16xf32>, vector<8x16xf32> -> vector<8x16xf32>
    %96 = arith.mulf %94, %32 : vector<8x16xf32>
    %97 = arith.mulf %95, %33 : vector<8x16xf32>
    %98 = arith.addf %96, %97 : vector<8x16xf32>
    %99 = arith.truncf %98 : vector<8x16xf32> to vector<8x16xbf16>
    %cst_35 = arith.constant dense<0.000000e+00> : vector<8x8xf32>
    %100 = tpu.matmul %99, %47, %cst_35 {dimension_numbers = #tpu.dot_dimension_numbers<[1], [1], [0], [0], [0, 0, 1, 0], [], []>} : vector<8x16xbf16>, vector<8x16xbf16>, vector<8x8xf32> -> vector<8x8xf32>
    %cst_36 = arith.constant 2.500000e-01 : f32
    %101 = vector.broadcast %cst_36 : f32 to vector<8x8xf32>
    %102 = arith.mulf %100, %101 : vector<8x8xf32>
    %103 = arith.addf %102, %11 : vector<8x8xf32>
    %cst_37 = arith.constant dense<0xFF800000> : vector<8xf32>
    %104 = vector.multi_reduction <maximumf>, %103, %cst_37 [1] : vector<8x8xf32> to vector<8xf32>
    %105 = vector.shape_cast %104 : vector<8xf32> to vector<8x1xf32>
    %106 = vector.broadcast %105 : vector<8x1xf32> to vector<8x8xf32>
    %107 = arith.subf %103, %106 : vector<8x8xf32>
    %108 = math.exp %107 : vector<8x8xf32>
    %cst_38 = arith.constant dense<0.000000e+00> : vector<8xf32>
    %109 = vector.multi_reduction <add>, %108, %cst_38 [1] : vector<8x8xf32> to vector<8xf32>
    %110 = vector.shape_cast %109 : vector<8xf32> to vector<8x1xf32>
    %111 = tpu.reciprocal %110 {approx = true} : vector<8x1xf32> -> vector<8x1xf32>
    %112 = vector.broadcast %111 : vector<8x1xf32> to vector<8x8xf32>
    %113 = arith.mulf %108, %112 : vector<8x8xf32>
    %114 = arith.truncf %113 : vector<8x8xf32> to vector<8x8xbf16>
    %cst_39 = arith.constant dense<0.000000e+00> : vector<8x16xf32>
    %115 = tpu.matmul %114, %49, %cst_39 {dimension_numbers = #tpu.dot_dimension_numbers<[1], [0], [0], [1], [0, 0, 1, 1], [], []>} : vector<8x8xbf16>, vector<8x16xbf16>, vector<8x16xf32> -> vector<8x16xf32>
    %116 = vector.extract_strided_slice %31 {offsets = [0, 48], sizes = [8, 16], strides = [1, 1]} : vector<16x128xf32> to vector<8x16xf32>
    %cst_40 = arith.constant dense<0.000000e+00> : vector<8x16xf32>
    %117 = tpu.matmul %116, %5, %cst_40 {dimension_numbers = #tpu.dot_dimension_numbers<[1], [0], [0], [1], [0, 0, 1, 1], [], []>} : vector<8x16xf32>, vector<16x16xf32>, vector<8x16xf32> -> vector<8x16xf32>
    %118 = arith.mulf %116, %32 : vector<8x16xf32>
    %119 = arith.mulf %117, %33 : vector<8x16xf32>
    %120 = arith.addf %118, %119 : vector<8x16xf32>
    %121 = arith.truncf %120 : vector<8x16xf32> to vector<8x16xbf16>
    %cst_41 = arith.constant dense<0.000000e+00> : vector<8x8xf32>
    %122 = tpu.matmul %121, %47, %cst_41 {dimension_numbers = #tpu.dot_dimension_numbers<[1], [1], [0], [0], [0, 0, 1, 0], [], []>} : vector<8x16xbf16>, vector<8x16xbf16>, vector<8x8xf32> -> vector<8x8xf32>
    %cst_42 = arith.constant 2.500000e-01 : f32
    %123 = vector.broadcast %cst_42 : f32 to vector<8x8xf32>
    %124 = arith.mulf %122, %123 : vector<8x8xf32>
    %125 = arith.addf %124, %11 : vector<8x8xf32>
    %cst_43 = arith.constant dense<0xFF800000> : vector<8xf32>
    %126 = vector.multi_reduction <maximumf>, %125, %cst_43 [1] : vector<8x8xf32> to vector<8xf32>
    %127 = vector.shape_cast %126 : vector<8xf32> to vector<8x1xf32>
    %128 = vector.broadcast %127 : vector<8x1xf32> to vector<8x8xf32>
    %129 = arith.subf %125, %128 : vector<8x8xf32>
    %130 = math.exp %129 : vector<8x8xf32>
    %cst_44 = arith.constant dense<0.000000e+00> : vector<8xf32>
    %131 = vector.multi_reduction <add>, %130, %cst_44 [1] : vector<8x8xf32> to vector<8xf32>
    %132 = vector.shape_cast %131 : vector<8xf32> to vector<8x1xf32>
    %133 = tpu.reciprocal %132 {approx = true} : vector<8x1xf32> -> vector<8x1xf32>
    %134 = vector.broadcast %133 : vector<8x1xf32> to vector<8x8xf32>
    %135 = arith.mulf %130, %134 : vector<8x8xf32>
    %136 = arith.truncf %135 : vector<8x8xf32> to vector<8x8xbf16>
    %cst_45 = arith.constant dense<0.000000e+00> : vector<8x16xf32>
    %137 = tpu.matmul %136, %49, %cst_45 {dimension_numbers = #tpu.dot_dimension_numbers<[1], [0], [0], [1], [0, 0, 1, 1], [], []>} : vector<8x8xbf16>, vector<8x16xbf16>, vector<8x16xf32> -> vector<8x16xf32>
    %138 = tpu.concatenate %71, %93, %115, %137 in 1 : vector<8x16xf32>, vector<8x16xf32>, vector<8x16xf32>, vector<8x16xf32> -> vector<8x64xf32>
    %139 = vector.extract_strided_slice %3 {offsets = [8, 0], sizes = [8, 16], strides = [1, 1]} : vector<16x16xf32> to vector<8x16xf32>
    %140 = vector.extract_strided_slice %4 {offsets = [8, 0], sizes = [8, 16], strides = [1, 1]} : vector<16x16xf32> to vector<8x16xf32>
    %141 = vector.extract_strided_slice %31 {offsets = [8, 64], sizes = [8, 16], strides = [1, 1]} : vector<16x128xf32> to vector<8x16xf32>
    %cst_46 = arith.constant dense<0.000000e+00> : vector<8x16xf32>
    %142 = tpu.matmul %141, %5, %cst_46 {dimension_numbers = #tpu.dot_dimension_numbers<[1], [0], [0], [1], [0, 0, 1, 1], [], []>} : vector<8x16xf32>, vector<16x16xf32>, vector<8x16xf32> -> vector<8x16xf32>
    %143 = arith.mulf %141, %139 : vector<8x16xf32>
    %144 = arith.mulf %142, %140 : vector<8x16xf32>
    %145 = arith.addf %143, %144 : vector<8x16xf32>
    %146 = arith.truncf %145 : vector<8x16xf32> to vector<8x16xbf16>
    %147 = vector.extract_strided_slice %31 {offsets = [8, 96], sizes = [8, 16], strides = [1, 1]} : vector<16x128xf32> to vector<8x16xf32>
    %148 = arith.truncf %147 : vector<8x16xf32> to vector<8x16xbf16>
    %149 = vector.extract_strided_slice %31 {offsets = [8, 80], sizes = [8, 16], strides = [1, 1]} : vector<16x128xf32> to vector<8x16xf32>
    %cst_47 = arith.constant dense<0.000000e+00> : vector<8x16xf32>
    %150 = tpu.matmul %149, %5, %cst_47 {dimension_numbers = #tpu.dot_dimension_numbers<[1], [0], [0], [1], [0, 0, 1, 1], [], []>} : vector<8x16xf32>, vector<16x16xf32>, vector<8x16xf32> -> vector<8x16xf32>
    %151 = arith.mulf %149, %139 : vector<8x16xf32>
    %152 = arith.mulf %150, %140 : vector<8x16xf32>
    %153 = arith.addf %151, %152 : vector<8x16xf32>
    %154 = arith.truncf %153 : vector<8x16xf32> to vector<8x16xbf16>
    %155 = vector.extract_strided_slice %31 {offsets = [8, 112], sizes = [8, 16], strides = [1, 1]} : vector<16x128xf32> to vector<8x16xf32>
    %156 = arith.truncf %155 : vector<8x16xf32> to vector<8x16xbf16>
    %157 = vector.extract_strided_slice %31 {offsets = [8, 0], sizes = [8, 16], strides = [1, 1]} : vector<16x128xf32> to vector<8x16xf32>
    %cst_48 = arith.constant dense<0.000000e+00> : vector<8x16xf32>
    %158 = tpu.matmul %157, %5, %cst_48 {dimension_numbers = #tpu.dot_dimension_numbers<[1], [0], [0], [1], [0, 0, 1, 1], [], []>} : vector<8x16xf32>, vector<16x16xf32>, vector<8x16xf32> -> vector<8x16xf32>
    %159 = arith.mulf %157, %139 : vector<8x16xf32>
    %160 = arith.mulf %158, %140 : vector<8x16xf32>
    %161 = arith.addf %159, %160 : vector<8x16xf32>
    %162 = arith.truncf %161 : vector<8x16xf32> to vector<8x16xbf16>
    %cst_49 = arith.constant dense<0.000000e+00> : vector<8x8xf32>
    %163 = tpu.matmul %162, %146, %cst_49 {dimension_numbers = #tpu.dot_dimension_numbers<[1], [1], [0], [0], [0, 0, 1, 0], [], []>} : vector<8x16xbf16>, vector<8x16xbf16>, vector<8x8xf32> -> vector<8x8xf32>
    %cst_50 = arith.constant 2.500000e-01 : f32
    %164 = vector.broadcast %cst_50 : f32 to vector<8x8xf32>
    %165 = arith.mulf %163, %164 : vector<8x8xf32>
    %166 = arith.addf %165, %11 : vector<8x8xf32>
    %cst_51 = arith.constant dense<0xFF800000> : vector<8xf32>
    %167 = vector.multi_reduction <maximumf>, %166, %cst_51 [1] : vector<8x8xf32> to vector<8xf32>
    %168 = vector.shape_cast %167 : vector<8xf32> to vector<8x1xf32>
    %169 = vector.broadcast %168 : vector<8x1xf32> to vector<8x8xf32>
    %170 = arith.subf %166, %169 : vector<8x8xf32>
    %171 = math.exp %170 : vector<8x8xf32>
    %cst_52 = arith.constant dense<0.000000e+00> : vector<8xf32>
    %172 = vector.multi_reduction <add>, %171, %cst_52 [1] : vector<8x8xf32> to vector<8xf32>
    %173 = vector.shape_cast %172 : vector<8xf32> to vector<8x1xf32>
    %174 = tpu.reciprocal %173 {approx = true} : vector<8x1xf32> -> vector<8x1xf32>
    %175 = vector.broadcast %174 : vector<8x1xf32> to vector<8x8xf32>
    %176 = arith.mulf %171, %175 : vector<8x8xf32>
    %177 = arith.truncf %176 : vector<8x8xf32> to vector<8x8xbf16>
    %cst_53 = arith.constant dense<0.000000e+00> : vector<8x16xf32>
    %178 = tpu.matmul %177, %148, %cst_53 {dimension_numbers = #tpu.dot_dimension_numbers<[1], [0], [0], [1], [0, 0, 1, 1], [], []>} : vector<8x8xbf16>, vector<8x16xbf16>, vector<8x16xf32> -> vector<8x16xf32>
    %179 = vector.extract_strided_slice %31 {offsets = [8, 16], sizes = [8, 16], strides = [1, 1]} : vector<16x128xf32> to vector<8x16xf32>
    %cst_54 = arith.constant dense<0.000000e+00> : vector<8x16xf32>
    %180 = tpu.matmul %179, %5, %cst_54 {dimension_numbers = #tpu.dot_dimension_numbers<[1], [0], [0], [1], [0, 0, 1, 1], [], []>} : vector<8x16xf32>, vector<16x16xf32>, vector<8x16xf32> -> vector<8x16xf32>
    %181 = arith.mulf %179, %139 : vector<8x16xf32>
    %182 = arith.mulf %180, %140 : vector<8x16xf32>
    %183 = arith.addf %181, %182 : vector<8x16xf32>
    %184 = arith.truncf %183 : vector<8x16xf32> to vector<8x16xbf16>
    %cst_55 = arith.constant dense<0.000000e+00> : vector<8x8xf32>
    %185 = tpu.matmul %184, %146, %cst_55 {dimension_numbers = #tpu.dot_dimension_numbers<[1], [1], [0], [0], [0, 0, 1, 0], [], []>} : vector<8x16xbf16>, vector<8x16xbf16>, vector<8x8xf32> -> vector<8x8xf32>
    %cst_56 = arith.constant 2.500000e-01 : f32
    %186 = vector.broadcast %cst_56 : f32 to vector<8x8xf32>
    %187 = arith.mulf %185, %186 : vector<8x8xf32>
    %188 = arith.addf %187, %11 : vector<8x8xf32>
    %cst_57 = arith.constant dense<0xFF800000> : vector<8xf32>
    %189 = vector.multi_reduction <maximumf>, %188, %cst_57 [1] : vector<8x8xf32> to vector<8xf32>
    %190 = vector.shape_cast %189 : vector<8xf32> to vector<8x1xf32>
    %191 = vector.broadcast %190 : vector<8x1xf32> to vector<8x8xf32>
    %192 = arith.subf %188, %191 : vector<8x8xf32>
    %193 = math.exp %192 : vector<8x8xf32>
    %cst_58 = arith.constant dense<0.000000e+00> : vector<8xf32>
    %194 = vector.multi_reduction <add>, %193, %cst_58 [1] : vector<8x8xf32> to vector<8xf32>
    %195 = vector.shape_cast %194 : vector<8xf32> to vector<8x1xf32>
    %196 = tpu.reciprocal %195 {approx = true} : vector<8x1xf32> -> vector<8x1xf32>
    %197 = vector.broadcast %196 : vector<8x1xf32> to vector<8x8xf32>
    %198 = arith.mulf %193, %197 : vector<8x8xf32>
    %199 = arith.truncf %198 : vector<8x8xf32> to vector<8x8xbf16>
    %cst_59 = arith.constant dense<0.000000e+00> : vector<8x16xf32>
    %200 = tpu.matmul %199, %148, %cst_59 {dimension_numbers = #tpu.dot_dimension_numbers<[1], [0], [0], [1], [0, 0, 1, 1], [], []>} : vector<8x8xbf16>, vector<8x16xbf16>, vector<8x16xf32> -> vector<8x16xf32>
    %201 = vector.extract_strided_slice %31 {offsets = [8, 32], sizes = [8, 16], strides = [1, 1]} : vector<16x128xf32> to vector<8x16xf32>
    %cst_60 = arith.constant dense<0.000000e+00> : vector<8x16xf32>
    %202 = tpu.matmul %201, %5, %cst_60 {dimension_numbers = #tpu.dot_dimension_numbers<[1], [0], [0], [1], [0, 0, 1, 1], [], []>} : vector<8x16xf32>, vector<16x16xf32>, vector<8x16xf32> -> vector<8x16xf32>
    %203 = arith.mulf %201, %139 : vector<8x16xf32>
    %204 = arith.mulf %202, %140 : vector<8x16xf32>
    %205 = arith.addf %203, %204 : vector<8x16xf32>
    %206 = arith.truncf %205 : vector<8x16xf32> to vector<8x16xbf16>
    %cst_61 = arith.constant dense<0.000000e+00> : vector<8x8xf32>
    %207 = tpu.matmul %206, %154, %cst_61 {dimension_numbers = #tpu.dot_dimension_numbers<[1], [1], [0], [0], [0, 0, 1, 0], [], []>} : vector<8x16xbf16>, vector<8x16xbf16>, vector<8x8xf32> -> vector<8x8xf32>
    %cst_62 = arith.constant 2.500000e-01 : f32
    %208 = vector.broadcast %cst_62 : f32 to vector<8x8xf32>
    %209 = arith.mulf %207, %208 : vector<8x8xf32>
    %210 = arith.addf %209, %11 : vector<8x8xf32>
    %cst_63 = arith.constant dense<0xFF800000> : vector<8xf32>
    %211 = vector.multi_reduction <maximumf>, %210, %cst_63 [1] : vector<8x8xf32> to vector<8xf32>
    %212 = vector.shape_cast %211 : vector<8xf32> to vector<8x1xf32>
    %213 = vector.broadcast %212 : vector<8x1xf32> to vector<8x8xf32>
    %214 = arith.subf %210, %213 : vector<8x8xf32>
    %215 = math.exp %214 : vector<8x8xf32>
    %cst_64 = arith.constant dense<0.000000e+00> : vector<8xf32>
    %216 = vector.multi_reduction <add>, %215, %cst_64 [1] : vector<8x8xf32> to vector<8xf32>
    %217 = vector.shape_cast %216 : vector<8xf32> to vector<8x1xf32>
    %218 = tpu.reciprocal %217 {approx = true} : vector<8x1xf32> -> vector<8x1xf32>
    %219 = vector.broadcast %218 : vector<8x1xf32> to vector<8x8xf32>
    %220 = arith.mulf %215, %219 : vector<8x8xf32>
    %221 = arith.truncf %220 : vector<8x8xf32> to vector<8x8xbf16>
    %cst_65 = arith.constant dense<0.000000e+00> : vector<8x16xf32>
    %222 = tpu.matmul %221, %156, %cst_65 {dimension_numbers = #tpu.dot_dimension_numbers<[1], [0], [0], [1], [0, 0, 1, 1], [], []>} : vector<8x8xbf16>, vector<8x16xbf16>, vector<8x16xf32> -> vector<8x16xf32>
    %223 = vector.extract_strided_slice %31 {offsets = [8, 48], sizes = [8, 16], strides = [1, 1]} : vector<16x128xf32> to vector<8x16xf32>
    %cst_66 = arith.constant dense<0.000000e+00> : vector<8x16xf32>
    %224 = tpu.matmul %223, %5, %cst_66 {dimension_numbers = #tpu.dot_dimension_numbers<[1], [0], [0], [1], [0, 0, 1, 1], [], []>} : vector<8x16xf32>, vector<16x16xf32>, vector<8x16xf32> -> vector<8x16xf32>
    %225 = arith.mulf %223, %139 : vector<8x16xf32>
    %226 = arith.mulf %224, %140 : vector<8x16xf32>
    %227 = arith.addf %225, %226 : vector<8x16xf32>
    %228 = arith.truncf %227 : vector<8x16xf32> to vector<8x16xbf16>
    %cst_67 = arith.constant dense<0.000000e+00> : vector<8x8xf32>
    %229 = tpu.matmul %228, %154, %cst_67 {dimension_numbers = #tpu.dot_dimension_numbers<[1], [1], [0], [0], [0, 0, 1, 0], [], []>} : vector<8x16xbf16>, vector<8x16xbf16>, vector<8x8xf32> -> vector<8x8xf32>
    %cst_68 = arith.constant 2.500000e-01 : f32
    %230 = vector.broadcast %cst_68 : f32 to vector<8x8xf32>
    %231 = arith.mulf %229, %230 : vector<8x8xf32>
    %232 = arith.addf %231, %11 : vector<8x8xf32>
    %cst_69 = arith.constant dense<0xFF800000> : vector<8xf32>
    %233 = vector.multi_reduction <maximumf>, %232, %cst_69 [1] : vector<8x8xf32> to vector<8xf32>
    %234 = vector.shape_cast %233 : vector<8xf32> to vector<8x1xf32>
    %235 = vector.broadcast %234 : vector<8x1xf32> to vector<8x8xf32>
    %236 = arith.subf %232, %235 : vector<8x8xf32>
    %237 = math.exp %236 : vector<8x8xf32>
    %cst_70 = arith.constant dense<0.000000e+00> : vector<8xf32>
    %238 = vector.multi_reduction <add>, %237, %cst_70 [1] : vector<8x8xf32> to vector<8xf32>
    %239 = vector.shape_cast %238 : vector<8xf32> to vector<8x1xf32>
    %240 = tpu.reciprocal %239 {approx = true} : vector<8x1xf32> -> vector<8x1xf32>
    %241 = vector.broadcast %240 : vector<8x1xf32> to vector<8x8xf32>
    %242 = arith.mulf %237, %241 : vector<8x8xf32>
    %243 = arith.truncf %242 : vector<8x8xf32> to vector<8x8xbf16>
    %cst_71 = arith.constant dense<0.000000e+00> : vector<8x16xf32>
    %244 = tpu.matmul %243, %156, %cst_71 {dimension_numbers = #tpu.dot_dimension_numbers<[1], [0], [0], [1], [0, 0, 1, 1], [], []>} : vector<8x8xbf16>, vector<8x16xbf16>, vector<8x16xf32> -> vector<8x16xf32>
    %245 = tpu.concatenate %178, %200, %222, %244 in 1 : vector<8x16xf32>, vector<8x16xf32>, vector<8x16xf32>, vector<8x16xf32> -> vector<8x64xf32>
    %246 = tpu.concatenate %138, %245 in 0 : vector<8x64xf32>, vector<8x64xf32> -> vector<16x64xf32>
    %247 = arith.truncf %246 : vector<16x64xf32> to vector<16x64xbf16>
    %c0_72 = arith.constant 0 : index
    %c0_73 = arith.constant 0 : index
    %c0_74 = arith.constant 0 : index
    %248 = vector.load %arg7[%c0_72, %c0_73, %c0_74] : memref<2x32x64xbf16, #tpu.memory_space<vmem>>, vector<1x32x64xbf16>
    %249 = vector.shape_cast %248 : vector<1x32x64xbf16> to vector<32x64xbf16>
    %cst_75 = arith.constant dense<0.000000e+00> : vector<16x32xf32>
    %250 = tpu.matmul %247, %249, %cst_75 {dimension_numbers = #tpu.dot_dimension_numbers<[1], [1], [0], [0], [0, 0, 1, 0], [], []>} : vector<16x64xbf16>, vector<32x64xbf16>, vector<16x32xf32> -> vector<16x32xf32>
    %251 = arith.addf %2, %250 : vector<16x32xf32>
    %c0_76 = arith.constant 0 : index
    %c0_77 = arith.constant 0 : index
    %c0_78 = arith.constant 0 : index
    %252 = vector.load %arg5[%c0_76, %c0_77, %c0_78] : memref<2x1x32xf32, #tpu.memory_space<vmem>>, vector<1x1x32xf32>
    %253 = vector.shape_cast %252 : vector<1x1x32xf32> to vector<1x32xf32>
    %254 = arith.mulf %251, %251 : vector<16x32xf32>
    %cst_79 = arith.constant dense<0.000000e+00> : vector<16xf32>
    %255 = vector.multi_reduction <add>, %254, %cst_79 [1] : vector<16x32xf32> to vector<16xf32>
    %256 = vector.shape_cast %255 : vector<16xf32> to vector<16x1xf32>
    %cst_80 = arith.constant 3.200000e+01 : f32
    %257 = vector.broadcast %cst_80 : f32 to vector<16x1xf32>
    %258 = arith.divf %256, %257 : vector<16x1xf32>
    %cst_81 = arith.constant 9.99999997E-7 : f32
    %259 = vector.broadcast %cst_81 : f32 to vector<16x1xf32>
    %260 = arith.addf %258, %259 : vector<16x1xf32>
    %261 = math.rsqrt %260 : vector<16x1xf32>
    %262 = vector.broadcast %261 : vector<16x1xf32> to vector<16x32xf32>
    %263 = arith.mulf %251, %262 : vector<16x32xf32>
    %cst_82 = arith.constant 1.000000e+00 : f32
    %264 = vector.broadcast %cst_82 : f32 to vector<1x32xf32>
    %265 = arith.addf %264, %253 : vector<1x32xf32>
    %266 = vector.broadcast %265 : vector<1x32xf32> to vector<16x32xf32>
    %267 = arith.mulf %263, %266 : vector<16x32xf32>
    %268 = arith.truncf %267 : vector<16x32xf32> to vector<16x32xbf16>
    %c0_83 = arith.constant 0 : index
    %c0_84 = arith.constant 0 : index
    %c0_85 = arith.constant 0 : index
    %269 = vector.load %arg8[%c0_83, %c0_84, %c0_85] : memref<2x64x32xbf16, #tpu.memory_space<vmem>>, vector<1x64x32xbf16>
    %270 = vector.shape_cast %269 : vector<1x64x32xbf16> to vector<64x32xbf16>
    %cst_86 = arith.constant dense<0.000000e+00> : vector<16x64xf32>
    %271 = tpu.matmul %268, %270, %cst_86 {dimension_numbers = #tpu.dot_dimension_numbers<[1], [1], [0], [0], [0, 0, 1, 0], [], []>} : vector<16x32xbf16>, vector<64x32xbf16>, vector<16x64xf32> -> vector<16x64xf32>
    %c0_87 = arith.constant 0 : index
    %c0_88 = arith.constant 0 : index
    %c0_89 = arith.constant 0 : index
    %272 = vector.load %arg9[%c0_87, %c0_88, %c0_89] : memref<2x64x32xbf16, #tpu.memory_space<vmem>>, vector<1x64x32xbf16>
    %273 = vector.shape_cast %272 : vector<1x64x32xbf16> to vector<64x32xbf16>
    %cst_90 = arith.constant dense<0.000000e+00> : vector<16x64xf32>
    %274 = tpu.matmul %268, %273, %cst_90 {dimension_numbers = #tpu.dot_dimension_numbers<[1], [1], [0], [0], [0, 0, 1, 0], [], []>} : vector<16x32xbf16>, vector<64x32xbf16>, vector<16x64xf32> -> vector<16x64xf32>
    %275 = arith.mulf %271, %271 : vector<16x64xf32>
    %276 = arith.mulf %271, %275 : vector<16x64xf32>
    %cst_91 = arith.constant 4.471500e-02 : f32
    %277 = vector.broadcast %cst_91 : f32 to vector<16x64xf32>
    %278 = arith.mulf %277, %276 : vector<16x64xf32>
    %279 = arith.addf %271, %278 : vector<16x64xf32>
    %cst_92 = arith.constant 0.797884583 : f32
    %280 = vector.broadcast %cst_92 : f32 to vector<16x64xf32>
    %281 = arith.mulf %280, %279 : vector<16x64xf32>
    %282 = math.tanh %281 : vector<16x64xf32>
    %cst_93 = arith.constant 1.000000e+00 : f32
    %283 = vector.broadcast %cst_93 : f32 to vector<16x64xf32>
    %284 = arith.addf %283, %282 : vector<16x64xf32>
    %cst_94 = arith.constant 5.000000e-01 : f32
    %285 = vector.broadcast %cst_94 : f32 to vector<16x64xf32>
    %286 = arith.mulf %285, %284 : vector<16x64xf32>
    %287 = arith.mulf %271, %286 : vector<16x64xf32>
    %288 = arith.mulf %287, %274 : vector<16x64xf32>
    %289 = arith.truncf %288 : vector<16x64xf32> to vector<16x64xbf16>
    %c0_95 = arith.constant 0 : index
    %c0_96 = arith.constant 0 : index
    %c0_97 = arith.constant 0 : index
    %290 = vector.load %arg10[%c0_95, %c0_96, %c0_97] : memref<2x32x64xbf16, #tpu.memory_space<vmem>>, vector<1x32x64xbf16>
    %291 = vector.shape_cast %290 : vector<1x32x64xbf16> to vector<32x64xbf16>
    %cst_98 = arith.constant dense<0.000000e+00> : vector<16x32xf32>
    %292 = tpu.matmul %289, %291, %cst_98 {dimension_numbers = #tpu.dot_dimension_numbers<[1], [1], [0], [0], [0, 0, 1, 0], [], []>} : vector<16x64xbf16>, vector<32x64xbf16>, vector<16x32xf32> -> vector<16x32xf32>
    %293 = arith.addf %251, %292 : vector<16x32xf32>
    %c1 = arith.constant 1 : index
    %c0_99 = arith.constant 0 : index
    %c0_100 = arith.constant 0 : index
    %294 = vector.load %arg4[%c1, %c0_99, %c0_100] : memref<2x1x32xf32, #tpu.memory_space<vmem>>, vector<1x1x32xf32>
    %295 = vector.shape_cast %294 : vector<1x1x32xf32> to vector<1x32xf32>
    %296 = arith.mulf %293, %293 : vector<16x32xf32>
    %cst_101 = arith.constant dense<0.000000e+00> : vector<16xf32>
    %297 = vector.multi_reduction <add>, %296, %cst_101 [1] : vector<16x32xf32> to vector<16xf32>
    %298 = vector.shape_cast %297 : vector<16xf32> to vector<16x1xf32>
    %cst_102 = arith.constant 3.200000e+01 : f32
    %299 = vector.broadcast %cst_102 : f32 to vector<16x1xf32>
    %300 = arith.divf %298, %299 : vector<16x1xf32>
    %cst_103 = arith.constant 9.99999997E-7 : f32
    %301 = vector.broadcast %cst_103 : f32 to vector<16x1xf32>
    %302 = arith.addf %300, %301 : vector<16x1xf32>
    %303 = math.rsqrt %302 : vector<16x1xf32>
    %304 = vector.broadcast %303 : vector<16x1xf32> to vector<16x32xf32>
    %305 = arith.mulf %293, %304 : vector<16x32xf32>
    %cst_104 = arith.constant 1.000000e+00 : f32
    %306 = vector.broadcast %cst_104 : f32 to vector<1x32xf32>
    %307 = arith.addf %306, %295 : vector<1x32xf32>
    %308 = vector.broadcast %307 : vector<1x32xf32> to vector<16x32xf32>
    %309 = arith.mulf %305, %308 : vector<16x32xf32>
    %310 = arith.truncf %309 : vector<16x32xf32> to vector<16x32xbf16>
    %c1_105 = arith.constant 1 : index
    %c0_106 = arith.constant 0 : index
    %c0_107 = arith.constant 0 : index
    %311 = vector.load %arg6[%c1_105, %c0_106, %c0_107] : memref<2x128x32xbf16, #tpu.memory_space<vmem>>, vector<1x128x32xbf16>
    %312 = vector.shape_cast %311 : vector<1x128x32xbf16> to vector<128x32xbf16>
    %cst_108 = arith.constant dense<0.000000e+00> : vector<16x128xf32>
    %313 = tpu.matmul %310, %312, %cst_108 {dimension_numbers = #tpu.dot_dimension_numbers<[1], [1], [0], [0], [0, 0, 1, 0], [], []>} : vector<16x32xbf16>, vector<128x32xbf16>, vector<16x128xf32> -> vector<16x128xf32>
    %314 = vector.extract_strided_slice %3 {offsets = [0, 0], sizes = [8, 16], strides = [1, 1]} : vector<16x16xf32> to vector<8x16xf32>
    %315 = vector.extract_strided_slice %4 {offsets = [0, 0], sizes = [8, 16], strides = [1, 1]} : vector<16x16xf32> to vector<8x16xf32>
    %316 = vector.extract_strided_slice %313 {offsets = [0, 64], sizes = [8, 16], strides = [1, 1]} : vector<16x128xf32> to vector<8x16xf32>
    %cst_109 = arith.constant dense<0.000000e+00> : vector<8x16xf32>
    %317 = tpu.matmul %316, %5, %cst_109 {dimension_numbers = #tpu.dot_dimension_numbers<[1], [0], [0], [1], [0, 0, 1, 1], [], []>} : vector<8x16xf32>, vector<16x16xf32>, vector<8x16xf32> -> vector<8x16xf32>
    %318 = arith.mulf %316, %314 : vector<8x16xf32>
    %319 = arith.mulf %317, %315 : vector<8x16xf32>
    %320 = arith.addf %318, %319 : vector<8x16xf32>
    %321 = arith.truncf %320 : vector<8x16xf32> to vector<8x16xbf16>
    %322 = vector.extract_strided_slice %313 {offsets = [0, 96], sizes = [8, 16], strides = [1, 1]} : vector<16x128xf32> to vector<8x16xf32>
    %323 = arith.truncf %322 : vector<8x16xf32> to vector<8x16xbf16>
    %324 = vector.extract_strided_slice %313 {offsets = [0, 80], sizes = [8, 16], strides = [1, 1]} : vector<16x128xf32> to vector<8x16xf32>
    %cst_110 = arith.constant dense<0.000000e+00> : vector<8x16xf32>
    %325 = tpu.matmul %324, %5, %cst_110 {dimension_numbers = #tpu.dot_dimension_numbers<[1], [0], [0], [1], [0, 0, 1, 1], [], []>} : vector<8x16xf32>, vector<16x16xf32>, vector<8x16xf32> -> vector<8x16xf32>
    %326 = arith.mulf %324, %314 : vector<8x16xf32>
    %327 = arith.mulf %325, %315 : vector<8x16xf32>
    %328 = arith.addf %326, %327 : vector<8x16xf32>
    %329 = arith.truncf %328 : vector<8x16xf32> to vector<8x16xbf16>
    %330 = vector.extract_strided_slice %313 {offsets = [0, 112], sizes = [8, 16], strides = [1, 1]} : vector<16x128xf32> to vector<8x16xf32>
    %331 = arith.truncf %330 : vector<8x16xf32> to vector<8x16xbf16>
    %332 = vector.extract_strided_slice %313 {offsets = [0, 0], sizes = [8, 16], strides = [1, 1]} : vector<16x128xf32> to vector<8x16xf32>
    %cst_111 = arith.constant dense<0.000000e+00> : vector<8x16xf32>
    %333 = tpu.matmul %332, %5, %cst_111 {dimension_numbers = #tpu.dot_dimension_numbers<[1], [0], [0], [1], [0, 0, 1, 1], [], []>} : vector<8x16xf32>, vector<16x16xf32>, vector<8x16xf32> -> vector<8x16xf32>
    %334 = arith.mulf %332, %314 : vector<8x16xf32>
    %335 = arith.mulf %333, %315 : vector<8x16xf32>
    %336 = arith.addf %334, %335 : vector<8x16xf32>
    %337 = arith.truncf %336 : vector<8x16xf32> to vector<8x16xbf16>
    %cst_112 = arith.constant dense<0.000000e+00> : vector<8x8xf32>
    %338 = tpu.matmul %337, %321, %cst_112 {dimension_numbers = #tpu.dot_dimension_numbers<[1], [1], [0], [0], [0, 0, 1, 0], [], []>} : vector<8x16xbf16>, vector<8x16xbf16>, vector<8x8xf32> -> vector<8x8xf32>
    %cst_113 = arith.constant 2.500000e-01 : f32
    %339 = vector.broadcast %cst_113 : f32 to vector<8x8xf32>
    %340 = arith.mulf %338, %339 : vector<8x8xf32>
    %341 = arith.addf %340, %11 : vector<8x8xf32>
    %cst_114 = arith.constant dense<0xFF800000> : vector<8xf32>
    %342 = vector.multi_reduction <maximumf>, %341, %cst_114 [1] : vector<8x8xf32> to vector<8xf32>
    %343 = vector.shape_cast %342 : vector<8xf32> to vector<8x1xf32>
    %344 = vector.broadcast %343 : vector<8x1xf32> to vector<8x8xf32>
    %345 = arith.subf %341, %344 : vector<8x8xf32>
    %346 = math.exp %345 : vector<8x8xf32>
    %cst_115 = arith.constant dense<0.000000e+00> : vector<8xf32>
    %347 = vector.multi_reduction <add>, %346, %cst_115 [1] : vector<8x8xf32> to vector<8xf32>
    %348 = vector.shape_cast %347 : vector<8xf32> to vector<8x1xf32>
    %349 = tpu.reciprocal %348 {approx = true} : vector<8x1xf32> -> vector<8x1xf32>
    %350 = vector.broadcast %349 : vector<8x1xf32> to vector<8x8xf32>
    %351 = arith.mulf %346, %350 : vector<8x8xf32>
    %352 = arith.truncf %351 : vector<8x8xf32> to vector<8x8xbf16>
    %cst_116 = arith.constant dense<0.000000e+00> : vector<8x16xf32>
    %353 = tpu.matmul %352, %323, %cst_116 {dimension_numbers = #tpu.dot_dimension_numbers<[1], [0], [0], [1], [0, 0, 1, 1], [], []>} : vector<8x8xbf16>, vector<8x16xbf16>, vector<8x16xf32> -> vector<8x16xf32>
    %354 = vector.extract_strided_slice %313 {offsets = [0, 16], sizes = [8, 16], strides = [1, 1]} : vector<16x128xf32> to vector<8x16xf32>
    %cst_117 = arith.constant dense<0.000000e+00> : vector<8x16xf32>
    %355 = tpu.matmul %354, %5, %cst_117 {dimension_numbers = #tpu.dot_dimension_numbers<[1], [0], [0], [1], [0, 0, 1, 1], [], []>} : vector<8x16xf32>, vector<16x16xf32>, vector<8x16xf32> -> vector<8x16xf32>
    %356 = arith.mulf %354, %314 : vector<8x16xf32>
    %357 = arith.mulf %355, %315 : vector<8x16xf32>
    %358 = arith.addf %356, %357 : vector<8x16xf32>
    %359 = arith.truncf %358 : vector<8x16xf32> to vector<8x16xbf16>
    %cst_118 = arith.constant dense<0.000000e+00> : vector<8x8xf32>
    %360 = tpu.matmul %359, %321, %cst_118 {dimension_numbers = #tpu.dot_dimension_numbers<[1], [1], [0], [0], [0, 0, 1, 0], [], []>} : vector<8x16xbf16>, vector<8x16xbf16>, vector<8x8xf32> -> vector<8x8xf32>
    %cst_119 = arith.constant 2.500000e-01 : f32
    %361 = vector.broadcast %cst_119 : f32 to vector<8x8xf32>
    %362 = arith.mulf %360, %361 : vector<8x8xf32>
    %363 = arith.addf %362, %11 : vector<8x8xf32>
    %cst_120 = arith.constant dense<0xFF800000> : vector<8xf32>
    %364 = vector.multi_reduction <maximumf>, %363, %cst_120 [1] : vector<8x8xf32> to vector<8xf32>
    %365 = vector.shape_cast %364 : vector<8xf32> to vector<8x1xf32>
    %366 = vector.broadcast %365 : vector<8x1xf32> to vector<8x8xf32>
    %367 = arith.subf %363, %366 : vector<8x8xf32>
    %368 = math.exp %367 : vector<8x8xf32>
    %cst_121 = arith.constant dense<0.000000e+00> : vector<8xf32>
    %369 = vector.multi_reduction <add>, %368, %cst_121 [1] : vector<8x8xf32> to vector<8xf32>
    %370 = vector.shape_cast %369 : vector<8xf32> to vector<8x1xf32>
    %371 = tpu.reciprocal %370 {approx = true} : vector<8x1xf32> -> vector<8x1xf32>
    %372 = vector.broadcast %371 : vector<8x1xf32> to vector<8x8xf32>
    %373 = arith.mulf %368, %372 : vector<8x8xf32>
    %374 = arith.truncf %373 : vector<8x8xf32> to vector<8x8xbf16>
    %cst_122 = arith.constant dense<0.000000e+00> : vector<8x16xf32>
    %375 = tpu.matmul %374, %323, %cst_122 {dimension_numbers = #tpu.dot_dimension_numbers<[1], [0], [0], [1], [0, 0, 1, 1], [], []>} : vector<8x8xbf16>, vector<8x16xbf16>, vector<8x16xf32> -> vector<8x16xf32>
    %376 = vector.extract_strided_slice %313 {offsets = [0, 32], sizes = [8, 16], strides = [1, 1]} : vector<16x128xf32> to vector<8x16xf32>
    %cst_123 = arith.constant dense<0.000000e+00> : vector<8x16xf32>
    %377 = tpu.matmul %376, %5, %cst_123 {dimension_numbers = #tpu.dot_dimension_numbers<[1], [0], [0], [1], [0, 0, 1, 1], [], []>} : vector<8x16xf32>, vector<16x16xf32>, vector<8x16xf32> -> vector<8x16xf32>
    %378 = arith.mulf %376, %314 : vector<8x16xf32>
    %379 = arith.mulf %377, %315 : vector<8x16xf32>
    %380 = arith.addf %378, %379 : vector<8x16xf32>
    %381 = arith.truncf %380 : vector<8x16xf32> to vector<8x16xbf16>
    %cst_124 = arith.constant dense<0.000000e+00> : vector<8x8xf32>
    %382 = tpu.matmul %381, %329, %cst_124 {dimension_numbers = #tpu.dot_dimension_numbers<[1], [1], [0], [0], [0, 0, 1, 0], [], []>} : vector<8x16xbf16>, vector<8x16xbf16>, vector<8x8xf32> -> vector<8x8xf32>
    %cst_125 = arith.constant 2.500000e-01 : f32
    %383 = vector.broadcast %cst_125 : f32 to vector<8x8xf32>
    %384 = arith.mulf %382, %383 : vector<8x8xf32>
    %385 = arith.addf %384, %11 : vector<8x8xf32>
    %cst_126 = arith.constant dense<0xFF800000> : vector<8xf32>
    %386 = vector.multi_reduction <maximumf>, %385, %cst_126 [1] : vector<8x8xf32> to vector<8xf32>
    %387 = vector.shape_cast %386 : vector<8xf32> to vector<8x1xf32>
    %388 = vector.broadcast %387 : vector<8x1xf32> to vector<8x8xf32>
    %389 = arith.subf %385, %388 : vector<8x8xf32>
    %390 = math.exp %389 : vector<8x8xf32>
    %cst_127 = arith.constant dense<0.000000e+00> : vector<8xf32>
    %391 = vector.multi_reduction <add>, %390, %cst_127 [1] : vector<8x8xf32> to vector<8xf32>
    %392 = vector.shape_cast %391 : vector<8xf32> to vector<8x1xf32>
    %393 = tpu.reciprocal %392 {approx = true} : vector<8x1xf32> -> vector<8x1xf32>
    %394 = vector.broadcast %393 : vector<8x1xf32> to vector<8x8xf32>
    %395 = arith.mulf %390, %394 : vector<8x8xf32>
    %396 = arith.truncf %395 : vector<8x8xf32> to vector<8x8xbf16>
    %cst_128 = arith.constant dense<0.000000e+00> : vector<8x16xf32>
    %397 = tpu.matmul %396, %331, %cst_128 {dimension_numbers = #tpu.dot_dimension_numbers<[1], [0], [0], [1], [0, 0, 1, 1], [], []>} : vector<8x8xbf16>, vector<8x16xbf16>, vector<8x16xf32> -> vector<8x16xf32>
    %398 = vector.extract_strided_slice %313 {offsets = [0, 48], sizes = [8, 16], strides = [1, 1]} : vector<16x128xf32> to vector<8x16xf32>
    %cst_129 = arith.constant dense<0.000000e+00> : vector<8x16xf32>
    %399 = tpu.matmul %398, %5, %cst_129 {dimension_numbers = #tpu.dot_dimension_numbers<[1], [0], [0], [1], [0, 0, 1, 1], [], []>} : vector<8x16xf32>, vector<16x16xf32>, vector<8x16xf32> -> vector<8x16xf32>
    %400 = arith.mulf %398, %314 : vector<8x16xf32>
    %401 = arith.mulf %399, %315 : vector<8x16xf32>
    %402 = arith.addf %400, %401 : vector<8x16xf32>
    %403 = arith.truncf %402 : vector<8x16xf32> to vector<8x16xbf16>
    %cst_130 = arith.constant dense<0.000000e+00> : vector<8x8xf32>
    %404 = tpu.matmul %403, %329, %cst_130 {dimension_numbers = #tpu.dot_dimension_numbers<[1], [1], [0], [0], [0, 0, 1, 0], [], []>} : vector<8x16xbf16>, vector<8x16xbf16>, vector<8x8xf32> -> vector<8x8xf32>
    %cst_131 = arith.constant 2.500000e-01 : f32
    %405 = vector.broadcast %cst_131 : f32 to vector<8x8xf32>
    %406 = arith.mulf %404, %405 : vector<8x8xf32>
    %407 = arith.addf %406, %11 : vector<8x8xf32>
    %cst_132 = arith.constant dense<0xFF800000> : vector<8xf32>
    %408 = vector.multi_reduction <maximumf>, %407, %cst_132 [1] : vector<8x8xf32> to vector<8xf32>
    %409 = vector.shape_cast %408 : vector<8xf32> to vector<8x1xf32>
    %410 = vector.broadcast %409 : vector<8x1xf32> to vector<8x8xf32>
    %411 = arith.subf %407, %410 : vector<8x8xf32>
    %412 = math.exp %411 : vector<8x8xf32>
    %cst_133 = arith.constant dense<0.000000e+00> : vector<8xf32>
    %413 = vector.multi_reduction <add>, %412, %cst_133 [1] : vector<8x8xf32> to vector<8xf32>
    %414 = vector.shape_cast %413 : vector<8xf32> to vector<8x1xf32>
    %415 = tpu.reciprocal %414 {approx = true} : vector<8x1xf32> -> vector<8x1xf32>
    %416 = vector.broadcast %415 : vector<8x1xf32> to vector<8x8xf32>
    %417 = arith.mulf %412, %416 : vector<8x8xf32>
    %418 = arith.truncf %417 : vector<8x8xf32> to vector<8x8xbf16>
    %cst_134 = arith.constant dense<0.000000e+00> : vector<8x16xf32>
    %419 = tpu.matmul %418, %331, %cst_134 {dimension_numbers = #tpu.dot_dimension_numbers<[1], [0], [0], [1], [0, 0, 1, 1], [], []>} : vector<8x8xbf16>, vector<8x16xbf16>, vector<8x16xf32> -> vector<8x16xf32>
    %420 = tpu.concatenate %353, %375, %397, %419 in 1 : vector<8x16xf32>, vector<8x16xf32>, vector<8x16xf32>, vector<8x16xf32> -> vector<8x64xf32>
    %421 = vector.extract_strided_slice %3 {offsets = [8, 0], sizes = [8, 16], strides = [1, 1]} : vector<16x16xf32> to vector<8x16xf32>
    %422 = vector.extract_strided_slice %4 {offsets = [8, 0], sizes = [8, 16], strides = [1, 1]} : vector<16x16xf32> to vector<8x16xf32>
    %423 = vector.extract_strided_slice %313 {offsets = [8, 64], sizes = [8, 16], strides = [1, 1]} : vector<16x128xf32> to vector<8x16xf32>
    %cst_135 = arith.constant dense<0.000000e+00> : vector<8x16xf32>
    %424 = tpu.matmul %423, %5, %cst_135 {dimension_numbers = #tpu.dot_dimension_numbers<[1], [0], [0], [1], [0, 0, 1, 1], [], []>} : vector<8x16xf32>, vector<16x16xf32>, vector<8x16xf32> -> vector<8x16xf32>
    %425 = arith.mulf %423, %421 : vector<8x16xf32>
    %426 = arith.mulf %424, %422 : vector<8x16xf32>
    %427 = arith.addf %425, %426 : vector<8x16xf32>
    %428 = arith.truncf %427 : vector<8x16xf32> to vector<8x16xbf16>
    %429 = vector.extract_strided_slice %313 {offsets = [8, 96], sizes = [8, 16], strides = [1, 1]} : vector<16x128xf32> to vector<8x16xf32>
    %430 = arith.truncf %429 : vector<8x16xf32> to vector<8x16xbf16>
    %431 = vector.extract_strided_slice %313 {offsets = [8, 80], sizes = [8, 16], strides = [1, 1]} : vector<16x128xf32> to vector<8x16xf32>
    %cst_136 = arith.constant dense<0.000000e+00> : vector<8x16xf32>
    %432 = tpu.matmul %431, %5, %cst_136 {dimension_numbers = #tpu.dot_dimension_numbers<[1], [0], [0], [1], [0, 0, 1, 1], [], []>} : vector<8x16xf32>, vector<16x16xf32>, vector<8x16xf32> -> vector<8x16xf32>
    %433 = arith.mulf %431, %421 : vector<8x16xf32>
    %434 = arith.mulf %432, %422 : vector<8x16xf32>
    %435 = arith.addf %433, %434 : vector<8x16xf32>
    %436 = arith.truncf %435 : vector<8x16xf32> to vector<8x16xbf16>
    %437 = vector.extract_strided_slice %313 {offsets = [8, 112], sizes = [8, 16], strides = [1, 1]} : vector<16x128xf32> to vector<8x16xf32>
    %438 = arith.truncf %437 : vector<8x16xf32> to vector<8x16xbf16>
    %439 = vector.extract_strided_slice %313 {offsets = [8, 0], sizes = [8, 16], strides = [1, 1]} : vector<16x128xf32> to vector<8x16xf32>
    %cst_137 = arith.constant dense<0.000000e+00> : vector<8x16xf32>
    %440 = tpu.matmul %439, %5, %cst_137 {dimension_numbers = #tpu.dot_dimension_numbers<[1], [0], [0], [1], [0, 0, 1, 1], [], []>} : vector<8x16xf32>, vector<16x16xf32>, vector<8x16xf32> -> vector<8x16xf32>
    %441 = arith.mulf %439, %421 : vector<8x16xf32>
    %442 = arith.mulf %440, %422 : vector<8x16xf32>
    %443 = arith.addf %441, %442 : vector<8x16xf32>
    %444 = arith.truncf %443 : vector<8x16xf32> to vector<8x16xbf16>
    %cst_138 = arith.constant dense<0.000000e+00> : vector<8x8xf32>
    %445 = tpu.matmul %444, %428, %cst_138 {dimension_numbers = #tpu.dot_dimension_numbers<[1], [1], [0], [0], [0, 0, 1, 0], [], []>} : vector<8x16xbf16>, vector<8x16xbf16>, vector<8x8xf32> -> vector<8x8xf32>
    %cst_139 = arith.constant 2.500000e-01 : f32
    %446 = vector.broadcast %cst_139 : f32 to vector<8x8xf32>
    %447 = arith.mulf %445, %446 : vector<8x8xf32>
    %448 = arith.addf %447, %11 : vector<8x8xf32>
    %cst_140 = arith.constant dense<0xFF800000> : vector<8xf32>
    %449 = vector.multi_reduction <maximumf>, %448, %cst_140 [1] : vector<8x8xf32> to vector<8xf32>
    %450 = vector.shape_cast %449 : vector<8xf32> to vector<8x1xf32>
    %451 = vector.broadcast %450 : vector<8x1xf32> to vector<8x8xf32>
    %452 = arith.subf %448, %451 : vector<8x8xf32>
    %453 = math.exp %452 : vector<8x8xf32>
    %cst_141 = arith.constant dense<0.000000e+00> : vector<8xf32>
    %454 = vector.multi_reduction <add>, %453, %cst_141 [1] : vector<8x8xf32> to vector<8xf32>
    %455 = vector.shape_cast %454 : vector<8xf32> to vector<8x1xf32>
    %456 = tpu.reciprocal %455 {approx = true} : vector<8x1xf32> -> vector<8x1xf32>
    %457 = vector.broadcast %456 : vector<8x1xf32> to vector<8x8xf32>
    %458 = arith.mulf %453, %457 : vector<8x8xf32>
    %459 = arith.truncf %458 : vector<8x8xf32> to vector<8x8xbf16>
    %cst_142 = arith.constant dense<0.000000e+00> : vector<8x16xf32>
    %460 = tpu.matmul %459, %430, %cst_142 {dimension_numbers = #tpu.dot_dimension_numbers<[1], [0], [0], [1], [0, 0, 1, 1], [], []>} : vector<8x8xbf16>, vector<8x16xbf16>, vector<8x16xf32> -> vector<8x16xf32>
    %461 = vector.extract_strided_slice %313 {offsets = [8, 16], sizes = [8, 16], strides = [1, 1]} : vector<16x128xf32> to vector<8x16xf32>
    %cst_143 = arith.constant dense<0.000000e+00> : vector<8x16xf32>
    %462 = tpu.matmul %461, %5, %cst_143 {dimension_numbers = #tpu.dot_dimension_numbers<[1], [0], [0], [1], [0, 0, 1, 1], [], []>} : vector<8x16xf32>, vector<16x16xf32>, vector<8x16xf32> -> vector<8x16xf32>
    %463 = arith.mulf %461, %421 : vector<8x16xf32>
    %464 = arith.mulf %462, %422 : vector<8x16xf32>
    %465 = arith.addf %463, %464 : vector<8x16xf32>
    %466 = arith.truncf %465 : vector<8x16xf32> to vector<8x16xbf16>
    %cst_144 = arith.constant dense<0.000000e+00> : vector<8x8xf32>
    %467 = tpu.matmul %466, %428, %cst_144 {dimension_numbers = #tpu.dot_dimension_numbers<[1], [1], [0], [0], [0, 0, 1, 0], [], []>} : vector<8x16xbf16>, vector<8x16xbf16>, vector<8x8xf32> -> vector<8x8xf32>
    %cst_145 = arith.constant 2.500000e-01 : f32
    %468 = vector.broadcast %cst_145 : f32 to vector<8x8xf32>
    %469 = arith.mulf %467, %468 : vector<8x8xf32>
    %470 = arith.addf %469, %11 : vector<8x8xf32>
    %cst_146 = arith.constant dense<0xFF800000> : vector<8xf32>
    %471 = vector.multi_reduction <maximumf>, %470, %cst_146 [1] : vector<8x8xf32> to vector<8xf32>
    %472 = vector.shape_cast %471 : vector<8xf32> to vector<8x1xf32>
    %473 = vector.broadcast %472 : vector<8x1xf32> to vector<8x8xf32>
    %474 = arith.subf %470, %473 : vector<8x8xf32>
    %475 = math.exp %474 : vector<8x8xf32>
    %cst_147 = arith.constant dense<0.000000e+00> : vector<8xf32>
    %476 = vector.multi_reduction <add>, %475, %cst_147 [1] : vector<8x8xf32> to vector<8xf32>
    %477 = vector.shape_cast %476 : vector<8xf32> to vector<8x1xf32>
    %478 = tpu.reciprocal %477 {approx = true} : vector<8x1xf32> -> vector<8x1xf32>
    %479 = vector.broadcast %478 : vector<8x1xf32> to vector<8x8xf32>
    %480 = arith.mulf %475, %479 : vector<8x8xf32>
    %481 = arith.truncf %480 : vector<8x8xf32> to vector<8x8xbf16>
    %cst_148 = arith.constant dense<0.000000e+00> : vector<8x16xf32>
    %482 = tpu.matmul %481, %430, %cst_148 {dimension_numbers = #tpu.dot_dimension_numbers<[1], [0], [0], [1], [0, 0, 1, 1], [], []>} : vector<8x8xbf16>, vector<8x16xbf16>, vector<8x16xf32> -> vector<8x16xf32>
    %483 = vector.extract_strided_slice %313 {offsets = [8, 32], sizes = [8, 16], strides = [1, 1]} : vector<16x128xf32> to vector<8x16xf32>
    %cst_149 = arith.constant dense<0.000000e+00> : vector<8x16xf32>
    %484 = tpu.matmul %483, %5, %cst_149 {dimension_numbers = #tpu.dot_dimension_numbers<[1], [0], [0], [1], [0, 0, 1, 1], [], []>} : vector<8x16xf32>, vector<16x16xf32>, vector<8x16xf32> -> vector<8x16xf32>
    %485 = arith.mulf %483, %421 : vector<8x16xf32>
    %486 = arith.mulf %484, %422 : vector<8x16xf32>
    %487 = arith.addf %485, %486 : vector<8x16xf32>
    %488 = arith.truncf %487 : vector<8x16xf32> to vector<8x16xbf16>
    %cst_150 = arith.constant dense<0.000000e+00> : vector<8x8xf32>
    %489 = tpu.matmul %488, %436, %cst_150 {dimension_numbers = #tpu.dot_dimension_numbers<[1], [1], [0], [0], [0, 0, 1, 0], [], []>} : vector<8x16xbf16>, vector<8x16xbf16>, vector<8x8xf32> -> vector<8x8xf32>
    %cst_151 = arith.constant 2.500000e-01 : f32
    %490 = vector.broadcast %cst_151 : f32 to vector<8x8xf32>
    %491 = arith.mulf %489, %490 : vector<8x8xf32>
    %492 = arith.addf %491, %11 : vector<8x8xf32>
    %cst_152 = arith.constant dense<0xFF800000> : vector<8xf32>
    %493 = vector.multi_reduction <maximumf>, %492, %cst_152 [1] : vector<8x8xf32> to vector<8xf32>
    %494 = vector.shape_cast %493 : vector<8xf32> to vector<8x1xf32>
    %495 = vector.broadcast %494 : vector<8x1xf32> to vector<8x8xf32>
    %496 = arith.subf %492, %495 : vector<8x8xf32>
    %497 = math.exp %496 : vector<8x8xf32>
    %cst_153 = arith.constant dense<0.000000e+00> : vector<8xf32>
    %498 = vector.multi_reduction <add>, %497, %cst_153 [1] : vector<8x8xf32> to vector<8xf32>
    %499 = vector.shape_cast %498 : vector<8xf32> to vector<8x1xf32>
    %500 = tpu.reciprocal %499 {approx = true} : vector<8x1xf32> -> vector<8x1xf32>
    %501 = vector.broadcast %500 : vector<8x1xf32> to vector<8x8xf32>
    %502 = arith.mulf %497, %501 : vector<8x8xf32>
    %503 = arith.truncf %502 : vector<8x8xf32> to vector<8x8xbf16>
    %cst_154 = arith.constant dense<0.000000e+00> : vector<8x16xf32>
    %504 = tpu.matmul %503, %438, %cst_154 {dimension_numbers = #tpu.dot_dimension_numbers<[1], [0], [0], [1], [0, 0, 1, 1], [], []>} : vector<8x8xbf16>, vector<8x16xbf16>, vector<8x16xf32> -> vector<8x16xf32>
    %505 = vector.extract_strided_slice %313 {offsets = [8, 48], sizes = [8, 16], strides = [1, 1]} : vector<16x128xf32> to vector<8x16xf32>
    %cst_155 = arith.constant dense<0.000000e+00> : vector<8x16xf32>
    %506 = tpu.matmul %505, %5, %cst_155 {dimension_numbers = #tpu.dot_dimension_numbers<[1], [0], [0], [1], [0, 0, 1, 1], [], []>} : vector<8x16xf32>, vector<16x16xf32>, vector<8x16xf32> -> vector<8x16xf32>
    %507 = arith.mulf %505, %421 : vector<8x16xf32>
    %508 = arith.mulf %506, %422 : vector<8x16xf32>
    %509 = arith.addf %507, %508 : vector<8x16xf32>
    %510 = arith.truncf %509 : vector<8x16xf32> to vector<8x16xbf16>
    %cst_156 = arith.constant dense<0.000000e+00> : vector<8x8xf32>
    %511 = tpu.matmul %510, %436, %cst_156 {dimension_numbers = #tpu.dot_dimension_numbers<[1], [1], [0], [0], [0, 0, 1, 0], [], []>} : vector<8x16xbf16>, vector<8x16xbf16>, vector<8x8xf32> -> vector<8x8xf32>
    %cst_157 = arith.constant 2.500000e-01 : f32
    %512 = vector.broadcast %cst_157 : f32 to vector<8x8xf32>
    %513 = arith.mulf %511, %512 : vector<8x8xf32>
    %514 = arith.addf %513, %11 : vector<8x8xf32>
    %cst_158 = arith.constant dense<0xFF800000> : vector<8xf32>
    %515 = vector.multi_reduction <maximumf>, %514, %cst_158 [1] : vector<8x8xf32> to vector<8xf32>
    %516 = vector.shape_cast %515 : vector<8xf32> to vector<8x1xf32>
    %517 = vector.broadcast %516 : vector<8x1xf32> to vector<8x8xf32>
    %518 = arith.subf %514, %517 : vector<8x8xf32>
    %519 = math.exp %518 : vector<8x8xf32>
    %cst_159 = arith.constant dense<0.000000e+00> : vector<8xf32>
    %520 = vector.multi_reduction <add>, %519, %cst_159 [1] : vector<8x8xf32> to vector<8xf32>
    %521 = vector.shape_cast %520 : vector<8xf32> to vector<8x1xf32>
    %522 = tpu.reciprocal %521 {approx = true} : vector<8x1xf32> -> vector<8x1xf32>
    %523 = vector.broadcast %522 : vector<8x1xf32> to vector<8x8xf32>
    %524 = arith.mulf %519, %523 : vector<8x8xf32>
    %525 = arith.truncf %524 : vector<8x8xf32> to vector<8x8xbf16>
    %cst_160 = arith.constant dense<0.000000e+00> : vector<8x16xf32>
    %526 = tpu.matmul %525, %438, %cst_160 {dimension_numbers = #tpu.dot_dimension_numbers<[1], [0], [0], [1], [0, 0, 1, 1], [], []>} : vector<8x8xbf16>, vector<8x16xbf16>, vector<8x16xf32> -> vector<8x16xf32>
    %527 = tpu.concatenate %460, %482, %504, %526 in 1 : vector<8x16xf32>, vector<8x16xf32>, vector<8x16xf32>, vector<8x16xf32> -> vector<8x64xf32>
    %528 = tpu.concatenate %420, %527 in 0 : vector<8x64xf32>, vector<8x64xf32> -> vector<16x64xf32>
    %529 = arith.truncf %528 : vector<16x64xf32> to vector<16x64xbf16>
    %c1_161 = arith.constant 1 : index
    %c0_162 = arith.constant 0 : index
    %c0_163 = arith.constant 0 : index
    %530 = vector.load %arg7[%c1_161, %c0_162, %c0_163] : memref<2x32x64xbf16, #tpu.memory_space<vmem>>, vector<1x32x64xbf16>
    %531 = vector.shape_cast %530 : vector<1x32x64xbf16> to vector<32x64xbf16>
    %cst_164 = arith.constant dense<0.000000e+00> : vector<16x32xf32>
    %532 = tpu.matmul %529, %531, %cst_164 {dimension_numbers = #tpu.dot_dimension_numbers<[1], [1], [0], [0], [0, 0, 1, 0], [], []>} : vector<16x64xbf16>, vector<32x64xbf16>, vector<16x32xf32> -> vector<16x32xf32>
    %533 = arith.addf %293, %532 : vector<16x32xf32>
    %c1_165 = arith.constant 1 : index
    %c0_166 = arith.constant 0 : index
    %c0_167 = arith.constant 0 : index
    %534 = vector.load %arg5[%c1_165, %c0_166, %c0_167] : memref<2x1x32xf32, #tpu.memory_space<vmem>>, vector<1x1x32xf32>
    %535 = vector.shape_cast %534 : vector<1x1x32xf32> to vector<1x32xf32>
    %536 = arith.mulf %533, %533 : vector<16x32xf32>
    %cst_168 = arith.constant dense<0.000000e+00> : vector<16xf32>
    %537 = vector.multi_reduction <add>, %536, %cst_168 [1] : vector<16x32xf32> to vector<16xf32>
    %538 = vector.shape_cast %537 : vector<16xf32> to vector<16x1xf32>
    %cst_169 = arith.constant 3.200000e+01 : f32
    %539 = vector.broadcast %cst_169 : f32 to vector<16x1xf32>
    %540 = arith.divf %538, %539 : vector<16x1xf32>
    %cst_170 = arith.constant 9.99999997E-7 : f32
    %541 = vector.broadcast %cst_170 : f32 to vector<16x1xf32>
    %542 = arith.addf %540, %541 : vector<16x1xf32>
    %543 = math.rsqrt %542 : vector<16x1xf32>
    %544 = vector.broadcast %543 : vector<16x1xf32> to vector<16x32xf32>
    %545 = arith.mulf %533, %544 : vector<16x32xf32>
    %cst_171 = arith.constant 1.000000e+00 : f32
    %546 = vector.broadcast %cst_171 : f32 to vector<1x32xf32>
    %547 = arith.addf %546, %535 : vector<1x32xf32>
    %548 = vector.broadcast %547 : vector<1x32xf32> to vector<16x32xf32>
    %549 = arith.mulf %545, %548 : vector<16x32xf32>
    %550 = arith.truncf %549 : vector<16x32xf32> to vector<16x32xbf16>
    %c1_172 = arith.constant 1 : index
    %c0_173 = arith.constant 0 : index
    %c0_174 = arith.constant 0 : index
    %551 = vector.load %arg8[%c1_172, %c0_173, %c0_174] : memref<2x64x32xbf16, #tpu.memory_space<vmem>>, vector<1x64x32xbf16>
    %552 = vector.shape_cast %551 : vector<1x64x32xbf16> to vector<64x32xbf16>
    %cst_175 = arith.constant dense<0.000000e+00> : vector<16x64xf32>
    %553 = tpu.matmul %550, %552, %cst_175 {dimension_numbers = #tpu.dot_dimension_numbers<[1], [1], [0], [0], [0, 0, 1, 0], [], []>} : vector<16x32xbf16>, vector<64x32xbf16>, vector<16x64xf32> -> vector<16x64xf32>
    %c1_176 = arith.constant 1 : index
    %c0_177 = arith.constant 0 : index
    %c0_178 = arith.constant 0 : index
    %554 = vector.load %arg9[%c1_176, %c0_177, %c0_178] : memref<2x64x32xbf16, #tpu.memory_space<vmem>>, vector<1x64x32xbf16>
    %555 = vector.shape_cast %554 : vector<1x64x32xbf16> to vector<64x32xbf16>
    %cst_179 = arith.constant dense<0.000000e+00> : vector<16x64xf32>
    %556 = tpu.matmul %550, %555, %cst_179 {dimension_numbers = #tpu.dot_dimension_numbers<[1], [1], [0], [0], [0, 0, 1, 0], [], []>} : vector<16x32xbf16>, vector<64x32xbf16>, vector<16x64xf32> -> vector<16x64xf32>
    %557 = arith.mulf %553, %553 : vector<16x64xf32>
    %558 = arith.mulf %553, %557 : vector<16x64xf32>
    %cst_180 = arith.constant 4.471500e-02 : f32
    %559 = vector.broadcast %cst_180 : f32 to vector<16x64xf32>
    %560 = arith.mulf %559, %558 : vector<16x64xf32>
    %561 = arith.addf %553, %560 : vector<16x64xf32>
    %cst_181 = arith.constant 0.797884583 : f32
    %562 = vector.broadcast %cst_181 : f32 to vector<16x64xf32>
    %563 = arith.mulf %562, %561 : vector<16x64xf32>
    %564 = math.tanh %563 : vector<16x64xf32>
    %cst_182 = arith.constant 1.000000e+00 : f32
    %565 = vector.broadcast %cst_182 : f32 to vector<16x64xf32>
    %566 = arith.addf %565, %564 : vector<16x64xf32>
    %cst_183 = arith.constant 5.000000e-01 : f32
    %567 = vector.broadcast %cst_183 : f32 to vector<16x64xf32>
    %568 = arith.mulf %567, %566 : vector<16x64xf32>
    %569 = arith.mulf %553, %568 : vector<16x64xf32>
    %570 = arith.mulf %569, %556 : vector<16x64xf32>
    %571 = arith.truncf %570 : vector<16x64xf32> to vector<16x64xbf16>
    %c1_184 = arith.constant 1 : index
    %c0_185 = arith.constant 0 : index
    %c0_186 = arith.constant 0 : index
    %572 = vector.load %arg10[%c1_184, %c0_185, %c0_186] : memref<2x32x64xbf16, #tpu.memory_space<vmem>>, vector<1x32x64xbf16>
    %573 = vector.shape_cast %572 : vector<1x32x64xbf16> to vector<32x64xbf16>
    %cst_187 = arith.constant dense<0.000000e+00> : vector<16x32xf32>
    %574 = tpu.matmul %571, %573, %cst_187 {dimension_numbers = #tpu.dot_dimension_numbers<[1], [1], [0], [0], [0, 0, 1, 0], [], []>} : vector<16x64xbf16>, vector<32x64xbf16>, vector<16x32xf32> -> vector<16x32xf32>
    %575 = arith.addf %533, %574 : vector<16x32xf32>
    %c0_188 = arith.constant 0 : index
    %c0_189 = arith.constant 0 : index
    %576 = vector.load %arg11[%c0_188, %c0_189] : memref<1x32xf32, #tpu.memory_space<vmem>>, vector<1x32xf32>
    %577 = arith.mulf %575, %575 : vector<16x32xf32>
    %cst_190 = arith.constant dense<0.000000e+00> : vector<16xf32>
    %578 = vector.multi_reduction <add>, %577, %cst_190 [1] : vector<16x32xf32> to vector<16xf32>
    %579 = vector.shape_cast %578 : vector<16xf32> to vector<16x1xf32>
    %cst_191 = arith.constant 3.200000e+01 : f32
    %580 = vector.broadcast %cst_191 : f32 to vector<16x1xf32>
    %581 = arith.divf %579, %580 : vector<16x1xf32>
    %cst_192 = arith.constant 9.99999997E-7 : f32
    %582 = vector.broadcast %cst_192 : f32 to vector<16x1xf32>
    %583 = arith.addf %581, %582 : vector<16x1xf32>
    %584 = math.rsqrt %583 : vector<16x1xf32>
    %585 = vector.broadcast %584 : vector<16x1xf32> to vector<16x32xf32>
    %586 = arith.mulf %575, %585 : vector<16x32xf32>
    %cst_193 = arith.constant 1.000000e+00 : f32
    %587 = vector.broadcast %cst_193 : f32 to vector<1x32xf32>
    %588 = arith.addf %587, %576 : vector<1x32xf32>
    %589 = vector.broadcast %588 : vector<1x32xf32> to vector<16x32xf32>
    %590 = arith.mulf %586, %589 : vector<16x32xf32>
    %591 = arith.truncf %590 : vector<16x32xf32> to vector<16x32xbf16>
    %c0_194 = arith.constant 0 : index
    %c0_195 = arith.constant 0 : index
    %592 = vector.load %arg12[%c0_194, %c0_195] : memref<128x32xbf16, #tpu.memory_space<vmem>>, vector<128x32xbf16>
    %cst_196 = arith.constant dense<0.000000e+00> : vector<16x128xf32>
    %593 = tpu.matmul %591, %592, %cst_196 {dimension_numbers = #tpu.dot_dimension_numbers<[1], [1], [0], [0], [0, 0, 1, 0], [], []>} : vector<16x32xbf16>, vector<128x32xbf16>, vector<16x128xf32> -> vector<16x128xf32>
    %c0_197 = arith.constant 0 : index
    %c0_198 = arith.constant 0 : index
    %594 = vector.load %arg13[%c0_197, %c0_198] : memref<16x128xf32, #tpu.memory_space<vmem>>, vector<16x128xf32>
    tpu.vector_store %arg13[%c0_197, %c0_198], %593 {strides = array<i32>} : memref<16x128xf32, #tpu.memory_space<vmem>>, vector<16x128xf32>,
    return
  }
}

</mosaic_0001>

<bundles_post_ra>
// kernel: gemma_forward_pallas.1
= control target key start
LH: loop header
LB: loop body
LE: loop exit
PB: predicated region body
PF: predicated region fallthrough
CT: control target
= control target key end

     0   :  { %v6147_v4 = vmov 0.0   ;;  %vm65_vm0 = vcmask 261120   ;;  %v56_v17 = vlaneseq  ;;  %vm6148_vm1 = vmmov 0   ;;  %s7268_s0 = inlined_call_operand.vmem [shape: f32[16,32], index: 0, kind: input, shape index: {}]   ;;  %s7269_s1 = inlined_call_operand.vmem [shape: f32[16,16], index: 1, kind: input, shape index: {}]   ;;  %s7270_s2 = inlined_call_operand.vmem [shape: f32[16,16], index: 2, kind: input, shape index: {}]   ;;  %s7271_s3 = inlined_call_operand.vmem [shape: f32[16,16], index: 3, kind: input, shape index: {}]   ;;  %s7272_s4 = inlined_call_operand.vmem [shape: f32[2,1,32], index: 4, kind: input, shape index: {}]   ;;  %s7273_s5 = inlined_call_operand.vmem [shape: f32[2,1,32], index: 5, kind: input, shape index: {}]   ;;  %s7274_s6 = inlined_call_operand.vmem [shape: bf16[2,128,32], index: 6, kind: input, shape index: {}]   ;;  %s7275_s7 = inlined_call_operand.vmem [shape: bf16[2,32,64], index: 7, kind: input, shape index: {}]   ;;  %s7276_s8 = inlined_call_operand.vmem [shape: bf16[2,64,32], index: 8, kind: input, shape index: {}]   ;;  %s7277_s9 = inlined_call_operand.vmem [shape: bf16[2,64,32], index: 9, kind: input, shape index: {}]   ;;  %s7278_s10 = inlined_call_operand.vmem [shape: bf16[2,32,64], index: 10, kind: input, shape index: {}]   ;;  %s7279_s11 = inlined_call_operand.vmem [shape: f32[1,32], index: 11, kind: input, shape index: {}]   ;;  %s7280_s12 = inlined_call_operand.vmem [shape: bf16[128,32], index: 12, kind: input, shape index: {}]   ;;  %s7281_s13 = inlined_call_operand.hbm [shape: f32[16,128], index: 13, kind: output, shape index: {}]  }
   0x1   :  { %v46_v0 = vld [vmem:[%s7268_s0] sm:$0xff]  ;;  %v47_v1 = vld [vmem:[%s7268_s0 + $0x8] sm:$0xff]  ;;  %5363 = vmatprep.subr.bf16.mxu0 %v6147_v4  ;;  %v5981_v10 = vld [vmem:[%s7274_s6 + $0x10] sm:$0xff]   ;;  %5379 = vmatprep.mubr.msk.bf16.mxu0 %vm6148_vm1, %v6147_v4 }
   0x2   :  { %v6237_v2 = vmul.f32 5.656854, %v46_v0  ;;  %v6239_v3 = vmul.f32 5.656854, %v47_v1  ;;  %v5979_v5 = vld [vmem:[%s7274_s6] sm:$0xff]   ;;  %v5980_v8 = vld [vmem:[%s7274_s6 + $0x8] sm:$0xff]   ;;  %5387 = vmatprep.mubr.msk.f32.mxu1 %vm6148_vm1, %v6147_v4 }
   0x3   :  { %v151_v9 = vsel %vm65_vm0, %v5979_v5, 0  ;;  %v154_v13 = vsel %vm65_vm0, %v5980_v8, 0  ;;  %v157_v14 = vsel %vm65_vm0, %v5981_v10, 0  ;;  %v5982_v15 = vld [vmem:[%s7274_s6 + $0x18] sm:$0xff]   ;;  %v5983_v18 = vld [vmem:[%s7274_s6 + $0x20] sm:$0xff]   ;;  %v6273_v19 = vshrl.u32 %v56_v17, 7 }
   0x4   :  { %v63_v6 = vmul.f32 %v6237_v2, %v6237_v2  ;;  %v64_v7 = vmul.f32 %v6239_v3, %v6239_v3  ;;  %5364 = vmatpush3.bf16.xpose.msra.mxu0 %v151_v9  ;;  %v160_v16 = vsel %vm65_vm0, %v5982_v15, 0  ;;  %v6275_v20 = vand.u32 127, %v56_v17  ;;  %v5984_v22 = vld [vmem:[%s7274_s6 + $0x28] sm:$0xff]  }
   0x5   :  { %5365 = vmatprep.subr.bf16.mxu0 %v6147_v4  ;;  %v163_v21 = vsel %vm65_vm0, %v5983_v18, 0 }
   0x6   :  { %v66_v11 = vsel %vm65_vm0, %v63_v6, 0.0  ;;  %v69_v12 = vsel %vm65_vm0, %v64_v7, 0.0  ;;  %vm60_vm2 = vcmp.le.s32.totalorder %v6275_v20, %v6273_v19 }
   0x7   :  { %67 = vadd.xlane.f32.xlu0 %v66_v11 }
   0xb   :  { %70 = vadd.xlane.f32.xlu0 %v69_v12 }
   0xc   :  { %5366 = vmatpush3.bf16.xpose.msra.mxu0 %v154_v13 }
   0xd   :  { %5367 = vmatprep.subr.bf16.mxu0 %v6147_v4 }
  0x14   :  { %5368 = vmatpush3.bf16.xpose.msra.mxu0 %v157_v14 }
  0x15   :  { %5369 = vmatprep.subr.bf16.mxu0 %v6147_v4 }
  0x1c   :  { %5370 = vmatpush3.bf16.xpose.msra.mxu0 %v160_v16 }
  0x1d   :  { %5371 = vmatprep.subr.bf16.mxu0 %v6147_v4 }
  0x24   :  { %5372 = vmatpush3.bf16.xpose.msra.mxu0 %v163_v21 }
  0x25   :  { %5373 = vmatprep.subr.bf16.mxu0 %v6147_v4 }
  0x26   :  { %18 = vsyncpa [#allocation3], 0  ;;  %v166_v23 = vsel %vm65_vm0, %v5984_v22, 0  ;;  %v6290_v24 = vld [vmem:[%s7269_s1] sm:$0xff]  ;;  %v5985_v25 = vld [vmem:[%s7274_s6 + $0x30] sm:$0xff]   ;;  %s6149_s27 = smov 64  }
  0x27   :  { %292 = vrot.lane.b32.xlu0 %v6290_v24, %s6149_s27  ;;  %v169_v26 = vsel %vm65_vm0, %v5985_v25, 0  ;;  %v5986_v27 = vld [vmem:[%s7274_s6 + $0x38] sm:$0xff]   ;;  %v62_v35 = vld [vmem:[%s7272_s4] sm:$0x1]  ;;  %v6309_v37 = vsub.s32 0, %v6273_v19  ;;  %v55_v47 = vld [vmem:[%s7271_s3 + $0x8] sm:$0xff] }
  0x28   :  { %v172_v28 = vsel %vm65_vm0, %v5986_v27, 0  ;;  %v81_v36 = vadd.f32 1.0, %v62_v35  ;;  %v54_v46 = vld [vmem:[%s7271_s3] sm:$0xff]  ;;  %v6150_v48 = vmov 0.0|0.0   ;;  %s6151_s18 = smov 48   ;;  %vm218_vm3 = vcmask 130048  }
  0x29   :  { %5863 = vmatprep.subr.bf16.mxu1 %v6150_v48  ;;  %v6324_v49 = vpack.c.bf16 %v55_v47, %v54_v46  ;;  %v6353_v56 = vld [vmem:[%s7270_s2] sm:$0xff]  ;;  %v6152_v14 = vmov -1e+09   ;;  %vm516_vm4 = vcmask 64512   ;;  %s6153_s20 = smov 32   ;;  %s6154_s21 = smov 16  }
  0x2a   :  { %v86_v40 = vrot.slane %v81_v36, %v6309_v37  ;;  %v6375_v15 = vsel %vm60_vm2, 0.0, %v6152_v14  ;;  %vm535_vm5 = vcmask 1043456   ;;  %s6155_s22 = smov 112   ;;  %s6156_s23 = smov 80   ;;  %vm2136_vm6 = vcmask 523264  }
  0x2b   :  { %5865 = vmatpush3.bf16.msra.mxu1 %v6324_v49  ;;  %s6157_s24 = smov 96   ;;  %vm1168_vm7 = vcmask 392192  }
  0x2c   :  { %5374 = vmatpush3.bf16.xpose.msra.mxu0 %v166_v23  ;;  %5866 = vmatprep.subr.bf16.mxu1 %v6150_v48 }
  0x2d   :  { %5375 = vmatprep.subr.bf16.mxu0 %v6147_v4 }
  0x34   :  { %5376 = vmatpush3.bf16.xpose.msra.mxu0 %v169_v26 }
  0x35   :  { %5377 = vmatprep.subr.bf16.mxu0 %v6147_v4 }
  0x3c   :  { %5378 = vmatpush3.bf16.xpose.msra.mxu0 %v172_v28 }
  0x3d   :  { %5448 = vmatprep.subr.bf16.mxu0 %v6147_v4 }
  0x94   :  { %v68_v29 = vpop.xlane.xlu0 %67 }
  0x95   :  { %v73_v30 = vmul.f32 0.03125, %v68_v29 }
  0x97   :  { %v75_v31 = vadd.f32 1e-06, %v73_v30 }
  0x98   :  { %v71_v32 = vpop.xlane.xlu0 %70 }
  0x99   :  { %6027 = vrsqrt.f32 %v75_v31  ;;  %v74_v33 = vmul.f32 0.03125, %v71_v32 }
  0x9b   :  { %v76_v34 = vadd.f32 1e-06, %v74_v33 }
  0x9c   :  { %v6362_v6 = vpop.permute.xlu0 %292 }
  0x9d   :  { %6029 = vrsqrt.f32 %v76_v34 }
  0xa3   :  { %v6028_v38 = vpop.eup %6027 }
  0xa4   :  { %v79_v39 = vmul.f32 %v6028_v38, %v6237_v2 }
  0xa6   :  { %v88_v43 = vmul.f32 %v86_v40, %v79_v39 }
  0xa7   :  { %v6030_v41 = vpop.eup %6029 }
  0xa8   :  { %v80_v42 = vmul.f32 %v6030_v41, %v6239_v3 }
  0xaa   :  { %v89_v44 = vmul.f32 %v86_v40, %v80_v42 }
  0xac   :  { %v90_v45 = vpack.c.bf16 %v89_v44, %v88_v43 }
  0xae   :  { %5380 = vmatmul.mubr.msk.bf16.vlgmr.msra.gmra.mrb[0].mxu0 %vm65_vm0, %v90_v45 }
  0xaf   :  { %5450 = vmatprep.mubr.msk.bf16.mxu0 %vm6148_vm1, %v6147_v4 }
 0x181   :  { %v6328_v50 = vpop.f32.mrb[0].mxu0 }
 0x182   :  { %216 = vrot.lane.b32.xlu1 %v6328_v50, %s6149_s27  ;;  %v5381_v51 = vpop.f32.mrb[1].mxu0  ;;  %v461_v63 = vmul.f32 %v6328_v50, %v6290_v24  ;;  %v295_v7 = vmul.f32 %v6362_v6, %v6328_v50  ;;  %v6381_v26 = vpack.c.bf16 %v6328_v50, %v6328_v50 }
 0x183   :  { %v6332_v52 = vpop.f32.mrb[2].mxu0 }
 0x184   :  { %v5382_v53 = vpop.f32.mrb[3].mxu0 }
 0x186   :  { %304 = vrot.lane.b32.xlu1 %v6328_v50, %s6151_s18 }
 0x1f4   :  { %v217_v54 = vpop.permute.xlu1 %216 }
 0x1f5   :  { %5388 = vmatmul.mubr.msk.f32.vlgmr.msra.gmra.mrb[0].mxu1 %vm218_vm3, %v217_v54 }
 0x1f6   :  { %5868 = vmatpush3.bf16.msra.mxu1 %v6324_v49  ;;  %5394 = vmatprep.mubr.msk.f32.mxu1 %vm6148_vm1, %v6147_v4 }
 0x1f7   :  { %5869 = vmatprep.subr.bf16.mxu1 %v6150_v48 }
 0x1f8   :  { %v305_v55 = vpop.permute.xlu1 %304 }
 0x1f9   :  { %5395 = vmatmul.mubr.msk.f32.vlgmr.msra.gmra.mrb[2].mxu1 %vm218_vm3, %v305_v55 }
 0x1fa   :  { %5871 = vmatpush3.bf16.msra.mxu1 %v6324_v49  ;;  %5401 = vmatprep.mubr.msk.f32.mxu1 %vm6148_vm1, %v6147_v4 }
 0x1fb   :  { %5404 = vmatprep.subr.bf16.mxu1 %v6147_v4 }
 0x1fd   :  { %5402 = vmatmul.mubr.msk.f32.vlgmr.msra.gmra.mrb[4].mxu1 %vm218_vm3, %v6328_v50 }
 0x1fe   :  { %5406 = vmatprep.mubr.msk.bf16.mxu1 %vm6148_vm1, %v6147_v4 }
 0x2c8   :  { %v287_v57 = vpop.f32.mrb[0].mxu1 }
 0x2c9   :  { %v296_v58 = vmul.f32 %v287_v57, %v6353_v56  ;;  %v5389_v59 = vpop.f32.mrb[1].mxu1 }
 0x2cb   :  { %298 = vrot.lane.b32.xlu1 %v296_v58, %s6149_s27 }
 0x2cc   :  { %v6357_v60 = vpop.f32.mrb[2].mxu1 }
 0x2cd   :  { %v5396_v61 = vpop.f32.mrb[3].mxu1 }
 0x2d0   :  { %v457_v62 = vpop.f32.mrb[4].mxu1 }
 0x2d1   :  { %v462_v0 = vmul.f32 %v457_v62, %v6353_v56  ;;  %v5403_v1 = vpop.f32.mrb[5].mxu1 }
 0x2d3   :  { %v463_v5 = vadd.f32 %v462_v0, %v461_v63  ;;  %v382_v0 = vmul.f32 %v6357_v60, %v6353_v56 }
 0x2d5   :  { %v464_v13 = vpack.c.bf16 %v463_v5, %v463_v5 }
 0x33d   :  { %v299_v8 = vpop.permute.xlu1 %298 }
 0x33e   :  { %v301_v9 = vadd.f32 %v299_v8, %v295_v7 }
 0x340   :  { %v302_v10 = vpack.c.bf16 %v301_v9, %v301_v9 }
 0x342   :  { %466 = vrot.lane.b32.xlu1 %v302_v10, %s6149_s27 }
 0x3b4   :  { %v467_v11 = vpop.permute.xlu1 %466 }
 0x3b5   :  { %v472_v12 = vsel %vm218_vm3, %v467_v11, 0 }
 0x3b6   :  { %5405 = vmatpush3.bf16.xpose.msra.mxu1 %v472_v12 }
 0x3b7   :  { %5410 = vmatprep.subr.bf16.mxu1 %v6147_v4 }
 0x3bd   :  { %5407 = vmatmul.mubr.msk.bf16.vlgmr.msra.gmra.mrb[8].mxu1 %vm218_vm3, %v464_v13 }
 0x3be   :  { %5412 = vmatprep.mubr.msk.bf16.mxu1 %vm6148_vm1, %v6147_v4 }
 0x490   :  { %v508_v16 = vpop.f32.mrb[8].mxu1 }
 0x491   :  { %v514_v17 = vmul.f32 0.25, %v508_v16  ;;  %v5408_v18 = vpop.f32.mrb[9].mxu1 }
 0x492   :  { %v511_v21 = vpop.f32.mrb[10].mxu1 }
 0x493   :  { %v5409_v22 = vpop.f32.mrb[11].mxu1  ;;  %v515_v23 = vadd.f32 %v514_v17, %v6375_v15 }
 0x495   :  { %v517_v25 = vsel %vm516_vm4, %v515_v23, -inf }
 0x496   :  { %518 = vmax.xlane.f32.xlu1 %v517_v25 }
 0x4a7   :  { %530 = vrot.lane.b32.xlu1 %v6381_v26, %s6153_s20 }
 0x4ab   :  { %653 = vrot.lane.b32.xlu1 %v6290_v24, %s6154_s21 }
 0x523   :  { %v519_v19 = vpop.xlane.xlu1 %518 }
 0x524   :  { %v520_v20 = vsub.f32 %v515_v23, %v519_v19 }
 0x526   :  { %v521_v27 = vmul.f32 1.442695, %v520_v20 }
 0x527   :  { %v531_v28 = vpop.permute.xlu1 %530 }
 0x528   :  { %6031 = vpow2.f32 %v521_v27  ;;  %v537_v29 = vsel %vm535_vm5, %v531_v28, 0 }
 0x529   :  { %5411 = vmatpush3.bf16.msra.mxu1 %v537_v29 }
 0x52a   :  { %5872 = vmatprep.subr.bf16.mxu1 %v6150_v48 }
 0x52b   :  { %v6405_v45 = vpop.permute.xlu1 %653 }
 0x52c   :  { %v656_v46 = vmul.f32 %v6405_v45, %v6328_v50 }
 0x532   :  { %v6032_v30 = vpop.eup %6031 }
 0x533   :  { %v523_v31 = vsel %vm516_vm4, %v6032_v30, 0.0 }
 0x534   :  { %524 = vadd.xlane.f32.xlu0 %v523_v31 }
 0x54a   :  { %579 = vrot.lane.b32.xlu0 %v6328_v50, %s6155_s22 }
 0x5c1   :  { %v525_v32 = vpop.xlane.xlu0 %524 }
 0x5c2   :  { %6033 = vrcp.f32 %v525_v32 }
 0x5c5   :  { %v580_v36 = vpop.permute.xlu0 %579 }
 0x5cc   :  { %v6034_v33 = vpop.eup %6033 }
 0x5cd   :  { %v527_v34 = vmul.f32 %v6034_v33, %v6032_v30 }
 0x5cf   :  { %v528_v35 = vpack.c.bf16 %v527_v34, %v527_v34 }
 0x5d1   :  { %5413 = vmatmul.mubr.msk.bf16.vlgmr.msra.gmra.mrb[12].mxu1 %vm516_vm4, %v528_v35 }
 0x5d2   :  { %5874 = vmatpush3.bf16.msra.mxu1 %v6324_v49  ;;  %5420 = vmatprep.mubr.msk.f32.mxu1 %vm6148_vm1, %v6147_v4 }
 0x5d3   :  { %5423 = vmatprep.subr.bf16.mxu1 %v6147_v4 }
 0x5d9   :  { %5421 = vmatmul.mubr.msk.f32.vlgmr.msra.gmra.mrb[6].mxu1 %vm218_vm3, %v580_v36 }
 0x5da   :  { %5425 = vmatprep.mubr.msk.bf16.mxu1 %vm6148_vm1, %v6147_v4 }
 0x5db   :  { %5424 = vmatpush3.bf16.xpose.msra.mxu1 %v472_v12 }
 0x5dc   :  { %5429 = vmatprep.subr.bf16.mxu1 %v6147_v4 }
 0x6a4   :  { %v6401_v38 = vpop.f32.mrb[12].mxu1 }
 0x6a5   :  { %v5414_v39 = vpop.f32.mrb[13].mxu1 }
 0x6a6   :  { %v576_v40 = vpop.f32.mrb[14].mxu1 }
 0x6a7   :  { %v5415_v41 = vpop.f32.mrb[15].mxu1 }
 0x6ac   :  { %v649_v42 = vpop.f32.mrb[6].mxu1 }
 0x6ad   :  { %v657_v43 = vmul.f32 %v649_v42, %v6353_v56  ;;  %v5422_v44 = vpop.f32.mrb[7].mxu1 }
 0x6af   :  { %659 = vrot.lane.b32.xlu1 %v657_v43, %s6154_s21 }
 0x721   :  { %v660_v47 = vpop.permute.xlu1 %659 }
 0x722   :  { %v662_v51 = vadd.f32 %v660_v47, %v656_v46 }
 0x724   :  { %v663_v53 = vpack.c.bf16 %v662_v51, %v662_v51 }
 0x726   :  { %665 = vrot.lane.b32.xlu1 %v663_v53, %s6155_s22 }
 0x798   :  { %v666_v54 = vpop.permute.xlu1 %665 }
 0x799   :  { %5426 = vmatmul.mubr.msk.bf16.vlgmr.msra.gmra.mrb[16].mxu1 %vm218_vm3, %v666_v54 }
 0x79a   :  { %5430 = vmatpush3.bf16.msra.mxu1 %v537_v29  ;;  %5431 = vmatprep.mubr.msk.bf16.mxu1 %vm6148_vm1, %v6147_v4 }
 0x79b   :  { %5875 = vmatprep.subr.bf16.mxu1 %v6150_v48 }
 0x86c   :  { %v704_v55 = vpop.f32.mrb[16].mxu1 }
 0x86d   :  { %v710_v57 = vmul.f32 0.25, %v704_v55  ;;  %v5427_v58 = vpop.f32.mrb[17].mxu1 }
 0x86e   :  { %v707_v59 = vpop.f32.mrb[18].mxu1 }
 0x86f   :  { %v5428_v61 = vpop.f32.mrb[19].mxu1  ;;  %v711_v62 = vadd.f32 %v710_v57, %v6375_v15 }
 0x871   :  { %v712_v63 = vsel %vm516_vm4, %v711_v62, -inf }
 0x872   :  { %713 = vmax.xlane.f32.xlu1 %v712_v63 }
 0x883   :  { %378 = vrot.lane.b32.xlu1 %v6290_v24, %s6156_s23 }
 0x887   :  { %384 = vrot.lane.b32.xlu1 %v382_v0, %s6156_s23 }
 0x8ff   :  { %v714_v1 = vpop.xlane.xlu1 %713 }
 0x900   :  { %v715_v5 = vsub.f32 %v711_v62, %v714_v1 }
 0x902   :  { %v716_v7 = vmul.f32 1.442695, %v715_v5  ;;  %v6485_v5 = vld [vmem:[%s7269_s1 + $0x8] sm:$0xff] }
 0x903   :  { %v6422_v10 = vpop.permute.xlu1 %378 }
 0x904   :  { %6035 = vpow2.f32 %v716_v7  ;;  %v381_v12 = vmul.f32 %v6422_v10, %v6328_v50 }
 0x907   :  { %v385_v11 = vpop.permute.xlu1 %384 }
 0x908   :  { %v387_v60 = vadd.f32 %v385_v11, %v381_v12 }
 0x90a   :  { %v388_v13 = vpack.c.bf16 %v387_v60, %v387_v60 }
 0x90e   :  { %v6036_v8 = vpop.eup %6035 }
 0x90f   :  { %v718_v9 = vsel %vm516_vm4, %v6036_v8, 0.0 }
 0x910   :  { %719 = vadd.xlane.f32.xlu0 %v718_v9 }
 0x926   :  { %767 = vrot.lane.b32.xlu0 %v6328_v50, %s6157_s24 }
 0x92a   :  { %841 = vrot.lane.b32.xlu0 %v6290_v24, %s6153_s20 }
 0x92e   :  { %856 = vrot.lane.b32.xlu0 %v388_v13, %s6151_s18 }
 0x932   :  { %966 = vrot.lane.b32.xlu0 %v6328_v50, %s6156_s23 }
 0x936   :  { %1040 = vrot.lane.b32.xlu0 %v6290_v24, %s6151_s18 }
 0x99d   :  { %v720_v14 = vpop.xlane.xlu0 %719 }
 0x99e   :  { %6037 = vrcp.f32 %v720_v14 }
 0x9a1   :  { %v768_v16 = vpop.permute.xlu0 %767 }
 0x9a5   :  { %v6435_v22 = vpop.permute.xlu0 %841 }
 0x9a6   :  { %v844_v31 = vmul.f32 %v6435_v22, %v6328_v50 }
 0x9a8   :  { %v6038_v17 = vpop.eup %6037 }
 0x9a9   :  { %v722_v18 = vmul.f32 %v6038_v17, %v6036_v8  ;;  %v857_v23 = vpop.permute.xlu0 %856 }
 0x9aa   :  { %v6444_v24 = vsel %vm218_vm3, %v857_v23, 0 }
 0x9ab   :  { %v723_v21 = vpack.c.bf16 %v722_v18, %v722_v18 }
 0x9ad   :  { %5432 = vmatmul.mubr.msk.bf16.vlgmr.msra.gmra.mrb[20].mxu1 %vm516_vm4, %v723_v21  ;;  %v967_v36 = vpop.permute.xlu0 %966 }
 0x9ae   :  { %5877 = vmatpush3.bf16.msra.mxu1 %v6324_v49  ;;  %5439 = vmatprep.mubr.msk.f32.mxu1 %vm6148_vm1, %v6147_v4 }
 0x9af   :  { %5442 = vmatprep.subr.bf16.mxu1 %v6147_v4 }
 0x9b5   :  { %5440 = vmatmul.mubr.msk.f32.vlgmr.msra.gmra.mrb[24].mxu1 %vm218_vm3, %v768_v16 }
 0x9b6   :  { %5444 = vmatprep.mubr.msk.bf16.mxu1 %vm6148_vm1, %v6147_v4 }
 0x9b7   :  { %5443 = vmatpush3.bf16.xpose.msra.mxu1 %v6444_v24 }
 0x9b8   :  { %5878 = vmatprep.subr.bf16.mxu1 %v6150_v48 }
 0xa80   :  { %v6450_v25 = vpop.f32.mrb[20].mxu1 }
 0xa81   :  { %v5433_v19 = vpop.f32.mrb[21].mxu1 }
 0xa82   :  { %v764_v20 = vpop.f32.mrb[22].mxu1 }
 0xa83   :  { %v5434_v27 = vpop.f32.mrb[23].mxu1 }
 0xa84   :  { %v6515_v27 = vld [vmem:[%s7270_s2 + $0x8] sm:$0xff] }
 0xa88   :  { %v837_v28 = vpop.f32.mrb[24].mxu1 }
 0xa89   :  { %v845_v29 = vmul.f32 %v837_v28, %v6353_v56  ;;  %v5441_v30 = vpop.f32.mrb[25].mxu1 }
 0xa8b   :  { %847 = vrot.lane.b32.xlu1 %v845_v29, %s6153_s20 }
 0xafd   :  { %v848_v32 = vpop.permute.xlu1 %847 }
 0xafe   :  { %v850_v33 = vadd.f32 %v848_v32, %v844_v31  ;;  %v1415_v32 = vmul.f32 %v6332_v52, %v6485_v5 }
 0xb00   :  { %v851_v34 = vpack.c.bf16 %v850_v33, %v850_v33 }
 0xb02   :  { %853 = vrot.lane.b32.xlu1 %v851_v34, %s6157_s24 }
 0xb74   :  { %v854_v35 = vpop.permute.xlu1 %853 }
 0xb75   :  { %5445 = vmatmul.mubr.msk.bf16.vlgmr.msra.gmra.mrb[28].mxu1 %vm218_vm3, %v854_v35 }
 0xb76   :  { %5880 = vmatpush3.bf16.msra.mxu1 %v6324_v49  ;;  %5458 = vmatprep.mubr.msk.f32.mxu1 %vm6148_vm1, %v6147_v4 }
 0xb77   :  { %5467 = vmatprep.subr.bf16.mxu1 %v6147_v4 }
 0xb7d   :  { %5459 = vmatmul.mubr.msk.f32.vlgmr.msra.gmra.mrb[26].mxu1 %vm218_vm3, %v967_v36 }
 0xb7e   :  { %5469 = vmatprep.mubr.msk.bf16.mxu1 %vm6148_vm1, %v6147_v4 }
 0xc48   :  { %v898_v39 = vpop.f32.mrb[28].mxu1 }
 0xc49   :  { %v904_v40 = vmul.f32 0.25, %v898_v39  ;;  %v5446_v41 = vpop.f32.mrb[29].mxu1 }
 0xc4a   :  { %v901_v42 = vpop.f32.mrb[30].mxu1 }
 0xc4b   :  { %v5447_v43 = vpop.f32.mrb[31].mxu1  ;;  %v905_v44 = vadd.f32 %v904_v40, %v6375_v15 }
 0xc4d   :  { %v906_v46 = vsel %vm516_vm4, %v905_v44, -inf }
 0xc4e   :  { %907 = vmax.xlane.f32.xlu1 %v906_v46 }
 0xc50   :  { %v1036_v47 = vpop.f32.mrb[26].mxu1 }
 0xc51   :  { %v1044_v51 = vmul.f32 %v1036_v47, %v6353_v56  ;;  %v5460_v53 = vpop.f32.mrb[27].mxu1 }
 0xc53   :  { %1046 = vrot.lane.b32.xlu0 %v1044_v51, %s6151_s18 }
 0xc5f   :  { %918 = vrot.lane.b32.xlu1 %v6381_v26, %s6154_s21  ;;  %v6477_v26 = vpop.permute.xlu0 %1040 }
 0xc60   :  { %v1043_v63 = vmul.f32 %v6477_v26, %v6328_v50 }
 0xc63   :  { %1171 = vrot.lane.b32.xlu1 %v6332_v52, %s6149_s27 }
 0xcc5   :  { %v1047_v62 = vpop.permute.xlu0 %1046 }
 0xcc6   :  { %v1049_v0 = vadd.f32 %v1047_v62, %v1043_v63 }
 0xcc8   :  { %v1050_v1 = vpack.c.bf16 %v1049_v0, %v1049_v0 }
 0xcdb   :  { %v908_v54 = vpop.xlane.xlu1 %907 }
 0xcdc   :  { %v909_v55 = vsub.f32 %v905_v44, %v908_v54 }
 0xcde   :  { %v910_v57 = vmul.f32 1.442695, %v909_v55 }
 0xcdf   :  { %v919_v58 = vpop.permute.xlu1 %918 }
 0xce0   :  { %6039 = vpow2.f32 %v910_v57  ;;  %v924_v59 = vsel %vm535_vm5, %v919_v58, 0 }
 0xce1   :  { %5449 = vmatpush3.bf16.msra.mxu0 %v924_v59  ;;  %5468 = vmatpush3.bf16.msra.mxu1 %v924_v59 }
 0xce2   :  { %5461 = vmatprep.subr.bf16.mxu0 %v6147_v4  ;;  %5884 = vmatprep.subr.bf16.mxu1 %v6150_v48 }
 0xce3   :  { %v1172_v12 = vpop.permute.xlu1 %1171 }
 0xcea   :  { %v6040_v56 = vpop.eup %6039 }
 0xceb   :  { %v912_v61 = vsel %vm516_vm4, %v6040_v56, 0.0 }
 0xcec   :  { %913 = vadd.xlane.f32.xlu0 %v912_v61 }
 0xd02   :  { %1052 = vrot.lane.b32.xlu0 %v1050_v1, %s6156_s23 }
 0xd06   :  { %1246 = vrot.lane.b32.xlu0 %v6485_v5, %s6149_s27 }
 0xd79   :  { %v914_v7 = vpop.xlane.xlu0 %913 }
 0xd7a   :  { %6041 = vrcp.f32 %v914_v7 }
 0xd7d   :  { %v1053_v50 = vpop.permute.xlu0 %1052 }
 0xd81   :  { %v6522_v36 = vpop.permute.xlu0 %1246 }
 0xd82   :  { %v1249_v39 = vmul.f32 %v6522_v36, %v6332_v52 }
 0xd84   :  { %v6042_v8 = vpop.eup %6041 }
 0xd85   :  { %v916_v9 = vmul.f32 %v6042_v8, %v6040_v56 }
 0xd87   :  { %v917_v11 = vpack.c.bf16 %v916_v9, %v916_v9 }
 0xd89   :  { %5451 = vmatmul.mubr.msk.bf16.vlgmr.msra.gmra.mrb[4].mxu0 %vm516_vm4, %v917_v11 }
 0xd8a   :  { %5462 = vmatpush3.bf16.xpose.msra.mxu0 %v6444_v24  ;;  %5463 = vmatprep.mubr.msk.bf16.mxu0 %vm6148_vm1, %v6147_v4 }
 0xd8b   :  { %5881 = vmatprep.subr.bf16.mxu0 %v6150_v48 }
 0xd91   :  { %5464 = vmatmul.mubr.msk.bf16.vlgmr.msra.gmra.mrb[8].mxu0 %vm218_vm3, %v1053_v50 }
 0xd92   :  { %5883 = vmatpush3.bf16.msra.mxu0 %v6324_v49  ;;  %5477 = vmatprep.mubr.msk.f32.mxu0 %vm6148_vm1, %v6147_v4 }
 0xd93   :  { %5887 = vmatprep.subr.bf16.mxu0 %v6150_v48 }
 0xd99   :  { %5478 = vmatmul.mubr.msk.f32.vlgmr.msra.gmra.mrb[12].mxu0 %vm218_vm3, %v1172_v12 }
 0xd9a   :  { %5889 = vmatpush3.bf16.msra.mxu0 %v6324_v49  ;;  %5491 = vmatprep.mubr.msk.f32.mxu0 %vm6148_vm1, %v6147_v4 }
 0xd9b   :  { %5500 = vmatprep.subr.bf16.mxu0 %v6147_v4 }
 0xd9d   :  { %5492 = vmatmul.mubr.msk.f32.vlgmr.msra.gmra.mrb[14].mxu0 %vm218_vm3, %v6332_v52 }
 0xd9e   :  { %5502 = vmatprep.mubr.msk.bf16.mxu0 %vm6148_vm1, %v6147_v4 }
 0xe5c   :  { %v6508_v60 = vpop.f32.mrb[4].mxu0 }
 0xe5d   :  { %v5452_v13 = vpop.f32.mrb[5].mxu0 }
 0xe5e   :  { %v963_v14 = vpop.f32.mrb[6].mxu0 }
 0xe5f   :  { %v5453_v16 = vpop.f32.mrb[7].mxu0 }
 0xe64   :  { %v1091_v17 = vpop.f32.mrb[8].mxu0 }
 0xe65   :  { %v1097_v18 = vmul.f32 0.25, %v1091_v17  ;;  %v5465_v21 = vpop.f32.mrb[9].mxu0  ;;  %v6550_v17 = vpack.c.bf16 %v6332_v52, %v6332_v52 }
 0xe66   :  { %v1094_v23 = vpop.f32.mrb[10].mxu0 }
 0xe67   :  { %v5466_v24 = vpop.f32.mrb[11].mxu0  ;;  %v1098_v19 = vadd.f32 %v1097_v18, %v6375_v15 }
 0xe69   :  { %v1099_v20 = vsel %vm516_vm4, %v1098_v19, -inf }
 0xe6a   :  { %1100 = vmax.xlane.f32.xlu1 %v1099_v20 }
 0xe6c   :  { %v1241_v28 = vpop.f32.mrb[12].mxu0 }
 0xe6d   :  { %v1250_v29 = vmul.f32 %v1241_v28, %v6515_v27  ;;  %v5479_v30 = vpop.f32.mrb[13].mxu0 }
 0xe6f   :  { %1252 = vrot.lane.b32.xlu0 %v1250_v29, %s6149_s27 }
 0xe70   :  { %v1411_v31 = vpop.f32.mrb[14].mxu0 }
 0xe71   :  { %v1416_v33 = vmul.f32 %v1411_v31, %v6515_v27  ;;  %v5493_v34 = vpop.f32.mrb[15].mxu0 }
 0xe73   :  { %v1417_v35 = vadd.f32 %v1416_v33, %v1415_v32 }
 0xe75   :  { %v1418_v61 = vpack.c.bf16 %v1417_v35, %v1417_v35 }
 0xee1   :  { %v1253_v40 = vpop.permute.xlu0 %1252 }
 0xee2   :  { %v1255_v41 = vadd.f32 %v1253_v40, %v1249_v39 }
 0xee4   :  { %v1256_v42 = vpack.c.bf16 %v1255_v41, %v1255_v41 }
 0xee6   :  { %1420 = vrot.lane.b32.xlu1 %v1256_v42, %s6149_s27 }
 0xef7   :  { %v1101_v43 = vpop.xlane.xlu1 %1100 }
 0xef8   :  { %v1102_v44 = vsub.f32 %v1098_v19, %v1101_v43 }
 0xefa   :  { %v1103_v46 = vmul.f32 1.442695, %v1102_v44 }
 0xefc   :  { %6043 = vpow2.f32 %v1103_v46 }
 0xf06   :  { %v6044_v47 = vpop.eup %6043 }
 0xf07   :  { %v1105_v51 = vsel %vm516_vm4, %v6044_v47, 0.0 }
 0xf08   :  { %1106 = vadd.xlane.f32.xlu0 %v1105_v51 }
 0xf1e   :  { %1258 = vrot.lane.b32.xlu0 %v6332_v52, %s6151_s18 }
 0xf58   :  { %v1421_v58 = vpop.permute.xlu1 %1420 }
 0xf59   :  { %v1426_v56 = vsel %vm218_vm3, %v1421_v58, 0 }
 0xf95   :  { %v1107_v53 = vpop.xlane.xlu0 %1106 }
 0xf96   :  { %6045 = vrcp.f32 %v1107_v53 }
 0xf99   :  { %v1259_v59 = vpop.permute.xlu0 %1258 }
 0xfa0   :  { %v6046_v54 = vpop.eup %6045 }
 0xfa1   :  { %v1109_v55 = vmul.f32 %v6046_v54, %v6044_v47 }
 0xfa3   :  { %v1110_v57 = vpack.c.bf16 %v1109_v55, %v1109_v55 }
 0xfa5   :  { %5470 = vmatmul.mubr.msk.bf16.vlgmr.msra.gmra.mrb[32].mxu1 %vm516_vm4, %v1110_v57 }
 0xfa6   :  { %5886 = vmatpush3.bf16.msra.mxu1 %v6324_v49  ;;  %5484 = vmatprep.mubr.msk.f32.mxu1 %vm6148_vm1, %v6147_v4 }
 0xfa7   :  { %5494 = vmatprep.subr.bf16.mxu1 %v6147_v4 }
 0xfad   :  { %5485 = vmatmul.mubr.msk.f32.vlgmr.msra.gmra.mrb[36].mxu1 %vm218_vm3, %v1259_v59 }
 0xfae   :  { %5496 = vmatprep.mubr.msk.bf16.mxu1 %vm6148_vm1, %v6147_v4 }
 0xfaf   :  { %5495 = vmatpush3.bf16.xpose.msra.mxu1 %v1426_v56 }
 0xfb0   :  { %5513 = vmatprep.subr.bf16.mxu1 %v6147_v4 }
 0xfb6   :  { %5497 = vmatmul.mubr.msk.bf16.vlgmr.msra.gmra.mrb[40].mxu1 %vm218_vm3, %v1418_v61 }
 0xfb7   :  { %5514 = vmatpush3.bf16.xpose.msra.mxu1 %v1426_v56  ;;  %5515 = vmatprep.mubr.msk.bf16.mxu1 %vm6148_vm1, %v6147_v4 }
 0xfb8   :  { %5893 = vmatprep.subr.bf16.mxu1 %v6150_v48 }
0x1078   :  { %v6544_v62 = vpop.f32.mrb[32].mxu1 }
0x1079   :  { %v5471_v63 = vpop.f32.mrb[33].mxu1 }
0x107a   :  { %v1151_v0 = vpop.f32.mrb[34].mxu1 }
0x107b   :  { %v5472_v1 = vpop.f32.mrb[35].mxu1 }
0x1080   :  { %v1328_v7 = vpop.f32.mrb[36].mxu1 }
0x1081   :  { %v5486_v8 = vpop.f32.mrb[37].mxu1  ;;  %v1336_v54 = vmul.f32 %v1328_v7, %v6515_v27 }
0x1089   :  { %v1462_v9 = vpop.f32.mrb[40].mxu1 }
0x108a   :  { %v1468_v11 = vmul.f32 0.25, %v1462_v9  ;;  %v5498_v50 = vpop.f32.mrb[41].mxu1 }
0x108b   :  { %v1465_v12 = vpop.f32.mrb[42].mxu1 }
0x108c   :  { %v5499_v13 = vpop.f32.mrb[43].mxu1  ;;  %v1469_v14 = vadd.f32 %v1468_v11, %v6375_v15 }
0x108e   :  { %v1470_v16 = vsel %vm516_vm4, %v1469_v14, -inf }
0x108f   :  { %1471 = vmax.xlane.f32.xlu1 %v1470_v16 }
0x10a0   :  { %1483 = vrot.lane.b32.xlu1 %v6550_v17, %s6153_s20 }
0x10a4   :  { %1605 = vrot.lane.b32.xlu1 %v6485_v5, %s6154_s21 }
0x111c   :  { %v1472_v18 = vpop.xlane.xlu1 %1471 }
0x111d   :  { %v1473_v21 = vsub.f32 %v1469_v14, %v1472_v18 }
0x111f   :  { %v1474_v23 = vmul.f32 1.442695, %v1473_v21 }
0x1120   :  { %v1484_v24 = vpop.permute.xlu1 %1483 }
0x1121   :  { %6047 = vpow2.f32 %v1474_v23  ;;  %v1489_v19 = vsel %vm535_vm5, %v1484_v24, 0 }
0x1122   :  { %5501 = vmatpush3.bf16.msra.mxu0 %v1489_v19 }
0x1123   :  { %5890 = vmatprep.subr.bf16.mxu0 %v6150_v48 }
0x1124   :  { %v6574_v44 = vpop.permute.xlu1 %1605 }
0x1125   :  { %v1608_v46 = vmul.f32 %v6574_v44, %v6332_v52 }
0x112b   :  { %v6048_v20 = vpop.eup %6047 }
0x112c   :  { %v1476_v28 = vsel %vm516_vm4, %v6048_v20, 0.0 }
0x112d   :  { %1477 = vadd.xlane.f32.xlu0 %v1476_v28 }
0x1143   :  { %1531 = vrot.lane.b32.xlu0 %v6332_v52, %s6155_s22 }
0x11ba   :  { %v1478_v29 = vpop.xlane.xlu0 %1477 }
0x11bb   :  { %6049 = vrcp.f32 %v1478_v29 }
0x11be   :  { %v1532_v33 = vpop.permute.xlu0 %1531 }
0x11c5   :  { %v6050_v30 = vpop.eup %6049 }
0x11c6   :  { %v1480_v31 = vmul.f32 %v6050_v30, %v6048_v20 }
0x11c8   :  { %v1481_v32 = vpack.c.bf16 %v1480_v31, %v1480_v31 }
0x11ca   :  { %5503 = vmatmul.mubr.msk.bf16.vlgmr.msra.gmra.mrb[16].mxu0 %vm516_vm4, %v1481_v32 }
0x11cb   :  { %5892 = vmatpush3.bf16.msra.mxu0 %v6324_v49  ;;  %5510 = vmatprep.mubr.msk.f32.mxu0 %vm6148_vm1, %v6147_v4 }
0x11cc   :  { %5519 = vmatprep.subr.bf16.mxu0 %v6147_v4 }
0x11d2   :  { %5511 = vmatmul.mubr.msk.f32.vlgmr.msra.gmra.mrb[20].mxu0 %vm218_vm3, %v1532_v33 }
0x11d3   :  { %5520 = vmatpush3.bf16.msra.mxu0 %v1489_v19  ;;  %5521 = vmatprep.mubr.msk.bf16.mxu0 %vm6148_vm1, %v6147_v4 }
0x11d4   :  { %5532 = vmatprep.subr.bf16.mxu0 %v6147_v4 }
0x129d   :  { %v6570_v34 = vpop.f32.mrb[16].mxu0 }
0x129e   :  { %v5504_v35 = vpop.f32.mrb[17].mxu0 }
0x129f   :  { %v1528_v39 = vpop.f32.mrb[18].mxu0 }
0x12a0   :  { %v5505_v40 = vpop.f32.mrb[19].mxu0 }
0x12a5   :  { %v1601_v41 = vpop.f32.mrb[20].mxu0 }
0x12a6   :  { %v1609_v42 = vmul.f32 %v1601_v41, %v6515_v27  ;;  %v5512_v43 = vpop.f32.mrb[21].mxu0 }
0x12a8   :  { %1611 = vrot.lane.b32.xlu1 %v1609_v42, %s6154_s21 }
0x131a   :  { %v1612_v47 = vpop.permute.xlu1 %1611 }
0x131b   :  { %v1614_v51 = vadd.f32 %v1612_v47, %v1608_v46 }
0x131d   :  { %v1615_v53 = vpack.c.bf16 %v1614_v51, %v1614_v51 }
0x131f   :  { %1617 = vrot.lane.b32.xlu1 %v1615_v53, %s6155_s22 }
0x1323   :  { %1719 = vrot.lane.b32.xlu1 %v6332_v52, %s6157_s24 }
0x1327   :  { %1332 = vrot.lane.b32.xlu1 %v6485_v5, %s6156_s23 }
0x132b   :  { %1338 = vrot.lane.b32.xlu1 %v1336_v54, %s6156_s23 }
0x132f   :  { %1793 = vrot.lane.b32.xlu1 %v6485_v5, %s6153_s20 }
0x1391   :  { %v1618_v55 = vpop.permute.xlu1 %1617 }
0x1392   :  { %5516 = vmatmul.mubr.msk.bf16.vlgmr.msra.gmra.mrb[44].mxu1 %vm218_vm3, %v1618_v55 }
0x1393   :  { %5895 = vmatpush3.bf16.msra.mxu1 %v6324_v49  ;;  %5529 = vmatprep.mubr.msk.f32.mxu1 %vm6148_vm1, %v6147_v4 }
0x1394   :  { %5538 = vmatprep.subr.bf16.mxu1 %v6147_v4 }
0x1395   :  { %v1720_v57 = vpop.permute.xlu1 %1719 }
0x1399   :  { %v6599_v11 = vpop.permute.xlu1 %1332 }
0x139a   :  { %5530 = vmatmul.mubr.msk.f32.vlgmr.msra.gmra.mrb[38].mxu1 %vm218_vm3, %v1720_v57  ;;  %v1335_v12 = vmul.f32 %v6599_v11, %v6332_v52 }
0x139b   :  { %5540 = vmatprep.mubr.msk.bf16.mxu1 %vm6148_vm1, %v6147_v4 }
0x139d   :  { %v1339_v50 = vpop.permute.xlu1 %1338 }
0x139e   :  { %v1341_v13 = vadd.f32 %v1339_v50, %v1335_v12 }
0x13a0   :  { %v1342_v14 = vpack.c.bf16 %v1341_v13, %v1341_v13 }
0x13a1   :  { %v6604_v16 = vpop.permute.xlu1 %1793 }
0x13a2   :  { %v1796_v18 = vmul.f32 %v6604_v16, %v6332_v52 }
0x1465   :  { %v1656_v58 = vpop.f32.mrb[44].mxu1 }
0x1466   :  { %v1662_v59 = vmul.f32 0.25, %v1656_v58  ;;  %v5517_v56 = vpop.f32.mrb[45].mxu1 }
0x1467   :  { %v1659_v61 = vpop.f32.mrb[46].mxu1 }
0x1468   :  { %v5518_v63 = vpop.f32.mrb[47].mxu1  ;;  %v1663_v0 = vadd.f32 %v1662_v59, %v6375_v15 }
0x146a   :  { %v1664_v1 = vsel %vm516_vm4, %v1663_v0, -inf }
0x146b   :  { %1665 = vmax.xlane.f32.xlu0 %v1664_v1 }
0x146d   :  { %v1789_v7 = vpop.f32.mrb[38].mxu1 }
0x146e   :  { %v1797_v8 = vmul.f32 %v1789_v7, %v6515_v27  ;;  %v5531_v9 = vpop.f32.mrb[39].mxu1 }
0x1470   :  { %1799 = vrot.lane.b32.xlu1 %v1797_v8, %s6153_s20 }
0x1481   :  { %1808 = vrot.lane.b32.xlu0 %v1342_v14, %s6151_s18 }
0x14e2   :  { %v1800_v21 = vpop.permute.xlu1 %1799 }
0x14e3   :  { %v1802_v23 = vadd.f32 %v1800_v21, %v1796_v18 }
0x14e5   :  { %v1803_v24 = vpack.c.bf16 %v1802_v23, %v1802_v23 }
0x14e7   :  { %1805 = vrot.lane.b32.xlu0 %v1803_v24, %s6157_s24 }
0x14f8   :  { %v1666_v19 = vpop.xlane.xlu0 %1665 }
0x14f9   :  { %v1667_v20 = vsub.f32 %v1663_v0, %v1666_v19 }
0x14fb   :  { %v1668_v28 = vmul.f32 1.442695, %v1667_v20 }
0x14fc   :  { %v1809_v35 = vpop.permute.xlu0 %1808 }
0x14fd   :  { %6051 = vpow2.f32 %v1668_v28  ;;  %v1814_v40 = vsel %vm218_vm3, %v1809_v35, 0 }
0x1507   :  { %v6052_v29 = vpop.eup %6051 }
0x1508   :  { %v1670_v30 = vsel %vm516_vm4, %v6052_v29, 0.0 }
0x1509   :  { %1671 = vadd.xlane.f32.xlu1 %v1670_v30 }
0x151a   :  { %1918 = vrot.lane.b32.xlu1 %v6332_v52, %s6156_s23 }
0x151e   :  { %1992 = vrot.lane.b32.xlu1 %v6485_v5, %s6151_s18 }
0x1559   :  { %v1806_v41 = vpop.permute.xlu0 %1805 }
0x1596   :  { %v1672_v31 = vpop.xlane.xlu1 %1671 }
0x1597   :  { %6053 = vrcp.f32 %v1672_v31 }
0x159a   :  { %v1919_v5 = vpop.permute.xlu1 %1918 }
0x159e   :  { %v6637_v1 = vpop.permute.xlu1 %1992 }
0x159f   :  { %v1995_v7 = vmul.f32 %v6637_v1, %v6332_v52 }
0x15a1   :  { %v6054_v32 = vpop.eup %6053 }
0x15a2   :  { %v1674_v33 = vmul.f32 %v6054_v32, %v6052_v29 }
0x15a4   :  { %v1675_v39 = vpack.c.bf16 %v1674_v33, %v1674_v33 }
0x15a6   :  { %5522 = vmatmul.mubr.msk.bf16.vlgmr.msra.gmra.mrb[24].mxu0 %vm516_vm4, %v1675_v39 }
0x15a7   :  { %5533 = vmatpush3.bf16.xpose.msra.mxu0 %v1814_v40  ;;  %5534 = vmatprep.mubr.msk.bf16.mxu0 %vm6148_vm1, %v6147_v4 }
0x15a8   :  { %5896 = vmatprep.subr.bf16.mxu0 %v6150_v48 }
0x15ae   :  { %5535 = vmatmul.mubr.msk.bf16.vlgmr.msra.gmra.mrb[28].mxu0 %vm218_vm3, %v1806_v41 }
0x15af   :  { %5898 = vmatpush3.bf16.msra.mxu0 %v6324_v49  ;;  %5548 = vmatprep.mubr.msk.f32.mxu0 %vm6148_vm1, %v6147_v4 }
0x15b0   :  { %5557 = vmatprep.subr.bf16.mxu0 %v6147_v4 }
0x15b6   :  { %5549 = vmatmul.mubr.msk.f32.vlgmr.msra.gmra.mrb[22].mxu0 %vm218_vm3, %v1919_v5 }
0x15b7   :  { %5559 = vmatprep.mubr.msk.bf16.mxu0 %vm6148_vm1, %v6147_v4 }
0x1679   :  { %v6627_v42 = vpop.f32.mrb[24].mxu0 }
0x167a   :  { %v5949_v43 = vpack.i.bf16 %v6627_v42, %v6450_v25  ;;  %v5523_v46 = vpop.f32.mrb[25].mxu0  ;;  %v5988_v42 = vld [vmem:[%s7275_s7 + $0x8] sm:$0xff]  }
0x167b   :  { %v1716_v47 = vpop.f32.mrb[26].mxu0 }
0x167c   :  { %v5524_v51 = vpop.f32.mrb[27].mxu0 }
0x1681   :  { %v1850_v53 = vpop.f32.mrb[28].mxu0 }
0x1682   :  { %v1856_v54 = vmul.f32 0.25, %v1850_v53  ;;  %v5536_v55 = vpop.f32.mrb[29].mxu0 }
0x1683   :  { %v1853_v57 = vpop.f32.mrb[30].mxu0 }
0x1684   :  { %v5537_v58 = vpop.f32.mrb[31].mxu0  ;;  %v1857_v59 = vadd.f32 %v1856_v54, %v6375_v15 }
0x1686   :  { %v1858_v56 = vsel %vm516_vm4, %v1857_v59, -inf }
0x1687   :  { %1859 = vmax.xlane.f32.xlu0 %v1858_v56  ;;  %v5987_v56 = vld [vmem:[%s7275_s7] sm:$0xff]  }
0x1688   :  { %v2141_v25 = vsel %vm2136_vm6, %v5987_v56, 0  ;;  %v2189_v56 = vld [vmem:[%s7273_s5] sm:$0x1] }
0x1689   :  { %v1988_v61 = vpop.f32.mrb[22].mxu0 }
0x168a   :  { %v1996_v63 = vmul.f32 %v1988_v61, %v6515_v27  ;;  %v5550_v0 = vpop.f32.mrb[23].mxu0 }
0x168c   :  { %1998 = vrot.lane.b32.xlu1 %v1996_v63, %s6151_s18 }
0x169d   :  { %1870 = vrot.lane.b32.xlu0 %v6550_v17, %s6154_s21 }
0x16fe   :  { %v1999_v8 = vpop.permute.xlu1 %1998 }
0x16ff   :  { %v2001_v9 = vadd.f32 %v1999_v8, %v1995_v7 }
0x1701   :  { %v2002_v50 = vpack.c.bf16 %v2001_v9, %v2001_v9 }
0x1703   :  { %2004 = vrot.lane.b32.xlu0 %v2002_v50, %s6156_s23 }
0x1714   :  { %v1860_v12 = vpop.xlane.xlu0 %1859 }
0x1715   :  { %v1861_v13 = vsub.f32 %v1857_v59, %v1860_v12 }
0x1717   :  { %v1862_v14 = vmul.f32 1.442695, %v1861_v13 }
0x1718   :  { %v1871_v27 = vpop.permute.xlu0 %1870 }
0x1719   :  { %6055 = vpow2.f32 %v1862_v14  ;;  %v1876_v18 = vsel %vm535_vm5, %v1871_v27, 0 }
0x171a   :  { %5539 = vmatpush3.bf16.msra.mxu1 %v1876_v18  ;;  %5558 = vmatpush3.bf16.msra.mxu0 %v1876_v18 }
0x171b   :  { %5551 = vmatprep.subr.bf16.mxu1 %v6147_v4  ;;  %5595 = vmatprep.subr.bf16.mxu0 %v6147_v4 }
0x1723   :  { %v6056_v17 = vpop.eup %6055 }
0x1724   :  { %v1864_v52 = vsel %vm516_vm4, %v6056_v17, 0.0 }
0x1725   :  { %1865 = vadd.xlane.f32.xlu1 %v1864_v52 }
0x1775   :  { %v2005_v20 = vpop.permute.xlu0 %2004 }
0x17b2   :  { %v1866_v21 = vpop.xlane.xlu1 %1865 }
0x17b3   :  { %6057 = vrcp.f32 %v1866_v21 }
0x17bd   :  { %v6058_v23 = vpop.eup %6057 }
0x17be   :  { %v1868_v24 = vmul.f32 %v6058_v23, %v6056_v17 }
0x17c0   :  { %v1869_v19 = vpack.c.bf16 %v1868_v24, %v1868_v24 }
0x17c2   :  { %5541 = vmatmul.mubr.msk.bf16.vlgmr.msra.gmra.mrb[48].mxu1 %vm516_vm4, %v1869_v19 }
0x17c3   :  { %5552 = vmatpush3.bf16.xpose.msra.mxu1 %v1814_v40  ;;  %5553 = vmatprep.mubr.msk.bf16.mxu1 %vm6148_vm1, %v6147_v4 }
0x17c4   :  { %5563 = vmatprep.subr.bf16.mxu1 %v6147_v4 }
0x17ca   :  { %5554 = vmatmul.mubr.msk.bf16.vlgmr.msra.gmra.mrb[52].mxu1 %vm218_vm3, %v2005_v20 }
0x17cb   :  { %5567 = vmatprep.mubr.msk.bf16.mxu1 %vm6148_vm1, %v6147_v4  ;;  %5564 = vmatpush3.bf16.xpose.msra.mxu1 %v2141_v25  ;;  %v2206_v25 = vadd.f32 1.0, %v2189_v56 }
0x17cc   :  { %5565 = vmatprep.subr.bf16.mxu1 %v6147_v4 }
0x1895   :  { %v1912_v28 = vpop.f32.mrb[48].mxu1 }
0x1896   :  { %v5954_v29 = vpack.i.bf16 %v1912_v28, %v6508_v60  ;;  %v5542_v30 = vpop.f32.mrb[49].mxu1 }
0x1897   :  { %v1915_v31 = vpop.f32.mrb[50].mxu1 }
0x1898   :  { %v5543_v32 = vpop.f32.mrb[51].mxu1 }
0x189d   :  { %v2043_v33 = vpop.f32.mrb[52].mxu1 }
0x189e   :  { %v2049_v35 = vmul.f32 0.25, %v2043_v33  ;;  %v5555_v39 = vpop.f32.mrb[53].mxu1 }
0x189f   :  { %v2046_v40 = vpop.f32.mrb[54].mxu1 }
0x18a0   :  { %v5556_v41 = vpop.f32.mrb[55].mxu1  ;;  %v2050_v5 = vadd.f32 %v2049_v35, %v6375_v15 }
0x18a2   :  { %v2051_v46 = vsel %vm516_vm4, %v2050_v5, -inf }
0x18a3   :  { %2052 = vmax.xlane.f32.xlu0 %v2051_v46 }
0x1930   :  { %v2053_v47 = vpop.xlane.xlu0 %2052 }
0x1931   :  { %v2054_v51 = vsub.f32 %v2050_v5, %v2053_v47 }
0x1933   :  { %v2055_v53 = vmul.f32 1.442695, %v2054_v51  ;;  %v5992_v51 = vld [vmem:[%s7276_s8 + $0x18] sm:$0xff]  }
0x1935   :  { %6059 = vpow2.f32 %v2055_v53  ;;  %v2257_v53 = vsel %vm65_vm0, %v5992_v51, 0 }
0x193f   :  { %v6060_v54 = vpop.eup %6059 }
0x1940   :  { %v2057_v60 = vsel %vm516_vm4, %v6060_v54, 0.0 }
0x1941   :  { %2058 = vadd.xlane.f32.xlu1 %v2057_v60 }
0x1952   :  { %5950 = vrot.lane.b32.xlu1 %v5949_v43, %s6154_s21  ;;  %v2144_v43 = vsel %vm2136_vm6, %v5988_v42, 0 }
0x1953   :  { %5566 = vmatpush3.bf16.xpose.msra.mxu1 %v2144_v43 }
0x1954   :  { %5571 = vmatprep.subr.bf16.mxu1 %v6147_v4 }
0x1956   :  { %5955 = vrot.lane.b32.xlu1 %v5954_v29, %s6153_s20  ;;  %v5990_v29 = vld [vmem:[%s7276_s8 + $0x8] sm:$0xff]  }
0x1957   :  { %v2251_v30 = vsel %vm65_vm0, %v5990_v29, 0 }
0x19ce   :  { %v2059_v55 = vpop.xlane.xlu1 %2058 }
0x19cf   :  { %6061 = vrcp.f32 %v2059_v55 }
0x19d2   :  { %v5951_v9 = vpop.permute.xlu1 %5950 }
0x19d3   :  { %v5953_v12 = vunpack.i.h.bf16 %v5951_v9  ;;  %v5952_v13 = vunpack.i.l.bf16 %v5951_v9 }
0x19d5   :  { %v2118_v17 = vsel %vm218_vm3, %v6570_v34, %v5953_v12  ;;  %v1166_v52 = vsel %vm218_vm3, %v6401_v38, %v5952_v13  ;;  %v5989_v38 = vld [vmem:[%s7276_s8] sm:$0xff]   ;;  %v5994_v13 = vld [vmem:[%s7277_s9 + $0x8] sm:$0xff]  }
0x19d6   :  { %v5956_v50 = vpop.permute.xlu1 %5955  ;;  %v2248_v34 = vsel %vm65_vm0, %v5989_v38, 0 }
0x19d7   :  { %v5958_v14 = vunpack.i.h.bf16 %v5956_v50  ;;  %v5957_v27 = vunpack.i.l.bf16 %v5956_v50 }
0x19d9   :  { %v6062_v57 = vpop.eup %6061  ;;  %v1167_v23 = vsel %vm65_vm0, %v1166_v52, %v5957_v27  ;;  %v2119_v24 = vsel %vm65_vm0, %v2118_v17, %v5958_v14  ;;  %v2332_v14 = vsel %vm65_vm0, %v5994_v13, 0  ;;  %v5995_v27 = vld [vmem:[%s7277_s9 + $0x10] sm:$0xff]   ;;  %v5996_v17 = vld [vmem:[%s7277_s9 + $0x18] sm:$0xff]   ;;  %v6003_v13 = vld [vmem:[%s7274_s6 + $0x60] sm:$0xff]  }
0x19da   :  { %v2061_v58 = vmul.f32 %v6062_v57, %v6060_v54  ;;  %v2338_v52 = vsel %vm65_vm0, %v5996_v17, 0 }
0x19dc   :  { %v2062_v59 = vpack.c.bf16 %v2061_v58, %v2061_v58 }
0x19de   :  { %5560 = vmatmul.mubr.msk.bf16.vlgmr.msra.gmra.mrb[32].mxu0 %vm516_vm4, %v2062_v59 }
0x19df   :  { %5599 = vmatprep.mubr.msk.bf16.mxu0 %vm6148_vm1, %v6147_v4 }
0x1ab1   :  { %v2100_v61 = vpop.f32.mrb[32].mxu0 }
0x1ab2   :  { %v5959_v63 = vpack.i.bf16 %v2100_v61, %v6544_v62  ;;  %v5561_v0 = vpop.f32.mrb[33].mxu0  ;;  %v2211_v61 = vrot.slane %v2206_v25, %v6309_v37 }
0x1ab3   :  { %v2103_v7 = vpop.f32.mrb[34].mxu0 }
0x1ab4   :  { %5960 = vrot.lane.b32.xlu1 %v5959_v63, %s6151_s18  ;;  %v5562_v8 = vpop.f32.mrb[35].mxu0  ;;  %v5993_v7 = vld [vmem:[%s7277_s9] sm:$0xff]  }
0x1ab5   :  { %v2329_v12 = vsel %vm65_vm0, %v5993_v7, 0 }
0x1b26   :  { %v5961_v18 = vpop.permute.xlu1 %5960 }
0x1b27   :  { %v5963_v62 = vunpack.i.h.bf16 %v5961_v18  ;;  %v5962_v21 = vunpack.i.l.bf16 %v5961_v18  ;;  %v2335_v18 = vsel %vm65_vm0, %v5995_v27, 0 }
0x1b29   :  { %v1169_v19 = vsel %vm1168_vm7, %v1167_v23, %v5962_v21  ;;  %v2120_v20 = vsel %vm1168_vm7, %v2119_v24, %v5963_v62  ;;  %v5997_v62 = vld [vmem:[%s7278_s10] sm:$0xff]   ;;  %v5998_v23 = vld [vmem:[%s7278_s10 + $0x8] sm:$0xff]  }
0x1b2a   :  { %v2121_v28 = vpack.c.bf16 %v2120_v20, %v1169_v19  ;;  %v2420_v21 = vsel %vm2136_vm6, %v5997_v62, 0  ;;  %v2423_v24 = vsel %vm2136_vm6, %v5998_v23, 0 }
0x1b2b   :  { %5596 = vmatpush3.bf16.xpose.msra.mxu0 %v2420_v21 }
0x1b2c   :  { %5568 = vmatmul.mubr.msk.bf16.vlgmr.msra.gmra.mrb[56].mxu1 %vm2136_vm6, %v2121_v28  ;;  %5597 = vmatprep.subr.bf16.mxu0 %v6147_v4 }
0x1b2d   :  { %5579 = vmatprep.mubr.msk.bf16.mxu1 %vm6148_vm1, %v6147_v4  ;;  %5572 = vmatpush3.bf16.xpose.msra.mxu1 %v2248_v34 }
0x1b2e   :  { %5573 = vmatprep.subr.bf16.mxu1 %v6147_v4 }
0x1b33   :  { %5598 = vmatpush3.bf16.xpose.msra.mxu0 %v2423_v24 }
0x1b34   :  { %5899 = vmatprep.subr.bf16.mxu0 %v6150_v48 }
0x1b35   :  { %5574 = vmatpush3.bf16.xpose.msra.mxu1 %v2251_v30 }
0x1b36   :  { %5575 = vmatprep.subr.bf16.mxu1 %v6147_v4 }
0x1bff   :  { %v2180_v31 = vpop.f32.mrb[56].mxu1 }
0x1c00   :  { %v6699_v32 = vadd.f32 %v2180_v31, %v6237_v2  ;;  %v5569_v33 = vpop.f32.mrb[57].mxu1  ;;  %v5991_v2 = vld [vmem:[%s7276_s8 + $0x10] sm:$0xff]  }
0x1c01   :  { %v2183_v35 = vpop.f32.mrb[58].mxu1 }
0x1c02   :  { %v6702_v39 = vadd.f32 %v2183_v35, %v6239_v3  ;;  %v5570_v40 = vpop.f32.mrb[59].mxu1  ;;  %v2190_v41 = vmul.f32 %v6699_v32, %v6699_v32  ;;  %v2254_v3 = vsel %vm65_vm0, %v5991_v2, 0 }
0x1c03   :  { %5576 = vmatpush3.bf16.xpose.msra.mxu1 %v2254_v3 }
0x1c04   :  { %v2192_v5 = vsel %vm65_vm0, %v2190_v41, 0.0  ;;  %v2191_v46 = vmul.f32 %v6702_v39, %v6702_v39  ;;  %5577 = vmatprep.subr.bf16.mxu1 %v6147_v4 }
0x1c05   :  { %2193 = vadd.xlane.f32.xlu1 %v2192_v5 }
0x1c06   :  { %v2195_v47 = vsel %vm65_vm0, %v2191_v46, 0.0 }
0x1c07   :  { %2196 = vadd.xlane.f32.xlu0 %v2195_v47 }
0x1c0b   :  { %5578 = vmatpush3.bf16.xpose.msra.mxu1 %v2257_v53 }
0x1c0c   :  { %5583 = vmatprep.subr.bf16.mxu1 %v6147_v4 }
0x1c92   :  { %v2194_v54 = vpop.xlane.xlu1 %2193 }
0x1c93   :  { %v2198_v60 = vmul.f32 0.03125, %v2194_v54 }
0x1c94   :  { %v2197_v55 = vpop.xlane.xlu0 %2196 }
0x1c95   :  { %v2200_v57 = vadd.f32 1e-06, %v2198_v60  ;;  %v2199_v58 = vmul.f32 0.03125, %v2197_v55 }
0x1c97   :  { %6063 = vrsqrt.f32 %v2200_v57  ;;  %v2201_v59 = vadd.f32 1e-06, %v2199_v58 }
0x1c99   :  { %6065 = vrsqrt.f32 %v2201_v59 }
0x1ca1   :  { %v6064_v42 = vpop.eup %6063 }
0x1ca2   :  { %v2204_v43 = vmul.f32 %v6064_v42, %v6699_v32 }
0x1ca3   :  { %v6066_v63 = vpop.eup %6065 }
0x1ca4   :  { %v2205_v0 = vmul.f32 %v6066_v63, %v6702_v39  ;;  %v2213_v8 = vmul.f32 %v2211_v61, %v2204_v43 }
0x1ca6   :  { %v2214_v9 = vmul.f32 %v2211_v61, %v2205_v0  ;;  %v5999_v61 = vld [vmem:[%s7274_s6 + $0x40] sm:$0xff]   ;;  %v6000_v0 = vld [vmem:[%s7274_s6 + $0x48] sm:$0xff]  }
0x1ca7   :  { %v2557_v63 = vsel %vm65_vm0, %v5999_v61, 0  ;;  %v2560_v7 = vsel %vm65_vm0, %v6000_v0, 0  ;;  %v6853_v61 = vld [vmem:[%s7270_s2] sm:$0xff] }
0x1ca8   :  { %v2215_v50 = vpack.c.bf16 %v2214_v9, %v2213_v8  ;;  %v6001_v8 = vld [vmem:[%s7274_s6 + $0x50] sm:$0xff]  }
0x1ca9   :  { %v2563_v9 = vsel %vm65_vm0, %v6001_v8, 0 }
0x1caa   :  { %5580 = vmatmul.mubr.msk.bf16.vlgmr.msra.gmra.mrb[60].mxu1 %vm65_vm0, %v2215_v50 }
0x1cab   :  { %5584 = vmatpush3.bf16.xpose.msra.mxu1 %v2329_v12  ;;  %5591 = vmatprep.mubr.msk.bf16.mxu1 %vm6148_vm1, %v6147_v4 }
0x1cac   :  { %5585 = vmatprep.subr.bf16.mxu1 %v6147_v4 }
0x1cb3   :  { %5586 = vmatpush3.bf16.xpose.msra.mxu1 %v2332_v14  ;;  %v2569_v14 = vsel %vm65_vm0, %v6003_v13, 0 }
0x1cb4   :  { %5587 = vmatprep.subr.bf16.mxu1 %v6147_v4 }
0x1cbb   :  { %5588 = vmatpush3.bf16.xpose.msra.mxu1 %v2335_v18 }
0x1cbc   :  { %5589 = vmatprep.subr.bf16.mxu1 %v6147_v4 }
0x1cc3   :  { %5590 = vmatpush3.bf16.xpose.msra.mxu1 %v2338_v52 }
0x1cc4   :  { %5603 = vmatprep.subr.bf16.mxu1 %v6147_v4 }
0x1cca   :  { %5592 = vmatmul.mubr.msk.bf16.vlgmr.msra.gmra.mrb[64].mxu1 %vm65_vm0, %v2215_v50  ;;  %v6002_v50 = vld [vmem:[%s7274_s6 + $0x58] sm:$0xff]  }
0x1ccb   :  { %5619 = vmatprep.mubr.msk.bf16.mxu1 %vm6148_vm1, %v6147_v4  ;;  %5604 = vmatpush3.bf16.xpose.msra.mxu1 %v2557_v63  ;;  %v2566_v12 = vsel %vm65_vm0, %v6002_v50, 0  ;;  %v6120_v50 = vld [vmem:[%s7269_s1] sm:$0xff] }
0x1ccc   :  { %5605 = vmatprep.subr.bf16.mxu1 %v6147_v4 }
0x1cd3   :  { %5606 = vmatpush3.bf16.xpose.msra.mxu1 %v2560_v7 }
0x1cd4   :  { %5607 = vmatprep.subr.bf16.mxu1 %v6147_v4 }
0x1cdb   :  { %5608 = vmatpush3.bf16.xpose.msra.mxu1 %v2563_v9 }
0x1cdc   :  { %5609 = vmatprep.subr.bf16.mxu1 %v6147_v4 }
0x1ce3   :  { %5610 = vmatpush3.bf16.xpose.msra.mxu1 %v2566_v12 }
0x1ce4   :  { %5611 = vmatprep.subr.bf16.mxu1 %v6147_v4 }
0x1ceb   :  { %5612 = vmatpush3.bf16.xpose.msra.mxu1 %v2569_v14 }
0x1cec   :  { %5613 = vmatprep.subr.bf16.mxu1 %v6147_v4 }
0x1d7d   :  { %v2293_v19 = vpop.f32.mrb[60].mxu1 }
0x1d7e   :  { %v2381_v20 = vmul.f32 %v2293_v19, %v2293_v19  ;;  %v5581_v28 = vpop.f32.mrb[61].mxu1 }
0x1d7f   :  { %v2296_v38 = vpop.f32.mrb[62].mxu1  ;;  %v6005_v28 = vld [vmem:[%s7274_s6 + $0x70] sm:$0xff]  }
0x1d80   :  { %v2383_v34 = vmul.f32 %v2381_v20, %v2293_v19  ;;  %v2382_v29 = vmul.f32 %v2296_v38, %v2296_v38  ;;  %v5582_v30 = vpop.f32.mrb[63].mxu1 }
0x1d82   :  { %v2385_v31 = vmul.f32 0.044715, %v2383_v34  ;;  %v2384_v33 = vmul.f32 %v2382_v29, %v2296_v38  ;;  %v6006_v34 = vld [vmem:[%s7274_s6 + $0x78] sm:$0xff]  }
0x1d83   :  { %v2578_v29 = vsel %vm65_vm0, %v6006_v34, 0 }
0x1d84   :  { %v2387_v35 = vadd.f32 %v2385_v31, %v2293_v19  ;;  %v2386_v40 = vmul.f32 0.044715, %v2384_v33 }
0x1d86   :  { %v2389_v41 = vmul.f32 0.7978846, %v2387_v35  ;;  %v2388_v5 = vadd.f32 %v2386_v40, %v2296_v38 }
0x1d88   :  { %6067 = vtanh.f32 %v2389_v41  ;;  %v2390_v46 = vmul.f32 0.7978846, %v2388_v5  ;;  %v5064_v5 = vld [vmem:[%s7272_s4 + $0x1] sm:$0x1] }
0x1d8a   :  { %6069 = vtanh.f32 %v2390_v46  ;;  %v2486_v46 = vadd.f32 1.0, %v5064_v5 }
0x1d92   :  { %v6068_v47 = vpop.eup %6067 }
0x1d93   :  { %v2393_v3 = vadd.f32 1.0, %v6068_v47 }
0x1d94   :  { %v6070_v2 = vpop.eup %6069 }
0x1d95   :  { %v2394_v51 = vadd.f32 1.0, %v6070_v2  ;;  %v2395_v53 = vmul.f32 0.5, %v2393_v3  ;;  %v2491_v3 = vrot.slane %v2486_v46, %v6309_v37 }
0x1d97   :  { %v2396_v54 = vmul.f32 0.5, %v2394_v51  ;;  %v2397_v60 = vmul.f32 %v2395_v53, %v2293_v19 }
0x1d99   :  { %v2398_v59 = vmul.f32 %v2396_v54, %v2296_v38  ;;  %v2575_v38 = vsel %vm65_vm0, %v6005_v28, 0 }
0x1d9d   :  { %v2374_v55 = vpop.f32.mrb[64].mxu1 }
0x1d9e   :  { %v2399_v57 = vmul.f32 %v2397_v60, %v2374_v55  ;;  %v5593_v58 = vpop.f32.mrb[65].mxu1 }
0x1d9f   :  { %v2377_v56 = vpop.f32.mrb[66].mxu1 }
0x1da0   :  { %v2400_v25 = vmul.f32 %v2398_v59, %v2377_v56  ;;  %v5594_v42 = vpop.f32.mrb[67].mxu1 }
0x1da2   :  { %v2401_v43 = vpack.c.bf16 %v2400_v25, %v2399_v57 }
0x1da4   :  { %5600 = vmatmul.mubr.msk.bf16.vlgmr.msra.gmra.mrb[36].mxu0 %vm2136_vm6, %v2401_v43 }
0x1da5   :  { %5901 = vmatpush3.bf16.msra.mxu0 %v6324_v49  ;;  %5627 = vmatprep.mubr.msk.f32.mxu0 %vm6148_vm1, %v6147_v4 }
0x1da6   :  { %5902 = vmatprep.subr.bf16.mxu0 %v6150_v48 }
0x1e77   :  { %v2459_v27 = vpop.f32.mrb[36].mxu0 }
0x1e78   :  { %v6793_v18 = vadd.f32 %v2459_v27, %v6699_v32  ;;  %v5601_v17 = vpop.f32.mrb[37].mxu0  ;;  %v6004_v32 = vld [vmem:[%s7274_s6 + $0x68] sm:$0xff]  }
0x1e79   :  { %v2462_v52 = vpop.f32.mrb[38].mxu0 }
0x1e7a   :  { %v6796_v62 = vadd.f32 %v2462_v52, %v6702_v39  ;;  %v5602_v21 = vpop.f32.mrb[39].mxu0  ;;  %v2470_v23 = vmul.f32 %v6793_v18, %v6793_v18  ;;  %v2572_v39 = vsel %vm65_vm0, %v6004_v32, 0 }
0x1e7b   :  { %5614 = vmatpush3.bf16.xpose.msra.mxu1 %v2572_v39 }
0x1e7c   :  { %v2472_v24 = vsel %vm65_vm0, %v2470_v23, 0.0  ;;  %v2471_v19 = vmul.f32 %v6796_v62, %v6796_v62  ;;  %5615 = vmatprep.subr.bf16.mxu1 %v6147_v4 }
0x1e7d   :  { %2473 = vadd.xlane.f32.xlu0 %v2472_v24 }
0x1e7e   :  { %v2475_v20 = vsel %vm65_vm0, %v2471_v19, 0.0 }
0x1e81   :  { %2476 = vadd.xlane.f32.xlu0 %v2475_v20 }
0x1e83   :  { %5616 = vmatpush3.bf16.xpose.msra.mxu1 %v2575_v38 }
0x1e84   :  { %5617 = vmatprep.subr.bf16.mxu1 %v6147_v4 }
0x1e8b   :  { %5618 = vmatpush3.bf16.xpose.msra.mxu1 %v2578_v29 }
0x1e8c   :  { %5682 = vmatprep.subr.bf16.mxu1 %v6147_v4 }
0x1f0a   :  { %v2474_v30 = vpop.xlane.xlu0 %2473 }
0x1f0b   :  { %v2478_v31 = vmul.f32 0.03125, %v2474_v30 }
0x1f0d   :  { %v2480_v33 = vadd.f32 1e-06, %v2478_v31 }
0x1f0e   :  { %v2477_v35 = vpop.xlane.xlu0 %2476 }
0x1f0f   :  { %6071 = vrsqrt.f32 %v2480_v33  ;;  %v2479_v40 = vmul.f32 0.03125, %v2477_v35 }
0x1f11   :  { %v2481_v41 = vadd.f32 1e-06, %v2479_v40 }
0x1f13   :  { %6073 = vrsqrt.f32 %v2481_v41 }
0x1f19   :  { %v6072_v47 = vpop.eup %6071 }
0x1f1a   :  { %v2484_v2 = vmul.f32 %v6072_v47, %v6793_v18 }
0x1f1c   :  { %v2493_v54 = vmul.f32 %v2491_v3, %v2484_v2 }
0x1f1d   :  { %v6074_v51 = vpop.eup %6073 }
0x1f1e   :  { %v2485_v53 = vmul.f32 %v6074_v51, %v6796_v62 }
0x1f20   :  { %v2494_v60 = vmul.f32 %v2491_v3, %v2485_v53 }
0x1f22   :  { %v2495_v55 = vpack.c.bf16 %v2494_v60, %v2493_v54 }
0x1f24   :  { %5620 = vmatmul.mubr.msk.bf16.vlgmr.msra.gmra.mrb[68].mxu1 %vm65_vm0, %v2495_v55 }
0x1f25   :  { %5684 = vmatprep.mubr.msk.bf16.mxu1 %vm6148_vm1, %v6147_v4 }
0x1ff7   :  { %v6828_v57 = vpop.f32.mrb[68].mxu1 }
0x1ff8   :  { %2622 = vrot.lane.b32.xlu0 %v6828_v57, %s6149_s27  ;;  %v5621_v58 = vpop.f32.mrb[69].mxu1  ;;  %v2859_v12 = vmul.f32 %v6120_v50, %v6828_v57  ;;  %v2696_v17 = vmul.f32 %v6828_v57, %v6362_v6  ;;  %v6876_v30 = vpack.c.bf16 %v6828_v57, %v6828_v57 }
0x1ff9   :  { %v6832_v59 = vpop.f32.mrb[70].mxu1 }
0x1ffa   :  { %v5622_v56 = vpop.f32.mrb[71].mxu1 }
0x1ffc   :  { %2705 = vrot.lane.b32.xlu0 %v6828_v57, %s6151_s18 }
0x206a   :  { %v2623_v25 = vpop.permute.xlu0 %2622 }
0x206b   :  { %5628 = vmatmul.mubr.msk.f32.vlgmr.msra.gmra.mrb[40].mxu0 %vm218_vm3, %v2623_v25 }
0x206c   :  { %5904 = vmatpush3.bf16.msra.mxu0 %v6324_v49  ;;  %5634 = vmatprep.mubr.msk.f32.mxu0 %vm6148_vm1, %v6147_v4 }
0x206d   :  { %5905 = vmatprep.subr.bf16.mxu0 %v6150_v48 }
0x206e   :  { %v2706_v42 = vpop.permute.xlu0 %2705 }
0x206f   :  { %5635 = vmatmul.mubr.msk.f32.vlgmr.msra.gmra.mrb[42].mxu0 %vm218_vm3, %v2706_v42 }
0x2070   :  { %5907 = vmatpush3.bf16.msra.mxu0 %v6324_v49  ;;  %5641 = vmatprep.mubr.msk.f32.mxu0 %vm6148_vm1, %v6147_v4 }
0x2071   :  { %5644 = vmatprep.subr.bf16.mxu0 %v6147_v4 }
0x2073   :  { %5642 = vmatmul.mubr.msk.f32.vlgmr.msra.gmra.mrb[44].mxu0 %vm218_vm3, %v6828_v57 }
0x2074   :  { %5646 = vmatprep.mubr.msk.bf16.mxu0 %vm6148_vm1, %v6147_v4 }
0x213e   :  { %v2692_v43 = vpop.f32.mrb[40].mxu0 }
0x213f   :  { %v2697_v63 = vmul.f32 %v6853_v61, %v2692_v43  ;;  %v5629_v0 = vpop.f32.mrb[41].mxu0  ;;  %v3049_v43 = vmul.f32 %v6828_v57, %v6405_v45 }
0x2141   :  { %2699 = vrot.lane.b32.xlu1 %v2697_v63, %s6149_s27 }
0x2142   :  { %v6857_v7 = vpop.f32.mrb[42].mxu0 }
0x2143   :  { %v5636_v8 = vpop.f32.mrb[43].mxu0 }
0x2146   :  { %v2855_v9 = vpop.f32.mrb[44].mxu0 }
0x2147   :  { %v2860_v13 = vmul.f32 %v6853_v61, %v2855_v9  ;;  %v5643_v14 = vpop.f32.mrb[45].mxu0 }
0x2149   :  { %v2861_v27 = vadd.f32 %v2860_v13, %v2859_v12 }
0x214b   :  { %v2862_v20 = vpack.c.bf16 %v2861_v27, %v2861_v27 }
0x21b3   :  { %v2700_v52 = vpop.permute.xlu1 %2699 }
0x21b4   :  { %v2702_v21 = vadd.f32 %v2700_v52, %v2696_v17 }
0x21b6   :  { %v2703_v23 = vpack.c.bf16 %v2702_v21, %v2702_v21 }
0x21b8   :  { %2864 = vrot.lane.b32.xlu0 %v2703_v23, %s6149_s27 }
0x222a   :  { %v2865_v24 = vpop.permute.xlu0 %2864 }
0x222b   :  { %v2870_v19 = vsel %vm218_vm3, %v2865_v24, 0 }
0x222c   :  { %5645 = vmatpush3.bf16.xpose.msra.mxu0 %v2870_v19 }
0x222d   :  { %5650 = vmatprep.subr.bf16.mxu0 %v6147_v4 }
0x2233   :  { %5647 = vmatmul.mubr.msk.bf16.vlgmr.msra.gmra.mrb[48].mxu0 %vm218_vm3, %v2862_v20  ;;  %v2780_v20 = vmul.f32 %v6853_v61, %v6857_v7 }
0x2234   :  { %5652 = vmatprep.mubr.msk.bf16.mxu0 %vm6148_vm1, %v6147_v4 }
0x2306   :  { %v2906_v32 = vpop.f32.mrb[48].mxu0 }
0x2307   :  { %v2912_v39 = vmul.f32 0.25, %v2906_v32  ;;  %v5648_v6 = vpop.f32.mrb[49].mxu0 }
0x2308   :  { %v2909_v28 = vpop.f32.mrb[50].mxu0 }
0x2309   :  { %v5649_v38 = vpop.f32.mrb[51].mxu0  ;;  %v2913_v34 = vadd.f32 %v2912_v39, %v6375_v15  ;;  %v2779_v39 = vmul.f32 %v6828_v57, %v6422_v10 }
0x230b   :  { %v2914_v29 = vsel %vm516_vm4, %v2913_v34, -inf }
0x230c   :  { %2915 = vmax.xlane.f32.xlu0 %v2914_v29 }
0x2322   :  { %2927 = vrot.lane.b32.xlu0 %v6876_v30, %s6153_s20 }
0x2399   :  { %v2916_v31 = vpop.xlane.xlu0 %2915 }
0x239a   :  { %v2917_v33 = vsub.f32 %v2913_v34, %v2916_v31 }
0x239c   :  { %v2918_v35 = vmul.f32 1.442695, %v2917_v33 }
0x239d   :  { %v2928_v40 = vpop.permute.xlu0 %2927 }
0x239e   :  { %6075 = vpow2.f32 %v2918_v35  ;;  %v2933_v41 = vsel %vm535_vm5, %v2928_v40, 0 }
0x239f   :  { %5651 = vmatpush3.bf16.msra.mxu0 %v2933_v41 }
0x23a0   :  { %5908 = vmatprep.subr.bf16.mxu0 %v6150_v48 }
0x23a8   :  { %v6076_v5 = vpop.eup %6075 }
0x23a9   :  { %v2920_v46 = vsel %vm516_vm4, %v6076_v5, 0.0 }
0x23aa   :  { %2921 = vadd.xlane.f32.xlu1 %v2920_v46 }
0x23bb   :  { %2975 = vrot.lane.b32.xlu1 %v6828_v57, %s6155_s22 }
0x2437   :  { %v2922_v47 = vpop.xlane.xlu1 %2921 }
0x2438   :  { %6077 = vrcp.f32 %v2922_v47 }
0x243b   :  { %v2976_v53 = vpop.permute.xlu1 %2975 }
0x2442   :  { %v6078_v2 = vpop.eup %6077 }
0x2443   :  { %v2924_v3 = vmul.f32 %v6078_v2, %v6076_v5 }
0x2445   :  { %v2925_v51 = vpack.c.bf16 %v2924_v3, %v2924_v3  ;;  %v3234_v3 = vmul.f32 %v6828_v57, %v6435_v22 }
0x2447   :  { %5653 = vmatmul.mubr.msk.bf16.vlgmr.msra.gmra.mrb[52].mxu0 %vm516_vm4, %v2925_v51 }
0x2448   :  { %5910 = vmatpush3.bf16.msra.mxu0 %v6324_v49  ;;  %5660 = vmatprep.mubr.msk.f32.mxu0 %vm6148_vm1, %v6147_v4 }
0x2449   :  { %5663 = vmatprep.subr.bf16.mxu0 %v6147_v4 }
0x244f   :  { %5661 = vmatmul.mubr.msk.f32.vlgmr.msra.gmra.mrb[46].mxu0 %vm218_vm3, %v2976_v53 }
0x2450   :  { %5665 = vmatprep.mubr.msk.bf16.mxu0 %vm6148_vm1, %v6147_v4 }
0x2451   :  { %5664 = vmatpush3.bf16.xpose.msra.mxu0 %v2870_v19 }
0x2452   :  { %5669 = vmatprep.subr.bf16.mxu0 %v6147_v4 }
0x251a   :  { %v6894_v54 = vpop.f32.mrb[52].mxu0 }
0x251b   :  { %v5654_v60 = vpop.f32.mrb[53].mxu0 }
0x251c   :  { %v2972_v55 = vpop.f32.mrb[54].mxu0 }
0x251d   :  { %v5655_v58 = vpop.f32.mrb[55].mxu0 }
0x2522   :  { %v3045_v56 = vpop.f32.mrb[46].mxu0 }
0x2523   :  { %v3050_v25 = vmul.f32 %v6853_v61, %v3045_v56  ;;  %v5662_v42 = vpop.f32.mrb[47].mxu0 }
0x2525   :  { %3052 = vrot.lane.b32.xlu0 %v3050_v25, %s6154_s21 }
0x2597   :  { %v3053_v63 = vpop.permute.xlu0 %3052 }
0x2598   :  { %v3055_v0 = vadd.f32 %v3053_v63, %v3049_v43 }
0x259a   :  { %v3056_v8 = vpack.c.bf16 %v3055_v0, %v3055_v0 }
0x259c   :  { %3058 = vrot.lane.b32.xlu0 %v3056_v8, %s6155_s22 }
0x260e   :  { %v3059_v9 = vpop.permute.xlu0 %3058 }
0x260f   :  { %5666 = vmatmul.mubr.msk.bf16.vlgmr.msra.gmra.mrb[56].mxu0 %vm218_vm3, %v3059_v9 }
0x2610   :  { %5670 = vmatpush3.bf16.msra.mxu0 %v2933_v41  ;;  %5671 = vmatprep.mubr.msk.bf16.mxu0 %vm6148_vm1, %v6147_v4 }
0x2611   :  { %5911 = vmatprep.subr.bf16.mxu0 %v6150_v48 }
0x26e2   :  { %v3097_v50 = vpop.f32.mrb[56].mxu0 }
0x26e3   :  { %v3103_v12 = vmul.f32 0.25, %v3097_v50  ;;  %v5667_v13 = vpop.f32.mrb[57].mxu0 }
0x26e4   :  { %v3100_v14 = vpop.f32.mrb[58].mxu0 }
0x26e5   :  { %v5668_v27 = vpop.f32.mrb[59].mxu0  ;;  %v3104_v45 = vadd.f32 %v3103_v12, %v6375_v15 }
0x26e7   :  { %v3105_v17 = vsel %vm516_vm4, %v3104_v45, -inf }
0x26e8   :  { %3106 = vmax.xlane.f32.xlu0 %v3105_v17 }
0x26fe   :  { %3160 = vrot.lane.b32.xlu0 %v6828_v57, %s6157_s24 }
0x2775   :  { %v3107_v52 = vpop.xlane.xlu0 %3106 }
0x2776   :  { %v3108_v21 = vsub.f32 %v3104_v45, %v3107_v52 }
0x2778   :  { %v3109_v23 = vmul.f32 1.442695, %v3108_v21 }
0x2779   :  { %v3161_v7 = vpop.permute.xlu0 %3160 }
0x277a   :  { %6079 = vpow2.f32 %v3109_v23 }
0x2784   :  { %v6080_v24 = vpop.eup %6079 }
0x2785   :  { %v3111_v19 = vsel %vm516_vm4, %v6080_v24, 0.0 }
0x2786   :  { %3112 = vadd.xlane.f32.xlu1 %v3111_v19 }
0x2797   :  { %2782 = vrot.lane.b32.xlu1 %v2780_v20, %s6156_s23 }
0x2813   :  { %v3113_v32 = vpop.xlane.xlu1 %3112 }
0x2814   :  { %6081 = vrcp.f32 %v3113_v32 }
0x2817   :  { %v2783_v6 = vpop.permute.xlu1 %2782 }
0x2818   :  { %v2785_v28 = vadd.f32 %v2783_v6, %v2779_v39  ;;  %v3430_v6 = vmul.f32 %v6828_v57, %v6477_v26 }
0x281a   :  { %v2786_v38 = vpack.c.bf16 %v2785_v28, %v2785_v28 }
0x281c   :  { %3246 = vrot.lane.b32.xlu1 %v2786_v38, %s6151_s18 }
0x281e   :  { %v6082_v34 = vpop.eup %6081 }
0x281f   :  { %v3115_v29 = vmul.f32 %v6082_v34, %v6080_v24 }
0x2821   :  { %v3116_v31 = vpack.c.bf16 %v3115_v29, %v3115_v29 }
0x2823   :  { %5672 = vmatmul.mubr.msk.bf16.vlgmr.msra.gmra.mrb[60].mxu0 %vm516_vm4, %v3116_v31 }
0x2824   :  { %5913 = vmatpush3.bf16.msra.mxu0 %v6324_v49  ;;  %5679 = vmatprep.mubr.msk.f32.mxu0 %vm6148_vm1, %v6147_v4 }
0x2825   :  { %5688 = vmatprep.subr.bf16.mxu0 %v6147_v4 }
0x282b   :  { %5680 = vmatmul.mubr.msk.f32.vlgmr.msra.gmra.mrb[64].mxu0 %vm218_vm3, %v3161_v7 }
0x282c   :  { %5690 = vmatprep.mubr.msk.bf16.mxu0 %vm6148_vm1, %v6147_v4 }
0x288e   :  { %v3247_v10 = vpop.permute.xlu1 %3246 }
0x288f   :  { %v3252_v33 = vsel %vm218_vm3, %v3247_v10, 0 }
0x2890   :  { %5683 = vmatpush3.bf16.xpose.msra.mxu1 %v3252_v33 }
0x2891   :  { %5701 = vmatprep.subr.bf16.mxu1 %v6147_v4 }
0x28f6   :  { %v6926_v35 = vpop.f32.mrb[60].mxu0 }
0x28f7   :  { %v5673_v40 = vpop.f32.mrb[61].mxu0 }
0x28f8   :  { %v3157_v41 = vpop.f32.mrb[62].mxu0 }
0x28f9   :  { %v5674_v5 = vpop.f32.mrb[63].mxu0 }
0x28fa   :  { %v6983_v5 = vld [vmem:[%s7270_s2 + $0x8] sm:$0xff] }
0x28fe   :  { %v3230_v46 = vpop.f32.mrb[64].mxu0 }
0x28ff   :  { %v3235_v47 = vmul.f32 %v6853_v61, %v3230_v46  ;;  %v5681_v2 = vpop.f32.mrb[65].mxu0 }
0x2901   :  { %3237 = vrot.lane.b32.xlu0 %v3235_v47, %s6153_s20 }
0x2973   :  { %v3238_v51 = vpop.permute.xlu0 %3237 }
0x2974   :  { %v3240_v53 = vadd.f32 %v3238_v51, %v3234_v3  ;;  %v6122_v3 = vld [vmem:[%s7269_s1 + $0x8] sm:$0xff] }
0x2975   :  { %v3794_v51 = vmul.f32 %v6122_v3, %v6832_v59 }
0x2976   :  { %v3241_v60 = vpack.c.bf16 %v3240_v53, %v3240_v53 }
0x2978   :  { %3243 = vrot.lane.b32.xlu0 %v3241_v60, %s6157_s24 }
0x29ea   :  { %v3244_v55 = vpop.permute.xlu0 %3243 }
0x29eb   :  { %5685 = vmatmul.mubr.msk.bf16.vlgmr.msra.gmra.mrb[72].mxu1 %vm218_vm3, %v3244_v55 }
0x29ec   :  { %5702 = vmatpush3.bf16.xpose.msra.mxu1 %v3252_v33  ;;  %5703 = vmatprep.mubr.msk.bf16.mxu1 %vm6148_vm1, %v6147_v4 }
0x29ed   :  { %5917 = vmatprep.subr.bf16.mxu1 %v6150_v48 }
0x2abe   :  { %v3288_v58 = vpop.f32.mrb[72].mxu1 }
0x2abf   :  { %v3294_v56 = vmul.f32 0.25, %v3288_v58  ;;  %v5686_v25 = vpop.f32.mrb[73].mxu1  ;;  %v3631_v58 = vmul.f32 %v6832_v59, %v6522_v36 }
0x2ac0   :  { %v3291_v42 = vpop.f32.mrb[74].mxu1 }
0x2ac1   :  { %v5687_v43 = vpop.f32.mrb[75].mxu1  ;;  %v3295_v22 = vadd.f32 %v3294_v56, %v6375_v15 }
0x2ac3   :  { %v3296_v63 = vsel %vm516_vm4, %v3295_v22, -inf }
0x2ac4   :  { %3297 = vmax.xlane.f32.xlu1 %v3296_v63 }
0x2ad5   :  { %3356 = vrot.lane.b32.xlu1 %v6828_v57, %s6156_s23 }
0x2b51   :  { %v3298_v0 = vpop.xlane.xlu1 %3297 }
0x2b52   :  { %v3299_v8 = vsub.f32 %v3295_v22, %v3298_v0 }
0x2b54   :  { %v3300_v9 = vmul.f32 1.442695, %v3299_v8 }
0x2b56   :  { %6083 = vpow2.f32 %v3300_v9 }
0x2b60   :  { %v6084_v50 = vpop.eup %6083 }
0x2b61   :  { %v3302_v12 = vsel %vm516_vm4, %v6084_v50, 0.0 }
0x2b62   :  { %3303 = vadd.xlane.f32.xlu0 %v3302_v12 }
0x2b78   :  { %3308 = vrot.lane.b32.xlu0 %v6876_v30, %s6154_s21  ;;  %v3357_v30 = vpop.permute.xlu1 %3356 }
0x2bef   :  { %v3304_v13 = vpop.xlane.xlu0 %3303 }
0x2bf0   :  { %6085 = vrcp.f32 %v3304_v13 }
0x2bf3   :  { %v3309_v14 = vpop.permute.xlu0 %3308 }
0x2bf4   :  { %v3314_v27 = vsel %vm535_vm5, %v3309_v14, 0 }
0x2bf5   :  { %5689 = vmatpush3.bf16.msra.mxu0 %v3314_v27 }
0x2bf6   :  { %5914 = vmatprep.subr.bf16.mxu0 %v6150_v48 }
0x2bfa   :  { %v6086_v45 = vpop.eup %6085 }
0x2bfb   :  { %v3306_v17 = vmul.f32 %v6086_v45, %v6084_v50 }
0x2bfd   :  { %v3307_v52 = vpack.c.bf16 %v3306_v17, %v3306_v17 }
0x2bff   :  { %5691 = vmatmul.mubr.msk.bf16.vlgmr.msra.gmra.mrb[68].mxu0 %vm516_vm4, %v3307_v52 }
0x2c00   :  { %5916 = vmatpush3.bf16.msra.mxu0 %v6324_v49  ;;  %5698 = vmatprep.mubr.msk.f32.mxu0 %vm6148_vm1, %v6147_v4 }
0x2c01   :  { %5707 = vmatprep.subr.bf16.mxu0 %v6147_v4 }
0x2c07   :  { %5699 = vmatmul.mubr.msk.f32.vlgmr.msra.gmra.mrb[66].mxu0 %vm218_vm3, %v3357_v30 }
0x2c08   :  { %5708 = vmatpush3.bf16.msra.mxu0 %v3314_v27  ;;  %5709 = vmatprep.mubr.msk.bf16.mxu0 %vm6148_vm1, %v6147_v4 }
0x2c09   :  { %5920 = vmatprep.subr.bf16.mxu0 %v6150_v48 }
0x2cd2   :  { %v6955_v21 = vpop.f32.mrb[68].mxu0 }
0x2cd3   :  { %v5692_v23 = vpop.f32.mrb[69].mxu0 }
0x2cd4   :  { %v3353_v24 = vpop.f32.mrb[70].mxu0 }
0x2cd5   :  { %v5693_v19 = vpop.f32.mrb[71].mxu0 }
0x2cda   :  { %v3426_v20 = vpop.f32.mrb[66].mxu0 }
0x2cdb   :  { %v3431_v32 = vmul.f32 %v6853_v61, %v3426_v20  ;;  %v5700_v39 = vpop.f32.mrb[67].mxu0 }
0x2cdd   :  { %3433 = vrot.lane.b32.xlu1 %v3431_v32, %s6151_s18 }
0x2ce1   :  { %3557 = vrot.lane.b32.xlu1 %v6832_v59, %s6149_s27 }
0x2d4f   :  { %v3434_v28 = vpop.permute.xlu1 %3433 }
0x2d50   :  { %v3436_v38 = vadd.f32 %v3434_v28, %v3430_v6 }
0x2d52   :  { %v3437_v34 = vpack.c.bf16 %v3436_v38, %v3436_v38 }
0x2d53   :  { %v3558_v61 = vpop.permute.xlu1 %3557 }
0x2d54   :  { %3439 = vrot.lane.b32.xlu0 %v3437_v34, %s6156_s23 }
0x2dc6   :  { %v3440_v29 = vpop.permute.xlu0 %3439 }
0x2dc7   :  { %5704 = vmatmul.mubr.msk.bf16.vlgmr.msra.gmra.mrb[76].mxu1 %vm218_vm3, %v3440_v29  ;;  %v7018_v29 = vpack.c.bf16 %v6832_v59, %v6832_v59 }
0x2dc8   :  { %5919 = vmatpush3.bf16.msra.mxu1 %v6324_v49  ;;  %5717 = vmatprep.mubr.msk.f32.mxu1 %vm6148_vm1, %v6147_v4 }
0x2dc9   :  { %5923 = vmatprep.subr.bf16.mxu1 %v6150_v48 }
0x2dcf   :  { %5718 = vmatmul.mubr.msk.f32.vlgmr.msra.gmra.mrb[80].mxu1 %vm218_vm3, %v3558_v61 }
0x2dd0   :  { %5925 = vmatpush3.bf16.msra.mxu1 %v6324_v49  ;;  %5731 = vmatprep.mubr.msk.f32.mxu1 %vm6148_vm1, %v6147_v4 }
0x2dd1   :  { %5740 = vmatprep.subr.bf16.mxu1 %v6147_v4 }
0x2dd3   :  { %5732 = vmatmul.mubr.msk.f32.vlgmr.msra.gmra.mrb[82].mxu1 %vm218_vm3, %v6832_v59 }
0x2dd4   :  { %5742 = vmatprep.mubr.msk.bf16.mxu1 %vm6148_vm1, %v6147_v4 }
0x2e9a   :  { %v3478_v26 = vpop.f32.mrb[76].mxu1 }
0x2e9b   :  { %v3484_v57 = vmul.f32 0.25, %v3478_v26  ;;  %v5705_v31 = vpop.f32.mrb[77].mxu1 }
0x2e9c   :  { %v3481_v7 = vpop.f32.mrb[78].mxu1 }
0x2e9d   :  { %v5706_v10 = vpop.f32.mrb[79].mxu1  ;;  %v3485_v33 = vadd.f32 %v3484_v57, %v6375_v15 }
0x2e9f   :  { %v3486_v40 = vsel %vm516_vm4, %v3485_v33, -inf }
0x2ea0   :  { %3487 = vmax.xlane.f32.xlu0 %v3486_v40 }
0x2ea2   :  { %v3627_v41 = vpop.f32.mrb[80].mxu1 }
0x2ea3   :  { %v3632_v46 = vmul.f32 %v6983_v5, %v3627_v41  ;;  %v5719_v47 = vpop.f32.mrb[81].mxu1 }
0x2ea5   :  { %3634 = vrot.lane.b32.xlu1 %v3632_v46, %s6149_s27 }
0x2ea6   :  { %v3790_v2 = vpop.f32.mrb[82].mxu1 }
0x2ea7   :  { %v3795_v53 = vmul.f32 %v6983_v5, %v3790_v2  ;;  %v5733_v60 = vpop.f32.mrb[83].mxu1 }
0x2ea9   :  { %v3796_v55 = vadd.f32 %v3795_v53, %v3794_v51 }
0x2eab   :  { %v3797_v45 = vpack.c.bf16 %v3796_v55, %v3796_v55 }
0x2f17   :  { %v3635_v56 = vpop.permute.xlu1 %3634 }
0x2f18   :  { %v3637_v25 = vadd.f32 %v3635_v56, %v3631_v58 }
0x2f1a   :  { %v3638_v42 = vpack.c.bf16 %v3637_v25, %v3637_v25 }
0x2f1c   :  { %3799 = vrot.lane.b32.xlu0 %v3638_v42, %s6149_s27  ;;  %v3984_v42 = vmul.f32 %v6832_v59, %v6574_v44 }
0x2f2d   :  { %v3488_v43 = vpop.xlane.xlu0 %3487 }
0x2f2e   :  { %v3489_v22 = vsub.f32 %v3485_v33, %v3488_v43 }
0x2f30   :  { %v3490_v63 = vmul.f32 1.442695, %v3489_v22 }
0x2f32   :  { %6087 = vpow2.f32 %v3490_v63 }
0x2f3c   :  { %v6088_v0 = vpop.eup %6087 }
0x2f3d   :  { %v3492_v8 = vsel %vm516_vm4, %v6088_v0, 0.0 }
0x2f3e   :  { %3493 = vadd.xlane.f32.xlu1 %v3492_v8 }
0x2f4f   :  { %3640 = vrot.lane.b32.xlu1 %v6832_v59, %s6151_s18 }
0x2f8e   :  { %v3800_v13 = vpop.permute.xlu0 %3799 }
0x2f8f   :  { %v3805_v27 = vsel %vm218_vm3, %v3800_v13, 0 }
0x2fcb   :  { %v3494_v9 = vpop.xlane.xlu1 %3493 }
0x2fcc   :  { %6089 = vrcp.f32 %v3494_v9 }
0x2fcf   :  { %v3641_v14 = vpop.permute.xlu1 %3640 }
0x2fd6   :  { %v6090_v50 = vpop.eup %6089 }
0x2fd7   :  { %v3496_v36 = vmul.f32 %v6090_v50, %v6088_v0 }
0x2fd9   :  { %v3497_v12 = vpack.c.bf16 %v3496_v36, %v3496_v36 }
0x2fdb   :  { %5710 = vmatmul.mubr.msk.bf16.vlgmr.msra.gmra.mrb[72].mxu0 %vm516_vm4, %v3497_v12 }
0x2fdc   :  { %5922 = vmatpush3.bf16.msra.mxu0 %v6324_v49  ;;  %5724 = vmatprep.mubr.msk.f32.mxu0 %vm6148_vm1, %v6147_v4 }
0x2fdd   :  { %5734 = vmatprep.subr.bf16.mxu0 %v6147_v4 }
0x2fe3   :  { %5725 = vmatmul.mubr.msk.f32.vlgmr.msra.gmra.mrb[76].mxu0 %vm218_vm3, %v3641_v14 }
0x2fe4   :  { %5736 = vmatprep.mubr.msk.bf16.mxu0 %vm6148_vm1, %v6147_v4 }
0x2fe5   :  { %5735 = vmatpush3.bf16.xpose.msra.mxu0 %v3805_v27 }
0x2fe6   :  { %5753 = vmatprep.subr.bf16.mxu0 %v6147_v4 }
0x2fec   :  { %5737 = vmatmul.mubr.msk.bf16.vlgmr.msra.gmra.mrb[80].mxu0 %vm218_vm3, %v3797_v45 }
0x2fed   :  { %5754 = vmatpush3.bf16.xpose.msra.mxu0 %v3805_v27  ;;  %5755 = vmatprep.mubr.msk.bf16.mxu0 %vm6148_vm1, %v6147_v4 }
0x2fee   :  { %5929 = vmatprep.subr.bf16.mxu0 %v6150_v48 }
0x30ae   :  { %v7012_v17 = vpop.f32.mrb[72].mxu0 }
0x30af   :  { %v5711_v52 = vpop.f32.mrb[73].mxu0 }
0x30b0   :  { %v3538_v30 = vpop.f32.mrb[74].mxu0 }
0x30b1   :  { %v5712_v23 = vpop.f32.mrb[75].mxu0 }
0x30b2   :  { %v3714_v23 = vmul.f32 %v6832_v59, %v6599_v11 }
0x30b6   :  { %v3710_v24 = vpop.f32.mrb[76].mxu0 }
0x30b7   :  { %v5726_v19 = vpop.f32.mrb[77].mxu0  ;;  %v3715_v40 = vmul.f32 %v6983_v5, %v3710_v24 }
0x30bf   :  { %v3841_v20 = vpop.f32.mrb[80].mxu0 }
0x30c0   :  { %v3847_v32 = vmul.f32 0.25, %v3841_v20  ;;  %v5738_v39 = vpop.f32.mrb[81].mxu0 }
0x30c1   :  { %v3844_v6 = vpop.f32.mrb[82].mxu0 }
0x30c2   :  { %v5739_v28 = vpop.f32.mrb[83].mxu0  ;;  %v3848_v38 = vadd.f32 %v3847_v32, %v6375_v15 }
0x30c4   :  { %v3849_v34 = vsel %vm516_vm4, %v3848_v38, -inf }
0x30c5   :  { %3850 = vmax.xlane.f32.xlu0 %v3849_v34  ;;  %v4169_v34 = vmul.f32 %v6832_v59, %v6604_v16 }
0x30db   :  { %3862 = vrot.lane.b32.xlu0 %v7018_v29, %s6153_s20 }
0x3152   :  { %v3851_v61 = vpop.xlane.xlu0 %3850 }
0x3153   :  { %v3852_v26 = vsub.f32 %v3848_v38, %v3851_v61 }
0x3155   :  { %v3853_v57 = vmul.f32 1.442695, %v3852_v26 }
0x3156   :  { %v3863_v31 = vpop.permute.xlu0 %3862 }
0x3157   :  { %6091 = vpow2.f32 %v3853_v57  ;;  %v3868_v7 = vsel %vm535_vm5, %v3863_v31, 0 }
0x3158   :  { %5741 = vmatpush3.bf16.msra.mxu1 %v3868_v7 }
0x3159   :  { %5926 = vmatprep.subr.bf16.mxu1 %v6150_v48 }
0x3161   :  { %v6092_v10 = vpop.eup %6091 }
0x3162   :  { %v3855_v33 = vsel %vm516_vm4, %v6092_v10, 0.0 }
0x3163   :  { %3856 = vadd.xlane.f32.xlu1 %v3855_v33 }
0x3174   :  { %3910 = vrot.lane.b32.xlu1 %v6832_v59, %s6155_s22 }
0x3178   :  { %4095 = vrot.lane.b32.xlu1 %v6832_v59, %s6157_s24 }
0x317c   :  { %3717 = vrot.lane.b32.xlu1 %v3715_v40, %s6156_s23 }
0x31f0   :  { %v3857_v41 = vpop.xlane.xlu1 %3856 }
0x31f1   :  { %6093 = vrcp.f32 %v3857_v41 }
0x31f4   :  { %v3911_v3 = vpop.permute.xlu1 %3910 }
0x31f8   :  { %v4096_v8 = vpop.permute.xlu1 %4095 }
0x31fb   :  { %v6094_v46 = vpop.eup %6093 }
0x31fc   :  { %v3859_v47 = vmul.f32 %v6094_v46, %v6092_v10  ;;  %v3718_v30 = vpop.permute.xlu1 %3717 }
0x31fd   :  { %v3720_v24 = vadd.f32 %v3718_v30, %v3714_v23 }
0x31fe   :  { %v3860_v2 = vpack.c.bf16 %v3859_v47, %v3859_v47 }
0x31ff   :  { %v3721_v19 = vpack.c.bf16 %v3720_v24, %v3720_v24 }
0x3200   :  { %5743 = vmatmul.mubr.msk.bf16.vlgmr.msra.gmra.mrb[84].mxu1 %vm516_vm4, %v3860_v2 }
0x3201   :  { %5928 = vmatpush3.bf16.msra.mxu1 %v6324_v49  ;;  %5750 = vmatprep.mubr.msk.f32.mxu1 %vm6148_vm1, %v6147_v4 }
0x3202   :  { %5759 = vmatprep.subr.bf16.mxu1 %v6147_v4 }
0x3208   :  { %5751 = vmatmul.mubr.msk.f32.vlgmr.msra.gmra.mrb[88].mxu1 %vm218_vm3, %v3911_v3 }
0x3209   :  { %5760 = vmatpush3.bf16.msra.mxu1 %v3868_v7  ;;  %5761 = vmatprep.mubr.msk.bf16.mxu1 %vm6148_vm1, %v6147_v4 }
0x320a   :  { %5772 = vmatprep.subr.bf16.mxu1 %v6147_v4 }
0x32d3   :  { %v7040_v51 = vpop.f32.mrb[84].mxu1 }
0x32d4   :  { %v5744_v53 = vpop.f32.mrb[85].mxu1 }
0x32d5   :  { %v3907_v60 = vpop.f32.mrb[86].mxu1 }
0x32d6   :  { %v5745_v55 = vpop.f32.mrb[87].mxu1 }
0x32db   :  { %v3980_v58 = vpop.f32.mrb[88].mxu1 }
0x32dc   :  { %v3985_v56 = vmul.f32 %v6983_v5, %v3980_v58  ;;  %v5752_v25 = vpop.f32.mrb[89].mxu1 }
0x32de   :  { %3987 = vrot.lane.b32.xlu0 %v3985_v56, %s6154_s21 }
0x3350   :  { %v3988_v43 = vpop.permute.xlu0 %3987 }
0x3351   :  { %v3990_v22 = vadd.f32 %v3988_v43, %v3984_v42 }
0x3353   :  { %v3991_v63 = vpack.c.bf16 %v3990_v22, %v3990_v22 }
0x3355   :  { %3993 = vrot.lane.b32.xlu0 %v3991_v63, %s6155_s22 }
0x33c7   :  { %v3994_v0 = vpop.permute.xlu0 %3993 }
0x33c8   :  { %5756 = vmatmul.mubr.msk.bf16.vlgmr.msra.gmra.mrb[84].mxu0 %vm218_vm3, %v3994_v0 }
0x33c9   :  { %5931 = vmatpush3.bf16.msra.mxu0 %v6324_v49  ;;  %5769 = vmatprep.mubr.msk.f32.mxu0 %vm6148_vm1, %v6147_v4 }
0x33ca   :  { %5778 = vmatprep.subr.bf16.mxu0 %v6147_v4 }
0x33d0   :  { %5770 = vmatmul.mubr.msk.f32.vlgmr.msra.gmra.mrb[78].mxu0 %vm218_vm3, %v4096_v8 }
0x33d1   :  { %5780 = vmatprep.mubr.msk.bf16.mxu0 %vm6148_vm1, %v6147_v4 }
0x349b   :  { %v4032_v44 = vpop.f32.mrb[84].mxu0 }
0x349c   :  { %v4038_v9 = vmul.f32 0.25, %v4032_v44  ;;  %v5757_v50 = vpop.f32.mrb[85].mxu0 }
0x349d   :  { %v4035_v36 = vpop.f32.mrb[86].mxu0 }
0x349e   :  { %v4039_v12 = vadd.f32 %v4038_v9, %v6375_v15  ;;  %v5758_v13 = vpop.f32.mrb[87].mxu0 }
0x34a0   :  { %v4040_v14 = vsel %vm516_vm4, %v4039_v12, -inf }
0x34a1   :  { %4041 = vmax.xlane.f32.xlu0 %v4040_v14 }
0x34a3   :  { %v4165_v27 = vpop.f32.mrb[78].mxu0 }
0x34a4   :  { %v4170_v45 = vmul.f32 %v6983_v5, %v4165_v27  ;;  %v5771_v52 = vpop.f32.mrb[79].mxu0 }
0x34a6   :  { %4172 = vrot.lane.b32.xlu1 %v4170_v45, %s6153_s20 }
0x34b7   :  { %4181 = vrot.lane.b32.xlu0 %v3721_v19, %s6151_s18 }
0x34bb   :  { %4291 = vrot.lane.b32.xlu0 %v6832_v59, %s6156_s23 }
0x3518   :  { %v4173_v38 = vpop.permute.xlu1 %4172 }
0x3519   :  { %v4175_v11 = vadd.f32 %v4173_v38, %v4169_v34 }
0x351b   :  { %v4176_v61 = vpack.c.bf16 %v4175_v11, %v4175_v11 }
0x352e   :  { %v4042_v20 = vpop.xlane.xlu0 %4041 }
0x352f   :  { %v4043_v32 = vsub.f32 %v4039_v12, %v4042_v20 }
0x3531   :  { %v4044_v39 = vmul.f32 1.442695, %v4043_v32 }
0x3532   :  { %v4182_v7 = vpop.permute.xlu0 %4181 }
0x3533   :  { %6095 = vpow2.f32 %v4044_v39  ;;  %v4187_v33 = vsel %vm218_vm3, %v4182_v7, 0  ;;  %v6007_v7 = vld [vmem:[%s7275_s7 + $0x10] sm:$0xff]  }
0x3536   :  { %v4292_v40 = vpop.permute.xlu0 %4291 }
0x353d   :  { %v6096_v6 = vpop.eup %6095 }
0x353e   :  { %v4046_v28 = vsel %vm516_vm4, %v6096_v6, 0.0 }
0x353f   :  { %4047 = vadd.xlane.f32.xlu1 %v4046_v28 }
0x3550   :  { %4178 = vrot.lane.b32.xlu1 %v4176_v61, %s6157_s24 }
0x35cc   :  { %v4048_v26 = vpop.xlane.xlu1 %4047 }
0x35cd   :  { %6097 = vrcp.f32 %v4048_v26 }
0x35d0   :  { %v4179_v16 = vpop.permute.xlu1 %4178 }
0x35d7   :  { %v6098_v57 = vpop.eup %6097 }
0x35d8   :  { %v4050_v31 = vmul.f32 %v6098_v57, %v6096_v6 }
0x35da   :  { %v4051_v10 = vpack.c.bf16 %v4050_v31, %v4050_v31 }
0x35dc   :  { %5762 = vmatmul.mubr.msk.bf16.vlgmr.msra.gmra.mrb[92].mxu1 %vm516_vm4, %v4051_v10  ;;  %v4511_v10 = vsel %vm2136_vm6, %v6007_v7, 0 }
0x35dd   :  { %5773 = vmatpush3.bf16.xpose.msra.mxu1 %v4187_v33  ;;  %5774 = vmatprep.mubr.msk.bf16.mxu1 %vm6148_vm1, %v6147_v4 }
0x35de   :  { %5932 = vmatprep.subr.bf16.mxu1 %v6150_v48 }
0x35e4   :  { %5775 = vmatmul.mubr.msk.bf16.vlgmr.msra.gmra.mrb[96].mxu1 %vm218_vm3, %v4179_v16 }
0x35e5   :  { %5934 = vmatpush3.bf16.msra.mxu1 %v6324_v49  ;;  %5788 = vmatprep.mubr.msk.f32.mxu1 %vm6148_vm1, %v6147_v4 }
0x35e6   :  { %5797 = vmatprep.subr.bf16.mxu1 %v6147_v4 }
0x35ec   :  { %5789 = vmatmul.mubr.msk.f32.vlgmr.msra.gmra.mrb[90].mxu1 %vm218_vm3, %v4292_v40 }
0x35ed   :  { %5799 = vmatprep.mubr.msk.bf16.mxu1 %vm6148_vm1, %v6147_v4 }
0x36af   :  { %v4089_v41 = vpop.f32.mrb[92].mxu1 }
0x36b0   :  { %v5964_v46 = vpack.i.bf16 %v4089_v41, %v6926_v35  ;;  %v5763_v48 = vpop.f32.mrb[93].mxu1 }
0x36b1   :  { %v4092_v47 = vpop.f32.mrb[94].mxu1 }
0x36b2   :  { %v5764_v2 = vpop.f32.mrb[95].mxu1 }
0x36b7   :  { %v4223_v3 = vpop.f32.mrb[96].mxu1 }
0x36b8   :  { %v4229_v53 = vmul.f32 0.25, %v4223_v3  ;;  %v5776_v49 = vpop.f32.mrb[97].mxu1 }
0x36b9   :  { %v4226_v60 = vpop.f32.mrb[98].mxu1 }
0x36ba   :  { %v4230_v55 = vadd.f32 %v4229_v53, %v6375_v15  ;;  %v5777_v58 = vpop.f32.mrb[99].mxu1 }
0x36bc   :  { %v4231_v56 = vsel %vm516_vm4, %v4230_v55, -inf }
0x36bd   :  { %4232 = vmax.xlane.f32.xlu0 %v4231_v56 }
0x36bf   :  { %v4361_v25 = vpop.f32.mrb[90].mxu1 }
0x36c0   :  { %v4366_v42 = vmul.f32 %v6983_v5, %v4361_v25  ;;  %v5790_v43 = vpop.f32.mrb[91].mxu1 }
0x36c2   :  { %4368 = vrot.lane.b32.xlu1 %v4366_v42, %s6151_s18 }
0x36d3   :  { %4243 = vrot.lane.b32.xlu0 %v7018_v29, %s6154_s21  ;;  %v4365_v29 = vmul.f32 %v6832_v59, %v6637_v1 }
0x3734   :  { %v4369_v9 = vpop.permute.xlu1 %4368 }
0x3735   :  { %v4371_v50 = vadd.f32 %v4369_v9, %v4365_v29 }
0x3737   :  { %v4372_v36 = vpack.c.bf16 %v4371_v50, %v4371_v50 }
0x374a   :  { %v4233_v35 = vpop.xlane.xlu0 %4232 }
0x374b   :  { %v4234_v22 = vsub.f32 %v4230_v55, %v4233_v35 }
0x374d   :  { %v4235_v63 = vmul.f32 1.442695, %v4234_v22 }
0x374e   :  { %v4244_v0 = vpop.permute.xlu0 %4243 }
0x374f   :  { %6099 = vpow2.f32 %v4235_v63  ;;  %v4249_v8 = vsel %vm535_vm5, %v4244_v0, 0 }
0x3750   :  { %5779 = vmatpush3.bf16.msra.mxu0 %v4249_v8  ;;  %5798 = vmatpush3.bf16.msra.mxu1 %v4249_v8 }
0x3751   :  { %5791 = vmatprep.subr.bf16.mxu0 %v6147_v4  ;;  %5811 = vmatprep.subr.bf16.mxu1 %v6147_v4 }
0x3759   :  { %v6100_v5 = vpop.eup %6099 }
0x375a   :  { %v4237_v44 = vsel %vm516_vm4, %v6100_v5, 0.0 }
0x375b   :  { %4238 = vadd.xlane.f32.xlu1 %v4237_v44 }
0x376c   :  { %4374 = vrot.lane.b32.xlu1 %v4372_v36, %s6156_s23 }
0x37e8   :  { %v4239_v12 = vpop.xlane.xlu1 %4238 }
0x37e9   :  { %6101 = vrcp.f32 %v4239_v12 }
0x37ec   :  { %v4375_v45 = vpop.permute.xlu1 %4374 }
0x37f3   :  { %v6102_v13 = vpop.eup %6101 }
0x37f4   :  { %v4241_v14 = vmul.f32 %v6102_v13, %v6100_v5 }
0x37f6   :  { %v4242_v27 = vpack.c.bf16 %v4241_v14, %v4241_v14 }
0x37f8   :  { %5781 = vmatmul.mubr.msk.bf16.vlgmr.msra.gmra.mrb[88].mxu0 %vm516_vm4, %v4242_v27 }
0x37f9   :  { %5792 = vmatpush3.bf16.xpose.msra.mxu0 %v4187_v33  ;;  %5793 = vmatprep.mubr.msk.bf16.mxu0 %vm6148_vm1, %v6147_v4  ;;  %v6008_v33 = vld [vmem:[%s7275_s7 + $0x18] sm:$0xff]  }
0x37fa   :  { %5803 = vmatprep.subr.bf16.mxu0 %v6147_v4  ;;  %v4514_v16 = vsel %vm2136_vm6, %v6008_v33, 0 }
0x3800   :  { %5794 = vmatmul.mubr.msk.bf16.vlgmr.msra.gmra.mrb[92].mxu0 %vm218_vm3, %v4375_v45 }
0x3801   :  { %5807 = vmatprep.mubr.msk.bf16.mxu0 %vm6148_vm1, %v6147_v4  ;;  %5804 = vmatpush3.bf16.xpose.msra.mxu0 %v4511_v10 }
0x3802   :  { %5805 = vmatprep.subr.bf16.mxu0 %v6147_v4 }
0x3809   :  { %5806 = vmatpush3.bf16.xpose.msra.mxu0 %v4514_v16 }
0x380a   :  { %5823 = vmatprep.subr.bf16.mxu0 %v6147_v4 }
0x38cb   :  { %v4285_v1 = vpop.f32.mrb[88].mxu0 }
0x38cc   :  { %v5969_v59 = vpack.i.bf16 %v4285_v1, %v6955_v21  ;;  %v5782_v52 = vpop.f32.mrb[89].mxu0 }
0x38cd   :  { %v4288_v30 = vpop.f32.mrb[90].mxu0  ;;  %v6013_v52 = vld [vmem:[%s7276_s8 + $0x30] sm:$0xff]  }
0x38ce   :  { %v5783_v23 = vpop.f32.mrb[91].mxu0  ;;  %v6014_v30 = vld [vmem:[%s7277_s9 + $0x30] sm:$0xff]  }
0x38cf   :  { %v4626_v23 = vsel %vm65_vm0, %v6013_v52, 0 }
0x38d3   :  { %v4413_v24 = vpop.f32.mrb[92].mxu0 }
0x38d4   :  { %v4419_v19 = vmul.f32 0.25, %v4413_v24  ;;  %v5795_v20 = vpop.f32.mrb[93].mxu0  ;;  %v4708_v24 = vsel %vm65_vm0, %v6014_v30, 0  ;;  %v6021_v30 = vld [vmem:[%s7280_s12 + $0x10] sm:$0xff]  }
0x38d5   :  { %v4416_v32 = vpop.f32.mrb[94].mxu0  ;;  %v6016_v20 = vld [vmem:[%s7277_s9 + $0x38] sm:$0xff]  }
0x38d6   :  { %v4420_v39 = vadd.f32 %v4419_v19, %v6375_v15  ;;  %v5796_v6 = vpop.f32.mrb[95].mxu0  ;;  %v6015_v19 = vld [vmem:[%s7276_s8 + $0x38] sm:$0xff]  }
0x38d7   :  { %v4629_v32 = vsel %vm65_vm0, %v6015_v19, 0 }
0x38d8   :  { %v4421_v28 = vsel %vm516_vm4, %v4420_v39, -inf }
0x38d9   :  { %4422 = vmax.xlane.f32.xlu0 %v4421_v28 }
0x38ef   :  { %5965 = vrot.lane.b32.xlu0 %v5964_v46, %s6154_s21 }
0x3966   :  { %v4423_v38 = vpop.xlane.xlu0 %4422 }
0x3967   :  { %v4424_v34 = vsub.f32 %v4420_v39, %v4423_v38  ;;  %v4711_v39 = vsel %vm65_vm0, %v6016_v20, 0  ;;  %v6023_v20 = vld [vmem:[%s7280_s12 + $0x20] sm:$0xff]  }
0x3969   :  { %v4425_v11 = vmul.f32 1.442695, %v4424_v34 }
0x396a   :  { %v5966_v2 = vpop.permute.xlu0 %5965 }
0x396b   :  { %6103 = vpow2.f32 %v4425_v11  ;;  %v5968_v53 = vunpack.i.h.bf16 %v5966_v2  ;;  %v5967_v49 = vunpack.i.l.bf16 %v5966_v2 }
0x396d   :  { %v4488_v56 = vsel %vm218_vm3, %v7040_v51, %v5968_v53  ;;  %v3553_v25 = vsel %vm218_vm3, %v6894_v54, %v5967_v49  ;;  %v6009_v54 = vld [vmem:[%s7276_s8 + $0x20] sm:$0xff]  }
0x396e   :  { %v6010_v51 = vld [vmem:[%s7277_s9 + $0x20] sm:$0xff]   ;;  %v4620_v8 = vsel %vm65_vm0, %v6009_v54, 0 }
0x396f   :  { %v4702_v5 = vsel %vm65_vm0, %v6010_v51, 0 }
0x3975   :  { %v6104_v21 = vpop.eup %6103 }
0x3976   :  { %v4427_v61 = vsel %vm516_vm4, %v6104_v21, 0.0 }
0x3977   :  { %4428 = vadd.xlane.f32.xlu1 %v4427_v61  ;;  %v5125_v61 = vld [vmem:[%s7273_s5 + $0x1] sm:$0x1] }
0x3988   :  { %5970 = vrot.lane.b32.xlu1 %v5969_v59, %s6153_s20 }
0x3a04   :  { %v4429_v26 = vpop.xlane.xlu1 %4428 }
0x3a05   :  { %6105 = vrcp.f32 %v4429_v26  ;;  %v4577_v26 = vadd.f32 1.0, %v5125_v61 }
0x3a08   :  { %v5971_v3 = vpop.permute.xlu1 %5970 }
0x3a09   :  { %v5973_v60 = vunpack.i.h.bf16 %v5971_v3  ;;  %v5972_v55 = vunpack.i.l.bf16 %v5971_v3 }
0x3a0b   :  { %v3554_v43 = vsel %vm65_vm0, %v3553_v25, %v5972_v55  ;;  %v4489_v35 = vsel %vm65_vm0, %v4488_v56, %v5973_v60 }
0x3a0f   :  { %v6106_v57 = vpop.eup %6105 }
0x3a10   :  { %v4431_v15 = vmul.f32 %v6106_v57, %v6104_v21 }
0x3a12   :  { %v4432_v31 = vpack.c.bf16 %v4431_v15, %v4431_v15 }
0x3a14   :  { %5800 = vmatmul.mubr.msk.bf16.vlgmr.msra.gmra.mrb[100].mxu1 %vm516_vm4, %v4432_v31  ;;  %v4582_v31 = vrot.slane %v4577_v26, %v6309_v37 }
0x3a15   :  { %5819 = vmatprep.mubr.msk.bf16.mxu1 %vm6148_vm1, %v6147_v4  ;;  %5812 = vmatpush3.bf16.xpose.msra.mxu1 %v4620_v8 }
0x3a16   :  { %5813 = vmatprep.subr.bf16.mxu1 %v6147_v4 }
0x3ae7   :  { %v4470_v40 = vpop.f32.mrb[100].mxu1 }
0x3ae8   :  { %v5974_v41 = vpack.i.bf16 %v4470_v40, %v7012_v17  ;;  %v5801_v46 = vpop.f32.mrb[101].mxu1 }
0x3ae9   :  { %v4473_v48 = vpop.f32.mrb[102].mxu1 }
0x3aea   :  { %5975 = vrot.lane.b32.xlu0 %v5974_v41, %s6151_s18  ;;  %v5802_v47 = vpop.f32.mrb[103].mxu1  ;;  %v6017_v41 = vld [vmem:[%s7278_s10 + $0x10] sm:$0xff]   ;;  %v6018_v48 = vld [vmem:[%s7278_s10 + $0x18] sm:$0xff]  }
0x3aeb   :  { %v4794_v46 = vsel %vm2136_vm6, %v6017_v41, 0  ;;  %v4797_v47 = vsel %vm2136_vm6, %v6018_v48, 0 }
0x3b5c   :  { %v5976_v58 = vpop.permute.xlu0 %5975 }
0x3b5d   :  { %v5978_v42 = vunpack.i.h.bf16 %v5976_v58  ;;  %v5977_v17 = vunpack.i.l.bf16 %v5976_v58 }
0x3b5f   :  { %v4490_v22 = vsel %vm1168_vm7, %v4489_v35, %v5978_v42  ;;  %v3555_v63 = vsel %vm1168_vm7, %v3554_v43, %v5977_v17 }
0x3b60   :  { %v4491_v0 = vpack.c.bf16 %v4490_v22, %v3555_v63 }
0x3b62   :  { %5808 = vmatmul.mubr.msk.bf16.vlgmr.msra.gmra.mrb[96].mxu0 %vm2136_vm6, %v4491_v0 }
0x3b63   :  { %5831 = vmatprep.mubr.msk.bf16.mxu0 %vm6148_vm1, %v6147_v4  ;;  %5824 = vmatpush3.bf16.xpose.msra.mxu0 %v4702_v5 }
0x3b64   :  { %5825 = vmatprep.subr.bf16.mxu0 %v6147_v4 }
0x3c35   :  { %v4550_v44 = vpop.f32.mrb[96].mxu0 }
0x3c36   :  { %v7145_v9 = vadd.f32 %v4550_v44, %v6793_v18  ;;  %v5809_v29 = vpop.f32.mrb[97].mxu0  ;;  %v6011_v18 = vld [vmem:[%s7276_s8 + $0x28] sm:$0xff]  }
0x3c37   :  { %v4553_v50 = vpop.f32.mrb[98].mxu0  ;;  %v4623_v1 = vsel %vm65_vm0, %v6011_v18, 0 }
0x3c38   :  { %v7148_v36 = vadd.f32 %v4553_v50, %v6796_v62  ;;  %v5810_v12 = vpop.f32.mrb[99].mxu0  ;;  %v4561_v13 = vmul.f32 %v7145_v9, %v7145_v9  ;;  %v6012_v62 = vld [vmem:[%s7277_s9 + $0x28] sm:$0xff]   ;;  %5814 = vmatpush3.bf16.xpose.msra.mxu1 %v4623_v1 }
0x3c39   :  { %v4705_v59 = vsel %vm65_vm0, %v6012_v62, 0  ;;  %5815 = vmatprep.subr.bf16.mxu1 %v6147_v4  ;;  %v6019_v62 = vld [vmem:[%s7280_s12] sm:$0xff]  }
0x3c3a   :  { %v4563_v14 = vsel %vm65_vm0, %v4561_v13, 0.0  ;;  %v4562_v27 = vmul.f32 %v7148_v36, %v7148_v36  ;;  %5826 = vmatpush3.bf16.xpose.msra.mxu0 %v4705_v59  ;;  %v4929_v1 = vsel %vm65_vm0, %v6019_v62, 0  ;;  %v6020_v59 = vld [vmem:[%s7280_s12 + $0x8] sm:$0xff]  }
0x3c3b   :  { %4564 = vadd.xlane.f32.xlu0 %v4563_v14  ;;  %5827 = vmatprep.subr.bf16.mxu0 %v6147_v4  ;;  %v4932_v52 = vsel %vm65_vm0, %v6020_v59, 0 }
0x3c3c   :  { %v4566_v45 = vsel %vm65_vm0, %v4562_v27, 0.0 }
0x3c3d   :  { %4567 = vadd.xlane.f32.xlu1 %v4566_v45 }
0x3c40   :  { %5816 = vmatpush3.bf16.xpose.msra.mxu1 %v4626_v23  ;;  %v4935_v23 = vsel %vm65_vm0, %v6021_v30, 0 }
0x3c41   :  { %5817 = vmatprep.subr.bf16.mxu1 %v6147_v4 }
0x3c42   :  { %5828 = vmatpush3.bf16.xpose.msra.mxu0 %v4708_v24  ;;  %v6022_v24 = vld [vmem:[%s7280_s12 + $0x18] sm:$0xff]  }
0x3c43   :  { %5829 = vmatprep.subr.bf16.mxu0 %v6147_v4  ;;  %v4938_v19 = vsel %vm65_vm0, %v6022_v24, 0 }
0x3c48   :  { %5818 = vmatpush3.bf16.xpose.msra.mxu1 %v4629_v32  ;;  %v4941_v32 = vsel %vm65_vm0, %v6023_v20, 0 }
0x3c49   :  { %5835 = vmatprep.subr.bf16.mxu1 %v6147_v4 }
0x3c4a   :  { %5830 = vmatpush3.bf16.xpose.msra.mxu0 %v4711_v39 }
0x3c4b   :  { %5843 = vmatprep.subr.bf16.mxu0 %v6147_v4 }
0x3cc8   :  { %v4565_v6 = vpop.xlane.xlu0 %4564 }
0x3cc9   :  { %v4569_v28 = vmul.f32 0.03125, %v4565_v6 }
0x3cca   :  { %v4568_v38 = vpop.xlane.xlu1 %4567 }
0x3ccb   :  { %v4571_v34 = vadd.f32 1e-06, %v4569_v28  ;;  %v4570_v11 = vmul.f32 0.03125, %v4568_v38 }
0x3ccd   :  { %6107 = vrsqrt.f32 %v4571_v34  ;;  %v4572_v21 = vadd.f32 1e-06, %v4570_v11 }
0x3ccf   :  { %6109 = vrsqrt.f32 %v4572_v21 }
0x3cd7   :  { %v6108_v57 = vpop.eup %6107 }
0x3cd8   :  { %v4575_v15 = vmul.f32 %v6108_v57, %v7145_v9 }
0x3cd9   :  { %v6110_v7 = vpop.eup %6109 }
0x3cda   :  { %v4576_v10 = vmul.f32 %v6110_v7, %v7148_v36  ;;  %v4584_v16 = vmul.f32 %v4582_v31, %v4575_v15  ;;  %v6024_v15 = vld [vmem:[%s7280_s12 + $0x28] sm:$0xff]   ;;  %v6026_v7 = vld [vmem:[%s7280_s12 + $0x38] sm:$0xff]  }
0x3cdc   :  { %v4585_v33 = vmul.f32 %v4582_v31, %v4576_v10  ;;  %v4944_v31 = vsel %vm65_vm0, %v6024_v15, 0  ;;  %v4950_v10 = vsel %vm65_vm0, %v6026_v7, 0 }
0x3cde   :  { %v4586_v40 = vpack.c.bf16 %v4585_v33, %v4584_v16 }
0x3ce0   :  { %5820 = vmatmul.mubr.msk.bf16.vlgmr.msra.gmra.mrb[104].mxu1 %vm65_vm0, %v4586_v40  ;;  %5832 = vmatmul.mubr.msk.bf16.vlgmr.msra.gmra.mrb[100].mxu0 %vm65_vm0, %v4586_v40 }
0x3ce1   :  { %5839 = vmatprep.mubr.msk.bf16.mxu1 %vm6148_vm1, %v6147_v4  ;;  %5859 = vmatprep.mubr.msk.bf16.mxu0 %vm6148_vm1, %v6147_v4 }
0x3ce2   :  { %5836 = vmatpush3.bf16.xpose.msra.mxu1 %v4794_v46  ;;  %5844 = vmatpush3.bf16.xpose.msra.mxu0 %v4929_v1 }
0x3ce3   :  { %5837 = vmatprep.subr.bf16.mxu1 %v6147_v4  ;;  %5845 = vmatprep.subr.bf16.mxu0 %v6147_v4 }
0x3cea   :  { %5838 = vmatpush3.bf16.xpose.msra.mxu1 %v4797_v47  ;;  %5846 = vmatpush3.bf16.xpose.msra.mxu0 %v4932_v52  ;;  %v4842_v47 = vld [vmem:[%s7279_s11] sm:$0x1] }
0x3ceb   :  { %5847 = vmatprep.subr.bf16.mxu0 %v6147_v4 }
0x3cf2   :  { %5848 = vmatpush3.bf16.xpose.msra.mxu0 %v4935_v23 }
0x3cf3   :  { %5849 = vmatprep.subr.bf16.mxu0 %v6147_v4 }
0x3cfa   :  { %5850 = vmatpush3.bf16.xpose.msra.mxu0 %v4938_v19 }
0x3cfb   :  { %5851 = vmatprep.subr.bf16.mxu0 %v6147_v4 }
0x3d02   :  { %5852 = vmatpush3.bf16.xpose.msra.mxu0 %v4941_v32 }
0x3d03   :  { %5853 = vmatprep.subr.bf16.mxu0 %v6147_v4 }
0x3d0a   :  { %5854 = vmatpush3.bf16.xpose.msra.mxu0 %v4944_v31 }
0x3d0b   :  { %5855 = vmatprep.subr.bf16.mxu0 %v6147_v4 }
0x3db3   :  { %v4665_v2 = vpop.f32.mrb[104].mxu1  ;;  %v4747_v3 = vpop.f32.mrb[100].mxu0 }
0x3db4   :  { %v4754_v53 = vmul.f32 %v4665_v2, %v4665_v2  ;;  %v5821_v49 = vpop.f32.mrb[105].mxu1  ;;  %v5833_v60 = vpop.f32.mrb[101].mxu0 }
0x3db5   :  { %v4668_v55 = vpop.f32.mrb[106].mxu1  ;;  %v4750_v58 = vpop.f32.mrb[102].mxu0 }
0x3db6   :  { %v4756_v56 = vmul.f32 %v4754_v53, %v4665_v2  ;;  %v4755_v25 = vmul.f32 %v4668_v55, %v4668_v55  ;;  %v5822_v42 = vpop.f32.mrb[107].mxu1  ;;  %v5834_v17 = vpop.f32.mrb[103].mxu0 }
0x3db8   :  { %v4758_v43 = vmul.f32 0.044715, %v4756_v56  ;;  %v4757_v35 = vmul.f32 %v4755_v25, %v4668_v55 }
0x3dba   :  { %v4760_v22 = vadd.f32 %v4758_v43, %v4665_v2  ;;  %v4759_v63 = vmul.f32 0.044715, %v4757_v35 }
0x3dbc   :  { %v4762_v0 = vmul.f32 0.7978846, %v4760_v22  ;;  %v4761_v54 = vadd.f32 %v4759_v63, %v4668_v55 }
0x3dbe   :  { %6111 = vtanh.f32 %v4762_v0  ;;  %v4763_v51 = vmul.f32 0.7978846, %v4761_v54 }
0x3dc0   :  { %6113 = vtanh.f32 %v4763_v51 }
0x3dc8   :  { %v6112_v8 = vpop.eup %6111 }
0x3dc9   :  { %v4766_v5 = vadd.f32 1.0, %v6112_v8 }
0x3dca   :  { %v6114_v44 = vpop.eup %6113 }
0x3dcb   :  { %v4768_v29 = vmul.f32 0.5, %v4766_v5  ;;  %v4767_v50 = vadd.f32 1.0, %v6114_v44 }
0x3dcd   :  { %v4770_v12 = vmul.f32 %v4768_v29, %v4665_v2  ;;  %v4769_v13 = vmul.f32 0.5, %v4767_v50 }
0x3dcf   :  { %v4772_v14 = vmul.f32 %v4770_v12, %v4747_v3  ;;  %v4771_v27 = vmul.f32 %v4769_v13, %v4668_v55 }
0x3dd1   :  { %v4773_v45 = vmul.f32 %v4771_v27, %v4750_v58 }
0x3dd3   :  { %v4774_v18 = vpack.c.bf16 %v4773_v45, %v4772_v14 }
0x3dd5   :  { %5840 = vmatmul.mubr.msk.bf16.vlgmr.msra.gmra.mrb[108].mxu1 %vm2136_vm6, %v4774_v18 }
0x3ea8   :  { %v4833_v39 = vpop.f32.mrb[108].mxu1 }
0x3ea9   :  { %v4840_v6 = vadd.f32 %v4833_v39, %v7145_v9  ;;  %v5841_v28 = vpop.f32.mrb[109].mxu1  ;;  %v6025_v9 = vld [vmem:[%s7280_s12 + $0x30] sm:$0xff]   ;;  %s6158_s12 = smov [#allocation2]  }
0x3eaa   :  { %v4836_v38 = vpop.f32.mrb[110].mxu1  ;;  %s5000_s4 = sshll.u32 %s6158_s12, 4  ;;  %s5001_s4 = int_to_ptr.vmem [resolvable:$true] %s5000_s4 }
0x3eab   :  { %v4843_v34 = vmul.f32 %v4840_v6, %v4840_v6  ;;  %v4841_v11 = vadd.f32 %v4836_v38, %v7148_v36  ;;  %v5842_v21 = vpop.f32.mrb[111].mxu1  ;;  %v4947_v36 = vsel %vm65_vm0, %v6025_v9, 0  ;;  %s6123_s11 = scalar_lea.vmem %s5001_s4, 256  ;;  %p6128_p1 = scmp.lt.s32.totalorder %s5001_s4, %s5001_s4 }
0x3eac   :  { %5856 = vmatpush3.bf16.xpose.msra.mxu0 %v4947_v36  ;;  %p6124_p0 = scmp.ne.s32.totalorder %s5001_s4, %s6123_s11  ;;  %p6129_p2 = scmp.lt.s32.totalorder %s6123_s11, %s6123_s11 }
0x3ead   :  { %v4844_v61 = vmul.f32 %v4841_v11, %v4841_v11  ;;  %v4845_v26 = vsel %vm65_vm0, %v4843_v34, 0.0  ;;  %5857 = vmatprep.subr.bf16.mxu0 %v6147_v4  ;;  %v4859_v4 = vadd.f32 1.0, %v4842_v47 }
0x3eae   :  { %4846 = vadd.xlane.f32.xlu0 %v4845_v26  ;;  %p6130_p3 = por %p6129_p2, %p6128_p1 }
0x3eaf   :  { %v4848_v57 = vsel %vm65_vm0, %v4844_v61, 0.0  ;;  %v4864_v53 = vrot.slane %v4859_v4, %v6309_v37 }
0x3eb0   :  { %p6131_p4 = pnand %p6130_p3, %p6124_p0 }
0x3eb2   :  { %4849 = vadd.xlane.f32.xlu0 %v4848_v57 }
0x3eb4   :  { %5858 = vmatpush3.bf16.xpose.msra.mxu0 %v4950_v10 }
0x3f3b   :  { %v4847_v33 = vpop.xlane.xlu0 %4846 }
0x3f3c   :  { %v4851_v16 = vmul.f32 0.03125, %v4847_v33 }
0x3f3e   :  { %v4853_v40 = vadd.f32 1e-06, %v4851_v16 }
0x3f3f   :  { %v4850_v41 = vpop.xlane.xlu0 %4849 }
0x3f40   :  { %6115 = vrsqrt.f32 %v4853_v40  ;;  %v4852_v46 = vmul.f32 0.03125, %v4850_v41 }
0x3f42   :  { %v4854_v48 = vadd.f32 1e-06, %v4852_v46 }
0x3f44   :  { %6117 = vrsqrt.f32 %v4854_v48 }
0x3f4a   :  { %v6116_v2 = vpop.eup %6115 }
0x3f4b   :  { %v4857_v3 = vmul.f32 %v6116_v2, %v4840_v6 }
0x3f4d   :  { %v4866_v58 = vmul.f32 %v4864_v53, %v4857_v3 }
0x3f4e   :  { %v6118_v49 = vpop.eup %6117 }
0x3f4f   :  { %v4858_v60 = vmul.f32 %v6118_v49, %v4841_v11 }
0x3f51   :  { %v4867_v55 = vmul.f32 %v4864_v53, %v4858_v60 }
0x3f53   :  { %v4868_v56 = vpack.c.bf16 %v4867_v55, %v4866_v58 }
0x3f55   :  { %5860 = vmatmul.mubr.msk.bf16.vlgmr.msra.gmra.mrb[104].mxu0 %vm65_vm0, %v4868_v56 }
0x4028   :  { %v4986_v25 = vpop.f32.mrb[104].mxu0 }
0x4029   :  { %4993 = vst [vmem:[#allocation2] sm:$0xff] %v4986_v25  ;;  %v5861_v42 = vpop.f32.mrb[105].mxu0 }
0x402a   :  { %v4989_v17 = vpop.f32.mrb[106].mxu0 }
0x402b   :  { %4994 = vst [vmem:[#allocation2 + $0x8] sm:$0xff] %v4989_v17  ;;  %v5862_v43 = vpop.f32.mrb[107].mxu0 }
0x402c   :  { %6134 = shalt.err (!%p6131_p4)
}
0x402d   :  { %s6135_s26 = scalar_lea.hbm %s7281_s13, 256 }
0x402e   :  { %p6136_p5 = scmp.ne.s32.totalorder %s7281_s13, %s6135_s26  ;;  %p6139_p6 = scmp.lt.u32.totalorder %s6135_s26, %s7281_s13 }
0x4030   :  { %p6141_p7 = pnand %p6139_p6, %p6136_p5 }
0x4032   :  { %6144 = shalt.err (!%p6141_p7)
}
0x4033   :  { %s6159_s29 = smov 128   ;;  %s6160_s30 = smov 8  }
0x4034   :  { %5006 = dma.vmem_to_hbm [thread:$0]  %s5001_s4, 256, %s7281_s13, [#allocation3], %s6159_s29, %s6159_s29, %s6160_s30  }
0x4035   :  { %6145 = dma.done.wait [#allocation3], 256  }
0x4036   :  { %6146 = vsyncadd [#allocation3], 4294967040 }
0x4037   :  { %5010 = vsyncpa [#allocation3], 1 }

</bundles_post_ra>
